<compile_context>
chip_gen: v5e
topology: v5e:2x2
jax: 0.10.0
libtpu: 0.0.40
codegen_flags: <defaults>
</compile_context>

<pallas_src>
import functools
import numpy as np
import jax
import jax.numpy as jnp
from jax import lax
from jax.experimental import pallas as pl
from jax.experimental.pallas import tpu as pltpu

# ----- "config" (config.model.*) -------------------------------------------
HIDDEN_DIM = 32          # config.model.hidden_dim
NUM_PROP = 3             # config.model.num_prop
AGGREGATE_TYPE = "att"   # config.model.aggregate_type  (the branch implemented)


# ---------------------------------------------------------------------------
# Fused kernel: NUM_PROP message-passing steps + attention readout + out MLP
# + log-softmax, all in one program.
# ---------------------------------------------------------------------------
def fused_gnn_kernel(num_prop, hidden_dim,
                     # graph index vectors (int32)
                     edge_in_c_ref, edge_out_c_ref, edge_out_r_ref,
                     node_out_c_ref, node_out_r_ref,
                     # edge / node features
                     ff_in_ref, ff_out_ref, bneg_ref,
                     # att_head
                     att_w1s_ref, att_w1f_ref, att_b1_ref, att_w2_ref, att_b2_ref,
                     # msg_func
                     msg_w1s_ref, msg_w1f_ref, msg_b1_ref,
                     msg_w2_ref, msg_b2_ref, msg_w3_ref, msg_b3_ref,
                     # GRUCell (gates split: r | z | n)
                     w_ir_ref, w_iz_ref, w_in_ref, w_hr_ref, w_hz_ref, w_hn_ref,
                     gb_r_ref, gb_z_ref, gb_ni_ref, gb_nh_ref,
                     # graph_output_head_att
                     ga_w1_ref, ga_b1_ref, ga_w2_ref, ga_b2_ref,
                     # output_func
                     out_w1s_ref, out_w1b_ref, out_b1_ref,
                     out_w2_ref, out_b2_ref, out_w3_ref, out_b3_ref,
                     # output
                     y_ref):
    H = hidden_dim
    M = edge_in_c_ref.shape[0]      # num message-graph edges
    E = ff_out_ref.shape[0]         # num message nodes
    V = bneg_ref.shape[0]           # num graph nodes

    def mm(a, b):
        # single-pass bf16 MXU, f32 accumulation
        return jnp.dot(a, b, preferred_element_type=jnp.float32)

    # --- build gather / scatter-add one-hot tiles in-register (no HBM) -----
    cols_e = lax.broadcasted_iota(jnp.int32, (M, E), 1)
    g_in = (edge_in_c_ref[...] == cols_e).astype(jnp.float32)     # (M,E)  x[edge_in]
    g_out = (edge_out_c_ref[...] == cols_e).astype(jnp.float32)   # (M,E)  x[edge_out]
    rows_e = lax.broadcasted_iota(jnp.int32, (E, M), 0)
    s_out_t = (edge_out_r_ref[...] == rows_e).astype(jnp.float32) # (E,M)  scatter_add -> edge_out
    cols_v = lax.broadcasted_iota(jnp.int32, (E, V), 1)
    p_gath = (node_out_c_ref[...] == cols_v).astype(jnp.float32)  # (E,V)  x[msg_node[:,1]]
    rows_v = lax.broadcasted_iota(jnp.int32, (V, E), 0)
    p_scat = (node_out_r_ref[...] == rows_v).astype(jnp.float32)  # (V,E)  scatter_add -> node

    # --- read loop-carried weights once; hoist loop-invariant projections --
    att_w1s = att_w1s_ref[...]
    att_w2 = att_w2_ref[...]
    att_b2 = att_b2_ref[...]
    msg_w1s = msg_w1s_ref[...]
    msg_w2 = msg_w2_ref[...]
    msg_b2 = msg_b2_ref[...]
    msg_w3 = msg_w3_ref[...]
    msg_b3 = msg_b3_ref[...]
    w_ir = w_ir_ref[...]
    w_iz = w_iz_ref[...]
    w_in = w_in_ref[...]
    w_hr = w_hr_ref[...]
    w_hz = w_hz_ref[...]
    w_hn = w_hn_ref[...]
    gb_r = gb_r_ref[...]
    gb_z = gb_z_ref[...]
    gb_ni = gb_ni_ref[...]
    gb_nh = gb_nh_ref[...]

    # ff_in / ff_out projections do not change across prop steps
    ff_att = mm(ff_in_ref[...], att_w1f_ref[...]) + att_b1_ref[...]    # (M, 64)
    ff_msg = mm(ff_out_ref[...], msg_w1f_ref[...]) + msg_b1_ref[...]   # (E, 64)

    state = jnp.zeros((E, H), jnp.float32)

    # num_prop is a small static constant -> fully unroll so the scheduler can
    # overlap step i+1 MXU pushes with the step i GRU tail.
    for _ in range(num_prop):
        # gather: state_in = state[edge_in]
        state_in = mm(g_in, state)                                     # (M, H)

        # att_head: Linear(H+8,64) -> ReLU -> Linear(64,1) -> Sigmoid
        h1 = jnp.maximum(mm(state_in, att_w1s) + ff_att, 0.0)
        att_logit = jnp.sum(h1 * att_w2, axis=-1, keepdims=True) + att_b2  # VPU reduce
        att = jnp.exp(jax.nn.sigmoid(att_logit))                       # (M, 1)

        # softmax normalization over incoming edges (scatter_add -> gather)
        norm = mm(s_out_t, att)                                        # (E, 1)
        att = att * pl.reciprocal(mm(g_out, norm), approx=True)        # (M, 1)

        # scatter_add of att * state_in into the target message node
        state_agg = mm(s_out_t, att * state_in)                        # (E, H)

        # msg_func: Linear(H+8,64) ReLU Linear(64,64) ReLU Linear(64,H)
        m1 = jnp.maximum(mm(state_agg, msg_w1s) + ff_msg, 0.0)
        m2 = jnp.maximum(mm(m1, msg_w2) + msg_b2, 0.0)
        msg = mm(m2, msg_w3) + msg_b3                                  # (E, H)

        # GRUCell(msg, state)  (torch gate order r | z | n), split weights
        r = jax.nn.sigmoid(mm(msg, w_ir) + mm(state, w_hr) + gb_r)
        z = jax.nn.sigmoid(mm(msg, w_iz) + mm(state, w_hz) + gb_z)
        n = jnp.tanh(mm(msg, w_in) + gb_ni + r * (mm(state, w_hn) + gb_nh))
        state = (1.0 - z) * n + z * state

    # ---- readout: attention pooling to graph nodes + output MLP ----------
    h1 = jnp.maximum(mm(state, ga_w1_ref[...]) + ga_b1_ref[...], 0.0)
    oatt_logit = jnp.sum(h1 * ga_w2_ref[...], axis=-1, keepdims=True) + ga_b2_ref[...]
    oatt = jnp.exp(jax.nn.sigmoid(oatt_logit))                         # (E, 1)
    onorm = mm(p_scat, oatt)                                           # (V, 1)
    oatt = oatt * pl.reciprocal(mm(p_gath, onorm), approx=True)        # (E, 1)
    agg = mm(p_scat, oatt * state)                                     # (V, H)

    o1 = jnp.maximum(mm(agg, out_w1s_ref[...])
                     + mm(bneg_ref[...], out_w1b_ref[...]) + out_b1_ref[...], 0.0)
    o2 = jnp.maximum(mm(o1, out_w2_ref[...]) + out_b2_ref[...], 0.0)
    y = mm(o2, out_w3_ref[...]) + out_b3_ref[...]                      # (V, 2)

    # log_softmax over the class axis
    ym = jnp.max(y, axis=1, keepdims=True)
    ys = y - ym
    y_ref[...] = ys - jnp.log(jnp.sum(jnp.exp(ys), axis=1, keepdims=True))


# ---------------------------------------------------------------------------
# Parameter init (deterministic xavier_uniform, biases zero — as in _init_param)
# ---------------------------------------------------------------------------
def xavier_uniform(key, shape):
    fan_out, fan_in = shape  # torch nn.Linear weight is (out_features, in_features)
    bound = float(np.sqrt(6.0 / (fan_in + fan_out)))
    return jax.random.uniform(key, shape, jnp.float32, -bound, bound)


def init_params(key, hidden_dim):
    H = hidden_dim
    ks = jax.random.split(key, 12)
    p = {
        # msg_func
        "msg_w1": xavier_uniform(ks[0], (64, H + 8)), "msg_b1": jnp.zeros((64,), jnp.float32),
        "msg_w2": xavier_uniform(ks[1], (64, 64)),    "msg_b2": jnp.zeros((64,), jnp.float32),
        "msg_w3": xavier_uniform(ks[2], (H, 64)),     "msg_b3": jnp.zeros((H,), jnp.float32),
        # att_head
        "att_w1": xavier_uniform(ks[3], (64, H + 8)), "att_b1": jnp.zeros((64,), jnp.float32),
        "att_w2": xavier_uniform(ks[4], (1, 64)),     "att_b2": jnp.zeros((1,), jnp.float32),
        # GRUCell
        "gru_wih": xavier_uniform(ks[5], (3 * H, H)), "gru_bih": jnp.zeros((3 * H,), jnp.float32),
        "gru_whh": xavier_uniform(ks[6], (3 * H, H)), "gru_bhh": jnp.zeros((3 * H,), jnp.float32),
        # graph_output_head_att
        "ga_w1": xavier_uniform(ks[7], (64, H)),      "ga_b1": jnp.zeros((64,), jnp.float32),
        "ga_w2": xavier_uniform(ks[8], (1, 64)),      "ga_b2": jnp.zeros((1,), jnp.float32),
        # output_func
        "out_w1": xavier_uniform(ks[9], (64, H + 2)), "out_b1": jnp.zeros((64,), jnp.float32),
        "out_w2": xavier_uniform(ks[10], (64, 64)),   "out_b2": jnp.zeros((64,), jnp.float32),
        "out_w3": xavier_uniform(ks[11], (2, 64)),    "out_b3": jnp.zeros((2,), jnp.float32),
    }
    return p


# ---------------------------------------------------------------------------
# Forward wrapper (mirrors MsgGNN.forward with target=None)
# ---------------------------------------------------------------------------
def msg_gnn_forward(params, J_msg, b, msg_node, idx_msg_edge, degree=None):
    H = HIDDEN_DIM
    V = b.shape[0]                    # num_node
    E = msg_node.shape[0]             # num_msg_node
    M = idx_msg_edge.shape[0]         # num_msg_edge

    # ---- plain-JAX glue: edge features and int32 index vectors ------------
    b_in = b[msg_node[:, 0]]                      # (E, 1)
    b_out = b[msg_node[:, 1]]                     # (E, 1)
    ff_out = jnp.concatenate(
        [b_in, -b_in, b_out, -b_out, J_msg, -J_msg, -J_msg, J_msg], axis=1)  # (E, 8)
    edge_in = idx_msg_edge[:, 0].astype(jnp.int32)
    edge_out = idx_msg_edge[:, 1].astype(jnp.int32)
    node_out = msg_node[:, 1].astype(jnp.int32)
    ff_in = ff_out[edge_in]                       # (M, 8)
    bneg = jnp.concatenate([b, -b], axis=1)       # (V, 2)

    pr = params
    row = lambda v: v.reshape(1, -1)
    att_w1t = pr["att_w1"].T            # (H+8, 64)
    msg_w1t = pr["msg_w1"].T            # (H+8, 64)
    out_w1t = pr["out_w1"].T            # (H+2, 64)
    wih_t = pr["gru_wih"].T             # (H, 3H) gate order r | z | n
    whh_t = pr["gru_whh"].T             # (H, 3H)
    w_ir, w_iz, w_in = wih_t[:, :H], wih_t[:, H:2 * H], wih_t[:, 2 * H:]
    w_hr, w_hz, w_hn = whh_t[:, :H], whh_t[:, H:2 * H], whh_t[:, 2 * H:]
    bih, bhh = pr["gru_bih"], pr["gru_bhh"]
    gb_r = row(bih[:H] + bhh[:H])
    gb_z = row(bih[H:2 * H] + bhh[H:2 * H])
    gb_ni = row(bih[2 * H:])            # input-side bias of the n gate
    gb_nh = row(bhh[2 * H:])            # hidden-side bias (inside r * (...))

    inputs = (
        # indices (column + row layouts for iota-compare one-hot construction)
        edge_in.reshape(M, 1), edge_out.reshape(M, 1), edge_out.reshape(1, M),
        node_out.reshape(E, 1), node_out.reshape(1, E),
        # features
        ff_in, ff_out, bneg,
        # att_head
        att_w1t[:H], att_w1t[H:], row(pr["att_b1"]), pr["att_w2"], pr["att_b2"].reshape(1, 1),
        # msg_func
        msg_w1t[:H], msg_w1t[H:], row(pr["msg_b1"]),
        pr["msg_w2"].T, row(pr["msg_b2"]), pr["msg_w3"].T, row(pr["msg_b3"]),
        # GRU (split gates)
        w_ir, w_iz, w_in, w_hr, w_hz, w_hn, gb_r, gb_z, gb_ni, gb_nh,
        # graph_output_head_att
        pr["ga_w1"].T, row(pr["ga_b1"]), pr["ga_w2"], pr["ga_b2"].reshape(1, 1),
        # output_func
        out_w1t[:H], out_w1t[H:], row(pr["out_b1"]),
        pr["out_w2"].T, row(pr["out_b2"]), pr["out_w3"].T, row(pr["out_b3"]),
    )

    vmem = pl.BlockSpec(memory_space=pltpu.MemorySpace.VMEM)
    y = pl.pallas_call(
        functools.partial(fused_gnn_kernel, NUM_PROP, H),
        out_shape=jax.ShapeDtypeStruct((V, 2), jnp.float32),
        in_specs=[vmem] * len(inputs),
        out_specs=vmem,
        compiler_params=pltpu.CompilerParams(vmem_limit_bytes=32 * 1024 * 1024),
    )(*inputs)

    # TODO(synk): loss branches (KLDivLoss / MSELoss) not implemented; target=None path only.
    return y, None, 0, 0


# ---------------------------------------------------------------------------
# Pure-JAX reference (mirrors the PyTorch code) for correctness checking.
# ---------------------------------------------------------------------------
def reference_forward(params, J_msg, b, msg_node, idx_msg_edge):
    H = HIDDEN_DIM
    V = b.shape[0]
    E = msg_node.shape[0]
    p = params
    lin = lambda x, w, bias: x @ w.T + bias

    b_in = b[msg_node[:, 0]]
    b_out = b[msg_node[:, 1]]
    ff_out = jnp.concatenate(
        [b_in, -b_in, b_out, -b_out, J_msg, -J_msg, -J_msg, J_msg], axis=1)
    edge_in = idx_msg_edge[:, 0]
    edge_out = idx_msg_edge[:, 1]
    ff_in = ff_out[edge_in]

    state = jnp.zeros((E, H), jnp.float32)
    for _ in range(NUM_PROP):
        state_in = state[edge_in]
        att = jax.nn.sigmoid(lin(jax.nn.relu(
            lin(jnp.concatenate([state_in, ff_in], 1), p["att_w1"], p["att_b1"])),
            p["att_w2"], p["att_b2"]))
        att = jnp.exp(att)
        norm = jax.ops.segment_sum(att, edge_out, num_segments=E)
        att = att / norm[edge_out]
        state_agg = jax.ops.segment_sum(att * state_in, edge_out, num_segments=E)
        m1 = jax.nn.relu(lin(jnp.concatenate([state_agg, ff_out], 1),
                             p["msg_w1"], p["msg_b1"]))
        m2 = jax.nn.relu(lin(m1, p["msg_w2"], p["msg_b2"]))
        msg = lin(m2, p["msg_w3"], p["msg_b3"])
        gi = msg @ p["gru_wih"].T + p["gru_bih"]
        gh = state @ p["gru_whh"].T + p["gru_bhh"]
        r = jax.nn.sigmoid(gi[:, :H] + gh[:, :H])
        z = jax.nn.sigmoid(gi[:, H:2 * H] + gh[:, H:2 * H])
        n = jnp.tanh(gi[:, 2 * H:] + r * gh[:, 2 * H:])
        state = (1.0 - z) * n + z * state

    oatt = jax.nn.sigmoid(lin(jax.nn.relu(lin(state, p["ga_w1"], p["ga_b1"])),
                              p["ga_w2"], p["ga_b2"]))
    oatt = jnp.exp(oatt)
    onorm = jax.ops.segment_sum(oatt, msg_node[:, 1], num_segments=V)
    oatt = oatt / onorm[msg_node[:, 1]]
    agg = jax.ops.segment_sum(oatt * state, msg_node[:, 1], num_segments=V)
    o1 = jax.nn.relu(lin(jnp.concatenate([agg, b, -b], 1), p["out_w1"], p["out_b1"]))
    o2 = jax.nn.relu(lin(o1, p["out_w2"], p["out_b2"]))
    y = lin(o2, p["out_w3"], p["out_b3"])
    return jax.nn.log_softmax(y, axis=1)


if __name__ == "__main__":
    key = jax.random.PRNGKey(0)
    k_par, k_mn, k_me, k_j, k_b = jax.random.split(key, 5)

    V = 8    # |V|  number of graph nodes
    E = 16   # number of message nodes (directed edges of the graph)
    M = 32   # number of message-graph edges

    params = init_params(k_par, HIDDEN_DIM)

    msg_node = jax.random.randint(k_mn, (E, 2), 0, V, dtype=jnp.int32)      # (E, 2)
    idx_msg_edge = jax.random.randint(k_me, (M, 2), 0, E, dtype=jnp.int32)  # (M, 2)
    J_msg = jax.random.normal(k_j, (E, 1), jnp.float32)                     # (E, 1)
    b = jax.random.normal(k_b, (V, 1), jnp.float32)                         # (V, 1)

    y, loss, _, _ = msg_gnn_forward(params, J_msg, b, msg_node, idx_msg_edge)
    y = jax.block_until_ready(y)

    y_ref = jax.block_until_ready(reference_forward(params, J_msg, b, msg_node, idx_msg_edge))
    # Kernel runs single-pass bf16 MXU matmuls + approx reciprocal (per perf
    # review); reference uses exact gather/segment_sum, so allow a few e-2.
    np.testing.assert_allclose(np.asarray(y), np.asarray(y_ref), rtol=5e-2, atol=5e-2)

    print("KERNEL_OK")
</pallas_src>

<mosaic_0001>
module attributes {stable_mosaic.version = 11 : i64} {
  func.func @fused_gnn_kernel(%arg0: memref<32x1xi32, #tpu.memory_space<vmem>>, %arg1: memref<32x1xi32, #tpu.memory_space<vmem>>, %arg2: memref<1x32xi32, #tpu.memory_space<vmem>>, %arg3: memref<16x1xi32, #tpu.memory_space<vmem>>, %arg4: memref<1x16xi32, #tpu.memory_space<vmem>>, %arg5: memref<32x8xf32, #tpu.memory_space<vmem>>, %arg6: memref<16x8xf32, #tpu.memory_space<vmem>>, %arg7: memref<8x2xf32, #tpu.memory_space<vmem>>, %arg8: memref<32x64xf32, #tpu.memory_space<vmem>>, %arg9: memref<8x64xf32, #tpu.memory_space<vmem>>, %arg10: memref<1x64xf32, #tpu.memory_space<vmem>>, %arg11: memref<1x64xf32, #tpu.memory_space<vmem>>, %arg12: memref<1x1xf32, #tpu.memory_space<vmem>>, %arg13: memref<32x64xf32, #tpu.memory_space<vmem>>, %arg14: memref<8x64xf32, #tpu.memory_space<vmem>>, %arg15: memref<1x64xf32, #tpu.memory_space<vmem>>, %arg16: memref<64x64xf32, #tpu.memory_space<vmem>>, %arg17: memref<1x64xf32, #tpu.memory_space<vmem>>, %arg18: memref<64x32xf32, #tpu.memory_space<vmem>>, %arg19: memref<1x32xf32, #tpu.memory_space<vmem>>, %arg20: memref<32x32xf32, #tpu.memory_space<vmem>>, %arg21: memref<32x32xf32, #tpu.memory_space<vmem>>, %arg22: memref<32x32xf32, #tpu.memory_space<vmem>>, %arg23: memref<32x32xf32, #tpu.memory_space<vmem>>, %arg24: memref<32x32xf32, #tpu.memory_space<vmem>>, %arg25: memref<32x32xf32, #tpu.memory_space<vmem>>, %arg26: memref<1x32xf32, #tpu.memory_space<vmem>>, %arg27: memref<1x32xf32, #tpu.memory_space<vmem>>, %arg28: memref<1x32xf32, #tpu.memory_space<vmem>>, %arg29: memref<1x32xf32, #tpu.memory_space<vmem>>, %arg30: memref<32x64xf32, #tpu.memory_space<vmem>>, %arg31: memref<1x64xf32, #tpu.memory_space<vmem>>, %arg32: memref<1x64xf32, #tpu.memory_space<vmem>>, %arg33: memref<1x1xf32, #tpu.memory_space<vmem>>, %arg34: memref<32x64xf32, #tpu.memory_space<vmem>>, %arg35: memref<2x64xf32, #tpu.memory_space<vmem>>, %arg36: memref<1x64xf32, #tpu.memory_space<vmem>>, %arg37: memref<64x64xf32, #tpu.memory_space<vmem>>, %arg38: memref<1x64xf32, #tpu.memory_space<vmem>>, %arg39: memref<64x2xf32, #tpu.memory_space<vmem>>, %arg40: memref<1x2xf32, #tpu.memory_space<vmem>>, %arg41: memref<8x2xf32, #tpu.memory_space<vmem>>) attributes {dimension_semantics = [], scalar_prefetch = 0 : i64, scratch_operands = 0 : i64, tpu.core_type = #tpu.core_type<tc>} {
    %0 = tpu.iota {dimensions = array<i32: 1>} : vector<32x16xi32>
    %c0 = arith.constant 0 : index
    %c0_0 = arith.constant 0 : index
    %1 = vector.load %arg0[%c0, %c0_0] : memref<32x1xi32, #tpu.memory_space<vmem>>, vector<32x1xi32>
    %2 = vector.broadcast %1 : vector<32x1xi32> to vector<32x16xi32>
    %3 = arith.cmpi eq, %2, %0 : vector<32x16xi32>
    %4 = arith.extui %3 : vector<32x16xi1> to vector<32x16xi32>
    %5 = arith.sitofp %4 : vector<32x16xi32> to vector<32x16xf32>
    %c0_1 = arith.constant 0 : index
    %c0_2 = arith.constant 0 : index
    %6 = vector.load %arg1[%c0_1, %c0_2] : memref<32x1xi32, #tpu.memory_space<vmem>>, vector<32x1xi32>
    %7 = vector.broadcast %6 : vector<32x1xi32> to vector<32x16xi32>
    %8 = arith.cmpi eq, %7, %0 : vector<32x16xi32>
    %9 = arith.extui %8 : vector<32x16xi1> to vector<32x16xi32>
    %10 = arith.sitofp %9 : vector<32x16xi32> to vector<32x16xf32>
    %11 = tpu.iota {dimensions = array<i32: 0>} : vector<16x32xi32>
    %c0_3 = arith.constant 0 : index
    %c0_4 = arith.constant 0 : index
    %12 = vector.load %arg2[%c0_3, %c0_4] : memref<1x32xi32, #tpu.memory_space<vmem>>, vector<1x32xi32>
    %13 = vector.broadcast %12 : vector<1x32xi32> to vector<16x32xi32>
    %14 = arith.cmpi eq, %13, %11 : vector<16x32xi32>
    %15 = arith.extui %14 : vector<16x32xi1> to vector<16x32xi32>
    %16 = arith.sitofp %15 : vector<16x32xi32> to vector<16x32xf32>
    %17 = tpu.iota {dimensions = array<i32: 1>} : vector<16x8xi32>
    %c0_5 = arith.constant 0 : index
    %c0_6 = arith.constant 0 : index
    %18 = vector.load %arg3[%c0_5, %c0_6] : memref<16x1xi32, #tpu.memory_space<vmem>>, vector<16x1xi32>
    %19 = vector.broadcast %18 : vector<16x1xi32> to vector<16x8xi32>
    %20 = arith.cmpi eq, %19, %17 : vector<16x8xi32>
    %21 = arith.extui %20 : vector<16x8xi1> to vector<16x8xi32>
    %22 = arith.sitofp %21 : vector<16x8xi32> to vector<16x8xf32>
    %23 = tpu.iota {dimensions = array<i32: 0>} : vector<8x16xi32>
    %c0_7 = arith.constant 0 : index
    %c0_8 = arith.constant 0 : index
    %24 = vector.load %arg4[%c0_7, %c0_8] : memref<1x16xi32, #tpu.memory_space<vmem>>, vector<1x16xi32>
    %25 = vector.broadcast %24 : vector<1x16xi32> to vector<8x16xi32>
    %26 = arith.cmpi eq, %25, %23 : vector<8x16xi32>
    %27 = arith.extui %26 : vector<8x16xi1> to vector<8x16xi32>
    %28 = arith.sitofp %27 : vector<8x16xi32> to vector<8x16xf32>
    %c0_9 = arith.constant 0 : index
    %c0_10 = arith.constant 0 : index
    %29 = vector.load %arg8[%c0_9, %c0_10] : memref<32x64xf32, #tpu.memory_space<vmem>>, vector<32x64xf32>
    %c0_11 = arith.constant 0 : index
    %c0_12 = arith.constant 0 : index
    %30 = vector.load %arg11[%c0_11, %c0_12] : memref<1x64xf32, #tpu.memory_space<vmem>>, vector<1x64xf32>
    %c0_13 = arith.constant 0 : index
    %c0_14 = arith.constant 0 : index
    %31 = vector.load %arg12[%c0_13, %c0_14] : memref<1x1xf32, #tpu.memory_space<vmem>>, vector<1x1xf32>
    %c0_15 = arith.constant 0 : index
    %c0_16 = arith.constant 0 : index
    %32 = vector.load %arg13[%c0_15, %c0_16] : memref<32x64xf32, #tpu.memory_space<vmem>>, vector<32x64xf32>
    %c0_17 = arith.constant 0 : index
    %c0_18 = arith.constant 0 : index
    %33 = vector.load %arg16[%c0_17, %c0_18] : memref<64x64xf32, #tpu.memory_space<vmem>>, vector<64x64xf32>
    %c0_19 = arith.constant 0 : index
    %c0_20 = arith.constant 0 : index
    %34 = vector.load %arg17[%c0_19, %c0_20] : memref<1x64xf32, #tpu.memory_space<vmem>>, vector<1x64xf32>
    %c0_21 = arith.constant 0 : index
    %c0_22 = arith.constant 0 : index
    %35 = vector.load %arg18[%c0_21, %c0_22] : memref<64x32xf32, #tpu.memory_space<vmem>>, vector<64x32xf32>
    %c0_23 = arith.constant 0 : index
    %c0_24 = arith.constant 0 : index
    %36 = vector.load %arg19[%c0_23, %c0_24] : memref<1x32xf32, #tpu.memory_space<vmem>>, vector<1x32xf32>
    %c0_25 = arith.constant 0 : index
    %c0_26 = arith.constant 0 : index
    %37 = vector.load %arg20[%c0_25, %c0_26] : memref<32x32xf32, #tpu.memory_space<vmem>>, vector<32x32xf32>
    %c0_27 = arith.constant 0 : index
    %c0_28 = arith.constant 0 : index
    %38 = vector.load %arg21[%c0_27, %c0_28] : memref<32x32xf32, #tpu.memory_space<vmem>>, vector<32x32xf32>
    %c0_29 = arith.constant 0 : index
    %c0_30 = arith.constant 0 : index
    %39 = vector.load %arg22[%c0_29, %c0_30] : memref<32x32xf32, #tpu.memory_space<vmem>>, vector<32x32xf32>
    %c0_31 = arith.constant 0 : index
    %c0_32 = arith.constant 0 : index
    %40 = vector.load %arg23[%c0_31, %c0_32] : memref<32x32xf32, #tpu.memory_space<vmem>>, vector<32x32xf32>
    %c0_33 = arith.constant 0 : index
    %c0_34 = arith.constant 0 : index
    %41 = vector.load %arg24[%c0_33, %c0_34] : memref<32x32xf32, #tpu.memory_space<vmem>>, vector<32x32xf32>
    %c0_35 = arith.constant 0 : index
    %c0_36 = arith.constant 0 : index
    %42 = vector.load %arg25[%c0_35, %c0_36] : memref<32x32xf32, #tpu.memory_space<vmem>>, vector<32x32xf32>
    %c0_37 = arith.constant 0 : index
    %c0_38 = arith.constant 0 : index
    %43 = vector.load %arg26[%c0_37, %c0_38] : memref<1x32xf32, #tpu.memory_space<vmem>>, vector<1x32xf32>
    %c0_39 = arith.constant 0 : index
    %c0_40 = arith.constant 0 : index
    %44 = vector.load %arg27[%c0_39, %c0_40] : memref<1x32xf32, #tpu.memory_space<vmem>>, vector<1x32xf32>
    %c0_41 = arith.constant 0 : index
    %c0_42 = arith.constant 0 : index
    %45 = vector.load %arg28[%c0_41, %c0_42] : memref<1x32xf32, #tpu.memory_space<vmem>>, vector<1x32xf32>
    %c0_43 = arith.constant 0 : index
    %c0_44 = arith.constant 0 : index
    %46 = vector.load %arg29[%c0_43, %c0_44] : memref<1x32xf32, #tpu.memory_space<vmem>>, vector<1x32xf32>
    %c0_45 = arith.constant 0 : index
    %c0_46 = arith.constant 0 : index
    %47 = vector.load %arg5[%c0_45, %c0_46] : memref<32x8xf32, #tpu.memory_space<vmem>>, vector<32x8xf32>
    %c0_47 = arith.constant 0 : index
    %c0_48 = arith.constant 0 : index
    %48 = vector.load %arg9[%c0_47, %c0_48] : memref<8x64xf32, #tpu.memory_space<vmem>>, vector<8x64xf32>
    %cst = arith.constant dense<0.000000e+00> : vector<32x64xf32>
    %49 = tpu.matmul %47, %48, %cst {dimension_numbers = #tpu.dot_dimension_numbers<[1], [0], [0], [1], [0, 0, 1, 1], [], []>} : vector<32x8xf32>, vector<8x64xf32>, vector<32x64xf32> -> vector<32x64xf32>
    %c0_49 = arith.constant 0 : index
    %c0_50 = arith.constant 0 : index
    %50 = vector.load %arg10[%c0_49, %c0_50] : memref<1x64xf32, #tpu.memory_space<vmem>>, vector<1x64xf32>
    %51 = vector.broadcast %50 : vector<1x64xf32> to vector<32x64xf32>
    %52 = arith.addf %49, %51 : vector<32x64xf32>
    %c0_51 = arith.constant 0 : index
    %c0_52 = arith.constant 0 : index
    %53 = vector.load %arg6[%c0_51, %c0_52] : memref<16x8xf32, #tpu.memory_space<vmem>>, vector<16x8xf32>
    %c0_53 = arith.constant 0 : index
    %c0_54 = arith.constant 0 : index
    %54 = vector.load %arg14[%c0_53, %c0_54] : memref<8x64xf32, #tpu.memory_space<vmem>>, vector<8x64xf32>
    %cst_55 = arith.constant dense<0.000000e+00> : vector<16x64xf32>
    %55 = tpu.matmul %53, %54, %cst_55 {dimension_numbers = #tpu.dot_dimension_numbers<[1], [0], [0], [1], [0, 0, 1, 1], [], []>} : vector<16x8xf32>, vector<8x64xf32>, vector<16x64xf32> -> vector<16x64xf32>
    %c0_56 = arith.constant 0 : index
    %c0_57 = arith.constant 0 : index
    %56 = vector.load %arg15[%c0_56, %c0_57] : memref<1x64xf32, #tpu.memory_space<vmem>>, vector<1x64xf32>
    %57 = vector.broadcast %56 : vector<1x64xf32> to vector<16x64xf32>
    %58 = arith.addf %55, %57 : vector<16x64xf32>
    %cst_58 = arith.constant 0.000000e+00 : f32
    %59 = vector.broadcast %cst_58 : f32 to vector<16x32xf32>
    %cst_59 = arith.constant dense<0.000000e+00> : vector<32x32xf32>
    %60 = tpu.matmul %5, %59, %cst_59 {dimension_numbers = #tpu.dot_dimension_numbers<[1], [0], [0], [1], [0, 0, 1, 1], [], []>} : vector<32x16xf32>, vector<16x32xf32>, vector<32x32xf32> -> vector<32x32xf32>
    %cst_60 = arith.constant dense<0.000000e+00> : vector<32x64xf32>
    %61 = tpu.matmul %60, %29, %cst_60 {dimension_numbers = #tpu.dot_dimension_numbers<[1], [0], [0], [1], [0, 0, 1, 1], [], []>} : vector<32x32xf32>, vector<32x64xf32>, vector<32x64xf32> -> vector<32x64xf32>
    %62 = arith.addf %61, %52 : vector<32x64xf32>
    %cst_61 = arith.constant 0.000000e+00 : f32
    %63 = vector.broadcast %cst_61 : f32 to vector<32x64xf32>
    %64 = arith.maximumf %62, %63 : vector<32x64xf32>
    %65 = vector.broadcast %30 : vector<1x64xf32> to vector<32x64xf32>
    %66 = arith.mulf %64, %65 : vector<32x64xf32>
    %cst_62 = arith.constant dense<0.000000e+00> : vector<32xf32>
    %67 = vector.multi_reduction <add>, %66, %cst_62 [1] : vector<32x64xf32> to vector<32xf32>
    %68 = vector.shape_cast %67 : vector<32xf32> to vector<32x1xf32>
    %69 = vector.broadcast %31 : vector<1x1xf32> to vector<32x1xf32>
    %70 = arith.addf %68, %69 : vector<32x1xf32>
    %71 = arith.negf %70 : vector<32x1xf32>
    %72 = math.exp %71 : vector<32x1xf32>
    %cst_63 = arith.constant 1.000000e+00 : f32
    %73 = vector.broadcast %cst_63 : f32 to vector<32x1xf32>
    %74 = arith.addf %73, %72 : vector<32x1xf32>
    %75 = arith.divf %73, %74 : vector<32x1xf32>
    %76 = math.exp %75 : vector<32x1xf32>
    %cst_64 = arith.constant dense<0.000000e+00> : vector<16x1xf32>
    %77 = tpu.matmul %16, %76, %cst_64 {dimension_numbers = #tpu.dot_dimension_numbers<[1], [0], [0], [1], [0, 0, 1, 1], [], []>} : vector<16x32xf32>, vector<32x1xf32>, vector<16x1xf32> -> vector<16x1xf32>
    %cst_65 = arith.constant dense<0.000000e+00> : vector<32x1xf32>
    %78 = tpu.matmul %10, %77, %cst_65 {dimension_numbers = #tpu.dot_dimension_numbers<[1], [0], [0], [1], [0, 0, 1, 1], [], []>} : vector<32x16xf32>, vector<16x1xf32>, vector<32x1xf32> -> vector<32x1xf32>
    %79 = tpu.reciprocal %78 {approx = true} : vector<32x1xf32> -> vector<32x1xf32>
    %80 = arith.mulf %76, %79 : vector<32x1xf32>
    %81 = vector.broadcast %80 : vector<32x1xf32> to vector<32x32xf32>
    %82 = arith.mulf %81, %60 : vector<32x32xf32>
    %cst_66 = arith.constant dense<0.000000e+00> : vector<16x32xf32>
    %83 = tpu.matmul %16, %82, %cst_66 {dimension_numbers = #tpu.dot_dimension_numbers<[1], [0], [0], [1], [0, 0, 1, 1], [], []>} : vector<16x32xf32>, vector<32x32xf32>, vector<16x32xf32> -> vector<16x32xf32>
    %cst_67 = arith.constant dense<0.000000e+00> : vector<16x64xf32>
    %84 = tpu.matmul %83, %32, %cst_67 {dimension_numbers = #tpu.dot_dimension_numbers<[1], [0], [0], [1], [0, 0, 1, 1], [], []>} : vector<16x32xf32>, vector<32x64xf32>, vector<16x64xf32> -> vector<16x64xf32>
    %85 = arith.addf %84, %58 : vector<16x64xf32>
    %cst_68 = arith.constant 0.000000e+00 : f32
    %86 = vector.broadcast %cst_68 : f32 to vector<16x64xf32>
    %87 = arith.maximumf %85, %86 : vector<16x64xf32>
    %cst_69 = arith.constant dense<0.000000e+00> : vector<16x64xf32>
    %88 = tpu.matmul %87, %33, %cst_69 {dimension_numbers = #tpu.dot_dimension_numbers<[1], [0], [0], [1], [0, 0, 1, 1], [], []>} : vector<16x64xf32>, vector<64x64xf32>, vector<16x64xf32> -> vector<16x64xf32>
    %89 = vector.broadcast %34 : vector<1x64xf32> to vector<16x64xf32>
    %90 = arith.addf %88, %89 : vector<16x64xf32>
    %cst_70 = arith.constant 0.000000e+00 : f32
    %91 = vector.broadcast %cst_70 : f32 to vector<16x64xf32>
    %92 = arith.maximumf %90, %91 : vector<16x64xf32>
    %cst_71 = arith.constant dense<0.000000e+00> : vector<16x32xf32>
    %93 = tpu.matmul %92, %35, %cst_71 {dimension_numbers = #tpu.dot_dimension_numbers<[1], [0], [0], [1], [0, 0, 1, 1], [], []>} : vector<16x64xf32>, vector<64x32xf32>, vector<16x32xf32> -> vector<16x32xf32>
    %94 = vector.broadcast %36 : vector<1x32xf32> to vector<16x32xf32>
    %95 = arith.addf %93, %94 : vector<16x32xf32>
    %cst_72 = arith.constant dense<0.000000e+00> : vector<16x32xf32>
    %96 = tpu.matmul %95, %37, %cst_72 {dimension_numbers = #tpu.dot_dimension_numbers<[1], [0], [0], [1], [0, 0, 1, 1], [], []>} : vector<16x32xf32>, vector<32x32xf32>, vector<16x32xf32> -> vector<16x32xf32>
    %cst_73 = arith.constant dense<0.000000e+00> : vector<16x32xf32>
    %97 = tpu.matmul %59, %40, %cst_73 {dimension_numbers = #tpu.dot_dimension_numbers<[1], [0], [0], [1], [0, 0, 1, 1], [], []>} : vector<16x32xf32>, vector<32x32xf32>, vector<16x32xf32> -> vector<16x32xf32>
    %98 = arith.addf %96, %97 : vector<16x32xf32>
    %99 = vector.broadcast %43 : vector<1x32xf32> to vector<16x32xf32>
    %100 = arith.addf %98, %99 : vector<16x32xf32>
    %101 = arith.negf %100 : vector<16x32xf32>
    %102 = math.exp %101 : vector<16x32xf32>
    %cst_74 = arith.constant 1.000000e+00 : f32
    %103 = vector.broadcast %cst_74 : f32 to vector<16x32xf32>
    %104 = arith.addf %103, %102 : vector<16x32xf32>
    %105 = arith.divf %103, %104 : vector<16x32xf32>
    %cst_75 = arith.constant dense<0.000000e+00> : vector<16x32xf32>
    %106 = tpu.matmul %95, %38, %cst_75 {dimension_numbers = #tpu.dot_dimension_numbers<[1], [0], [0], [1], [0, 0, 1, 1], [], []>} : vector<16x32xf32>, vector<32x32xf32>, vector<16x32xf32> -> vector<16x32xf32>
    %cst_76 = arith.constant dense<0.000000e+00> : vector<16x32xf32>
    %107 = tpu.matmul %59, %41, %cst_76 {dimension_numbers = #tpu.dot_dimension_numbers<[1], [0], [0], [1], [0, 0, 1, 1], [], []>} : vector<16x32xf32>, vector<32x32xf32>, vector<16x32xf32> -> vector<16x32xf32>
    %108 = arith.addf %106, %107 : vector<16x32xf32>
    %109 = vector.broadcast %44 : vector<1x32xf32> to vector<16x32xf32>
    %110 = arith.addf %108, %109 : vector<16x32xf32>
    %111 = arith.negf %110 : vector<16x32xf32>
    %112 = math.exp %111 : vector<16x32xf32>
    %cst_77 = arith.constant 1.000000e+00 : f32
    %113 = vector.broadcast %cst_77 : f32 to vector<16x32xf32>
    %114 = arith.addf %113, %112 : vector<16x32xf32>
    %115 = arith.divf %113, %114 : vector<16x32xf32>
    %cst_78 = arith.constant dense<0.000000e+00> : vector<16x32xf32>
    %116 = tpu.matmul %95, %39, %cst_78 {dimension_numbers = #tpu.dot_dimension_numbers<[1], [0], [0], [1], [0, 0, 1, 1], [], []>} : vector<16x32xf32>, vector<32x32xf32>, vector<16x32xf32> -> vector<16x32xf32>
    %117 = vector.broadcast %45 : vector<1x32xf32> to vector<16x32xf32>
    %118 = arith.addf %116, %117 : vector<16x32xf32>
    %cst_79 = arith.constant dense<0.000000e+00> : vector<16x32xf32>
    %119 = tpu.matmul %59, %42, %cst_79 {dimension_numbers = #tpu.dot_dimension_numbers<[1], [0], [0], [1], [0, 0, 1, 1], [], []>} : vector<16x32xf32>, vector<32x32xf32>, vector<16x32xf32> -> vector<16x32xf32>
    %120 = vector.broadcast %46 : vector<1x32xf32> to vector<16x32xf32>
    %121 = arith.addf %119, %120 : vector<16x32xf32>
    %122 = arith.mulf %105, %121 : vector<16x32xf32>
    %123 = arith.addf %118, %122 : vector<16x32xf32>
    %124 = math.tanh %123 : vector<16x32xf32>
    %cst_80 = arith.constant 1.000000e+00 : f32
    %125 = vector.broadcast %cst_80 : f32 to vector<16x32xf32>
    %126 = arith.subf %125, %115 : vector<16x32xf32>
    %127 = arith.mulf %126, %124 : vector<16x32xf32>
    %128 = arith.mulf %115, %59 : vector<16x32xf32>
    %129 = arith.addf %127, %128 : vector<16x32xf32>
    %cst_81 = arith.constant dense<0.000000e+00> : vector<32x32xf32>
    %130 = tpu.matmul %5, %129, %cst_81 {dimension_numbers = #tpu.dot_dimension_numbers<[1], [0], [0], [1], [0, 0, 1, 1], [], []>} : vector<32x16xf32>, vector<16x32xf32>, vector<32x32xf32> -> vector<32x32xf32>
    %cst_82 = arith.constant dense<0.000000e+00> : vector<32x64xf32>
    %131 = tpu.matmul %130, %29, %cst_82 {dimension_numbers = #tpu.dot_dimension_numbers<[1], [0], [0], [1], [0, 0, 1, 1], [], []>} : vector<32x32xf32>, vector<32x64xf32>, vector<32x64xf32> -> vector<32x64xf32>
    %132 = arith.addf %131, %52 : vector<32x64xf32>
    %cst_83 = arith.constant 0.000000e+00 : f32
    %133 = vector.broadcast %cst_83 : f32 to vector<32x64xf32>
    %134 = arith.maximumf %132, %133 : vector<32x64xf32>
    %135 = vector.broadcast %30 : vector<1x64xf32> to vector<32x64xf32>
    %136 = arith.mulf %134, %135 : vector<32x64xf32>
    %cst_84 = arith.constant dense<0.000000e+00> : vector<32xf32>
    %137 = vector.multi_reduction <add>, %136, %cst_84 [1] : vector<32x64xf32> to vector<32xf32>
    %138 = vector.shape_cast %137 : vector<32xf32> to vector<32x1xf32>
    %139 = vector.broadcast %31 : vector<1x1xf32> to vector<32x1xf32>
    %140 = arith.addf %138, %139 : vector<32x1xf32>
    %141 = arith.negf %140 : vector<32x1xf32>
    %142 = math.exp %141 : vector<32x1xf32>
    %cst_85 = arith.constant 1.000000e+00 : f32
    %143 = vector.broadcast %cst_85 : f32 to vector<32x1xf32>
    %144 = arith.addf %143, %142 : vector<32x1xf32>
    %145 = arith.divf %143, %144 : vector<32x1xf32>
    %146 = math.exp %145 : vector<32x1xf32>
    %cst_86 = arith.constant dense<0.000000e+00> : vector<16x1xf32>
    %147 = tpu.matmul %16, %146, %cst_86 {dimension_numbers = #tpu.dot_dimension_numbers<[1], [0], [0], [1], [0, 0, 1, 1], [], []>} : vector<16x32xf32>, vector<32x1xf32>, vector<16x1xf32> -> vector<16x1xf32>
    %cst_87 = arith.constant dense<0.000000e+00> : vector<32x1xf32>
    %148 = tpu.matmul %10, %147, %cst_87 {dimension_numbers = #tpu.dot_dimension_numbers<[1], [0], [0], [1], [0, 0, 1, 1], [], []>} : vector<32x16xf32>, vector<16x1xf32>, vector<32x1xf32> -> vector<32x1xf32>
    %149 = tpu.reciprocal %148 {approx = true} : vector<32x1xf32> -> vector<32x1xf32>
    %150 = arith.mulf %146, %149 : vector<32x1xf32>
    %151 = vector.broadcast %150 : vector<32x1xf32> to vector<32x32xf32>
    %152 = arith.mulf %151, %130 : vector<32x32xf32>
    %cst_88 = arith.constant dense<0.000000e+00> : vector<16x32xf32>
    %153 = tpu.matmul %16, %152, %cst_88 {dimension_numbers = #tpu.dot_dimension_numbers<[1], [0], [0], [1], [0, 0, 1, 1], [], []>} : vector<16x32xf32>, vector<32x32xf32>, vector<16x32xf32> -> vector<16x32xf32>
    %cst_89 = arith.constant dense<0.000000e+00> : vector<16x64xf32>
    %154 = tpu.matmul %153, %32, %cst_89 {dimension_numbers = #tpu.dot_dimension_numbers<[1], [0], [0], [1], [0, 0, 1, 1], [], []>} : vector<16x32xf32>, vector<32x64xf32>, vector<16x64xf32> -> vector<16x64xf32>
    %155 = arith.addf %154, %58 : vector<16x64xf32>
    %cst_90 = arith.constant 0.000000e+00 : f32
    %156 = vector.broadcast %cst_90 : f32 to vector<16x64xf32>
    %157 = arith.maximumf %155, %156 : vector<16x64xf32>
    %cst_91 = arith.constant dense<0.000000e+00> : vector<16x64xf32>
    %158 = tpu.matmul %157, %33, %cst_91 {dimension_numbers = #tpu.dot_dimension_numbers<[1], [0], [0], [1], [0, 0, 1, 1], [], []>} : vector<16x64xf32>, vector<64x64xf32>, vector<16x64xf32> -> vector<16x64xf32>
    %159 = vector.broadcast %34 : vector<1x64xf32> to vector<16x64xf32>
    %160 = arith.addf %158, %159 : vector<16x64xf32>
    %cst_92 = arith.constant 0.000000e+00 : f32
    %161 = vector.broadcast %cst_92 : f32 to vector<16x64xf32>
    %162 = arith.maximumf %160, %161 : vector<16x64xf32>
    %cst_93 = arith.constant dense<0.000000e+00> : vector<16x32xf32>
    %163 = tpu.matmul %162, %35, %cst_93 {dimension_numbers = #tpu.dot_dimension_numbers<[1], [0], [0], [1], [0, 0, 1, 1], [], []>} : vector<16x64xf32>, vector<64x32xf32>, vector<16x32xf32> -> vector<16x32xf32>
    %164 = vector.broadcast %36 : vector<1x32xf32> to vector<16x32xf32>
    %165 = arith.addf %163, %164 : vector<16x32xf32>
    %cst_94 = arith.constant dense<0.000000e+00> : vector<16x32xf32>
    %166 = tpu.matmul %165, %37, %cst_94 {dimension_numbers = #tpu.dot_dimension_numbers<[1], [0], [0], [1], [0, 0, 1, 1], [], []>} : vector<16x32xf32>, vector<32x32xf32>, vector<16x32xf32> -> vector<16x32xf32>
    %cst_95 = arith.constant dense<0.000000e+00> : vector<16x32xf32>
    %167 = tpu.matmul %129, %40, %cst_95 {dimension_numbers = #tpu.dot_dimension_numbers<[1], [0], [0], [1], [0, 0, 1, 1], [], []>} : vector<16x32xf32>, vector<32x32xf32>, vector<16x32xf32> -> vector<16x32xf32>
    %168 = arith.addf %166, %167 : vector<16x32xf32>
    %169 = vector.broadcast %43 : vector<1x32xf32> to vector<16x32xf32>
    %170 = arith.addf %168, %169 : vector<16x32xf32>
    %171 = arith.negf %170 : vector<16x32xf32>
    %172 = math.exp %171 : vector<16x32xf32>
    %cst_96 = arith.constant 1.000000e+00 : f32
    %173 = vector.broadcast %cst_96 : f32 to vector<16x32xf32>
    %174 = arith.addf %173, %172 : vector<16x32xf32>
    %175 = arith.divf %173, %174 : vector<16x32xf32>
    %cst_97 = arith.constant dense<0.000000e+00> : vector<16x32xf32>
    %176 = tpu.matmul %165, %38, %cst_97 {dimension_numbers = #tpu.dot_dimension_numbers<[1], [0], [0], [1], [0, 0, 1, 1], [], []>} : vector<16x32xf32>, vector<32x32xf32>, vector<16x32xf32> -> vector<16x32xf32>
    %cst_98 = arith.constant dense<0.000000e+00> : vector<16x32xf32>
    %177 = tpu.matmul %129, %41, %cst_98 {dimension_numbers = #tpu.dot_dimension_numbers<[1], [0], [0], [1], [0, 0, 1, 1], [], []>} : vector<16x32xf32>, vector<32x32xf32>, vector<16x32xf32> -> vector<16x32xf32>
    %178 = arith.addf %176, %177 : vector<16x32xf32>
    %179 = vector.broadcast %44 : vector<1x32xf32> to vector<16x32xf32>
    %180 = arith.addf %178, %179 : vector<16x32xf32>
    %181 = arith.negf %180 : vector<16x32xf32>
    %182 = math.exp %181 : vector<16x32xf32>
    %cst_99 = arith.constant 1.000000e+00 : f32
    %183 = vector.broadcast %cst_99 : f32 to vector<16x32xf32>
    %184 = arith.addf %183, %182 : vector<16x32xf32>
    %185 = arith.divf %183, %184 : vector<16x32xf32>
    %cst_100 = arith.constant dense<0.000000e+00> : vector<16x32xf32>
    %186 = tpu.matmul %165, %39, %cst_100 {dimension_numbers = #tpu.dot_dimension_numbers<[1], [0], [0], [1], [0, 0, 1, 1], [], []>} : vector<16x32xf32>, vector<32x32xf32>, vector<16x32xf32> -> vector<16x32xf32>
    %187 = vector.broadcast %45 : vector<1x32xf32> to vector<16x32xf32>
    %188 = arith.addf %186, %187 : vector<16x32xf32>
    %cst_101 = arith.constant dense<0.000000e+00> : vector<16x32xf32>
    %189 = tpu.matmul %129, %42, %cst_101 {dimension_numbers = #tpu.dot_dimension_numbers<[1], [0], [0], [1], [0, 0, 1, 1], [], []>} : vector<16x32xf32>, vector<32x32xf32>, vector<16x32xf32> -> vector<16x32xf32>
    %190 = vector.broadcast %46 : vector<1x32xf32> to vector<16x32xf32>
    %191 = arith.addf %189, %190 : vector<16x32xf32>
    %192 = arith.mulf %175, %191 : vector<16x32xf32>
    %193 = arith.addf %188, %192 : vector<16x32xf32>
    %194 = math.tanh %193 : vector<16x32xf32>
    %cst_102 = arith.constant 1.000000e+00 : f32
    %195 = vector.broadcast %cst_102 : f32 to vector<16x32xf32>
    %196 = arith.subf %195, %185 : vector<16x32xf32>
    %197 = arith.mulf %196, %194 : vector<16x32xf32>
    %198 = arith.mulf %185, %129 : vector<16x32xf32>
    %199 = arith.addf %197, %198 : vector<16x32xf32>
    %cst_103 = arith.constant dense<0.000000e+00> : vector<32x32xf32>
    %200 = tpu.matmul %5, %199, %cst_103 {dimension_numbers = #tpu.dot_dimension_numbers<[1], [0], [0], [1], [0, 0, 1, 1], [], []>} : vector<32x16xf32>, vector<16x32xf32>, vector<32x32xf32> -> vector<32x32xf32>
    %cst_104 = arith.constant dense<0.000000e+00> : vector<32x64xf32>
    %201 = tpu.matmul %200, %29, %cst_104 {dimension_numbers = #tpu.dot_dimension_numbers<[1], [0], [0], [1], [0, 0, 1, 1], [], []>} : vector<32x32xf32>, vector<32x64xf32>, vector<32x64xf32> -> vector<32x64xf32>
    %202 = arith.addf %201, %52 : vector<32x64xf32>
    %cst_105 = arith.constant 0.000000e+00 : f32
    %203 = vector.broadcast %cst_105 : f32 to vector<32x64xf32>
    %204 = arith.maximumf %202, %203 : vector<32x64xf32>
    %205 = vector.broadcast %30 : vector<1x64xf32> to vector<32x64xf32>
    %206 = arith.mulf %204, %205 : vector<32x64xf32>
    %cst_106 = arith.constant dense<0.000000e+00> : vector<32xf32>
    %207 = vector.multi_reduction <add>, %206, %cst_106 [1] : vector<32x64xf32> to vector<32xf32>
    %208 = vector.shape_cast %207 : vector<32xf32> to vector<32x1xf32>
    %209 = vector.broadcast %31 : vector<1x1xf32> to vector<32x1xf32>
    %210 = arith.addf %208, %209 : vector<32x1xf32>
    %211 = arith.negf %210 : vector<32x1xf32>
    %212 = math.exp %211 : vector<32x1xf32>
    %cst_107 = arith.constant 1.000000e+00 : f32
    %213 = vector.broadcast %cst_107 : f32 to vector<32x1xf32>
    %214 = arith.addf %213, %212 : vector<32x1xf32>
    %215 = arith.divf %213, %214 : vector<32x1xf32>
    %216 = math.exp %215 : vector<32x1xf32>
    %cst_108 = arith.constant dense<0.000000e+00> : vector<16x1xf32>
    %217 = tpu.matmul %16, %216, %cst_108 {dimension_numbers = #tpu.dot_dimension_numbers<[1], [0], [0], [1], [0, 0, 1, 1], [], []>} : vector<16x32xf32>, vector<32x1xf32>, vector<16x1xf32> -> vector<16x1xf32>
    %cst_109 = arith.constant dense<0.000000e+00> : vector<32x1xf32>
    %218 = tpu.matmul %10, %217, %cst_109 {dimension_numbers = #tpu.dot_dimension_numbers<[1], [0], [0], [1], [0, 0, 1, 1], [], []>} : vector<32x16xf32>, vector<16x1xf32>, vector<32x1xf32> -> vector<32x1xf32>
    %219 = tpu.reciprocal %218 {approx = true} : vector<32x1xf32> -> vector<32x1xf32>
    %220 = arith.mulf %216, %219 : vector<32x1xf32>
    %221 = vector.broadcast %220 : vector<32x1xf32> to vector<32x32xf32>
    %222 = arith.mulf %221, %200 : vector<32x32xf32>
    %cst_110 = arith.constant dense<0.000000e+00> : vector<16x32xf32>
    %223 = tpu.matmul %16, %222, %cst_110 {dimension_numbers = #tpu.dot_dimension_numbers<[1], [0], [0], [1], [0, 0, 1, 1], [], []>} : vector<16x32xf32>, vector<32x32xf32>, vector<16x32xf32> -> vector<16x32xf32>
    %cst_111 = arith.constant dense<0.000000e+00> : vector<16x64xf32>
    %224 = tpu.matmul %223, %32, %cst_111 {dimension_numbers = #tpu.dot_dimension_numbers<[1], [0], [0], [1], [0, 0, 1, 1], [], []>} : vector<16x32xf32>, vector<32x64xf32>, vector<16x64xf32> -> vector<16x64xf32>
    %225 = arith.addf %224, %58 : vector<16x64xf32>
    %cst_112 = arith.constant 0.000000e+00 : f32
    %226 = vector.broadcast %cst_112 : f32 to vector<16x64xf32>
    %227 = arith.maximumf %225, %226 : vector<16x64xf32>
    %cst_113 = arith.constant dense<0.000000e+00> : vector<16x64xf32>
    %228 = tpu.matmul %227, %33, %cst_113 {dimension_numbers = #tpu.dot_dimension_numbers<[1], [0], [0], [1], [0, 0, 1, 1], [], []>} : vector<16x64xf32>, vector<64x64xf32>, vector<16x64xf32> -> vector<16x64xf32>
    %229 = vector.broadcast %34 : vector<1x64xf32> to vector<16x64xf32>
    %230 = arith.addf %228, %229 : vector<16x64xf32>
    %cst_114 = arith.constant 0.000000e+00 : f32
    %231 = vector.broadcast %cst_114 : f32 to vector<16x64xf32>
    %232 = arith.maximumf %230, %231 : vector<16x64xf32>
    %cst_115 = arith.constant dense<0.000000e+00> : vector<16x32xf32>
    %233 = tpu.matmul %232, %35, %cst_115 {dimension_numbers = #tpu.dot_dimension_numbers<[1], [0], [0], [1], [0, 0, 1, 1], [], []>} : vector<16x64xf32>, vector<64x32xf32>, vector<16x32xf32> -> vector<16x32xf32>
    %234 = vector.broadcast %36 : vector<1x32xf32> to vector<16x32xf32>
    %235 = arith.addf %233, %234 : vector<16x32xf32>
    %cst_116 = arith.constant dense<0.000000e+00> : vector<16x32xf32>
    %236 = tpu.matmul %235, %37, %cst_116 {dimension_numbers = #tpu.dot_dimension_numbers<[1], [0], [0], [1], [0, 0, 1, 1], [], []>} : vector<16x32xf32>, vector<32x32xf32>, vector<16x32xf32> -> vector<16x32xf32>
    %cst_117 = arith.constant dense<0.000000e+00> : vector<16x32xf32>
    %237 = tpu.matmul %199, %40, %cst_117 {dimension_numbers = #tpu.dot_dimension_numbers<[1], [0], [0], [1], [0, 0, 1, 1], [], []>} : vector<16x32xf32>, vector<32x32xf32>, vector<16x32xf32> -> vector<16x32xf32>
    %238 = arith.addf %236, %237 : vector<16x32xf32>
    %239 = vector.broadcast %43 : vector<1x32xf32> to vector<16x32xf32>
    %240 = arith.addf %238, %239 : vector<16x32xf32>
    %241 = arith.negf %240 : vector<16x32xf32>
    %242 = math.exp %241 : vector<16x32xf32>
    %cst_118 = arith.constant 1.000000e+00 : f32
    %243 = vector.broadcast %cst_118 : f32 to vector<16x32xf32>
    %244 = arith.addf %243, %242 : vector<16x32xf32>
    %245 = arith.divf %243, %244 : vector<16x32xf32>
    %cst_119 = arith.constant dense<0.000000e+00> : vector<16x32xf32>
    %246 = tpu.matmul %235, %38, %cst_119 {dimension_numbers = #tpu.dot_dimension_numbers<[1], [0], [0], [1], [0, 0, 1, 1], [], []>} : vector<16x32xf32>, vector<32x32xf32>, vector<16x32xf32> -> vector<16x32xf32>
    %cst_120 = arith.constant dense<0.000000e+00> : vector<16x32xf32>
    %247 = tpu.matmul %199, %41, %cst_120 {dimension_numbers = #tpu.dot_dimension_numbers<[1], [0], [0], [1], [0, 0, 1, 1], [], []>} : vector<16x32xf32>, vector<32x32xf32>, vector<16x32xf32> -> vector<16x32xf32>
    %248 = arith.addf %246, %247 : vector<16x32xf32>
    %249 = vector.broadcast %44 : vector<1x32xf32> to vector<16x32xf32>
    %250 = arith.addf %248, %249 : vector<16x32xf32>
    %251 = arith.negf %250 : vector<16x32xf32>
    %252 = math.exp %251 : vector<16x32xf32>
    %cst_121 = arith.constant 1.000000e+00 : f32
    %253 = vector.broadcast %cst_121 : f32 to vector<16x32xf32>
    %254 = arith.addf %253, %252 : vector<16x32xf32>
    %255 = arith.divf %253, %254 : vector<16x32xf32>
    %cst_122 = arith.constant dense<0.000000e+00> : vector<16x32xf32>
    %256 = tpu.matmul %235, %39, %cst_122 {dimension_numbers = #tpu.dot_dimension_numbers<[1], [0], [0], [1], [0, 0, 1, 1], [], []>} : vector<16x32xf32>, vector<32x32xf32>, vector<16x32xf32> -> vector<16x32xf32>
    %257 = vector.broadcast %45 : vector<1x32xf32> to vector<16x32xf32>
    %258 = arith.addf %256, %257 : vector<16x32xf32>
    %cst_123 = arith.constant dense<0.000000e+00> : vector<16x32xf32>
    %259 = tpu.matmul %199, %42, %cst_123 {dimension_numbers = #tpu.dot_dimension_numbers<[1], [0], [0], [1], [0, 0, 1, 1], [], []>} : vector<16x32xf32>, vector<32x32xf32>, vector<16x32xf32> -> vector<16x32xf32>
    %260 = vector.broadcast %46 : vector<1x32xf32> to vector<16x32xf32>
    %261 = arith.addf %259, %260 : vector<16x32xf32>
    %262 = arith.mulf %245, %261 : vector<16x32xf32>
    %263 = arith.addf %258, %262 : vector<16x32xf32>
    %264 = math.tanh %263 : vector<16x32xf32>
    %cst_124 = arith.constant 1.000000e+00 : f32
    %265 = vector.broadcast %cst_124 : f32 to vector<16x32xf32>
    %266 = arith.subf %265, %255 : vector<16x32xf32>
    %267 = arith.mulf %266, %264 : vector<16x32xf32>
    %268 = arith.mulf %255, %199 : vector<16x32xf32>
    %269 = arith.addf %267, %268 : vector<16x32xf32>
    %c0_125 = arith.constant 0 : index
    %c0_126 = arith.constant 0 : index
    %270 = vector.load %arg30[%c0_125, %c0_126] : memref<32x64xf32, #tpu.memory_space<vmem>>, vector<32x64xf32>
    %cst_127 = arith.constant dense<0.000000e+00> : vector<16x64xf32>
    %271 = tpu.matmul %269, %270, %cst_127 {dimension_numbers = #tpu.dot_dimension_numbers<[1], [0], [0], [1], [0, 0, 1, 1], [], []>} : vector<16x32xf32>, vector<32x64xf32>, vector<16x64xf32> -> vector<16x64xf32>
    %c0_128 = arith.constant 0 : index
    %c0_129 = arith.constant 0 : index
    %272 = vector.load %arg31[%c0_128, %c0_129] : memref<1x64xf32, #tpu.memory_space<vmem>>, vector<1x64xf32>
    %273 = vector.broadcast %272 : vector<1x64xf32> to vector<16x64xf32>
    %274 = arith.addf %271, %273 : vector<16x64xf32>
    %cst_130 = arith.constant 0.000000e+00 : f32
    %275 = vector.broadcast %cst_130 : f32 to vector<16x64xf32>
    %276 = arith.maximumf %274, %275 : vector<16x64xf32>
    %c0_131 = arith.constant 0 : index
    %c0_132 = arith.constant 0 : index
    %277 = vector.load %arg32[%c0_131, %c0_132] : memref<1x64xf32, #tpu.memory_space<vmem>>, vector<1x64xf32>
    %278 = vector.broadcast %277 : vector<1x64xf32> to vector<16x64xf32>
    %279 = arith.mulf %276, %278 : vector<16x64xf32>
    %cst_133 = arith.constant dense<0.000000e+00> : vector<16xf32>
    %280 = vector.multi_reduction <add>, %279, %cst_133 [1] : vector<16x64xf32> to vector<16xf32>
    %281 = vector.shape_cast %280 : vector<16xf32> to vector<16x1xf32>
    %c0_134 = arith.constant 0 : index
    %c0_135 = arith.constant 0 : index
    %282 = vector.load %arg33[%c0_134, %c0_135] : memref<1x1xf32, #tpu.memory_space<vmem>>, vector<1x1xf32>
    %283 = vector.broadcast %282 : vector<1x1xf32> to vector<16x1xf32>
    %284 = arith.addf %281, %283 : vector<16x1xf32>
    %285 = arith.negf %284 : vector<16x1xf32>
    %286 = math.exp %285 : vector<16x1xf32>
    %cst_136 = arith.constant 1.000000e+00 : f32
    %287 = vector.broadcast %cst_136 : f32 to vector<16x1xf32>
    %288 = arith.addf %287, %286 : vector<16x1xf32>
    %289 = arith.divf %287, %288 : vector<16x1xf32>
    %290 = math.exp %289 : vector<16x1xf32>
    %cst_137 = arith.constant dense<0.000000e+00> : vector<8x1xf32>
    %291 = tpu.matmul %28, %290, %cst_137 {dimension_numbers = #tpu.dot_dimension_numbers<[1], [0], [0], [1], [0, 0, 1, 1], [], []>} : vector<8x16xf32>, vector<16x1xf32>, vector<8x1xf32> -> vector<8x1xf32>
    %cst_138 = arith.constant dense<0.000000e+00> : vector<16x1xf32>
    %292 = tpu.matmul %22, %291, %cst_138 {dimension_numbers = #tpu.dot_dimension_numbers<[1], [0], [0], [1], [0, 0, 1, 1], [], []>} : vector<16x8xf32>, vector<8x1xf32>, vector<16x1xf32> -> vector<16x1xf32>
    %293 = tpu.reciprocal %292 {approx = true} : vector<16x1xf32> -> vector<16x1xf32>
    %294 = arith.mulf %290, %293 : vector<16x1xf32>
    %295 = vector.broadcast %294 : vector<16x1xf32> to vector<16x32xf32>
    %296 = arith.mulf %295, %269 : vector<16x32xf32>
    %cst_139 = arith.constant dense<0.000000e+00> : vector<8x32xf32>
    %297 = tpu.matmul %28, %296, %cst_139 {dimension_numbers = #tpu.dot_dimension_numbers<[1], [0], [0], [1], [0, 0, 1, 1], [], []>} : vector<8x16xf32>, vector<16x32xf32>, vector<8x32xf32> -> vector<8x32xf32>
    %c0_140 = arith.constant 0 : index
    %c0_141 = arith.constant 0 : index
    %298 = vector.load %arg34[%c0_140, %c0_141] : memref<32x64xf32, #tpu.memory_space<vmem>>, vector<32x64xf32>
    %cst_142 = arith.constant dense<0.000000e+00> : vector<8x64xf32>
    %299 = tpu.matmul %297, %298, %cst_142 {dimension_numbers = #tpu.dot_dimension_numbers<[1], [0], [0], [1], [0, 0, 1, 1], [], []>} : vector<8x32xf32>, vector<32x64xf32>, vector<8x64xf32> -> vector<8x64xf32>
    %c0_143 = arith.constant 0 : index
    %c0_144 = arith.constant 0 : index
    %300 = vector.load %arg7[%c0_143, %c0_144] : memref<8x2xf32, #tpu.memory_space<vmem>>, vector<8x2xf32>
    %c0_145 = arith.constant 0 : index
    %c0_146 = arith.constant 0 : index
    %301 = vector.load %arg35[%c0_145, %c0_146] : memref<2x64xf32, #tpu.memory_space<vmem>>, vector<2x64xf32>
    %cst_147 = arith.constant dense<0.000000e+00> : vector<8x64xf32>
    %302 = tpu.matmul %300, %301, %cst_147 {dimension_numbers = #tpu.dot_dimension_numbers<[1], [0], [0], [1], [0, 0, 1, 1], [], []>} : vector<8x2xf32>, vector<2x64xf32>, vector<8x64xf32> -> vector<8x64xf32>
    %303 = arith.addf %299, %302 : vector<8x64xf32>
    %c0_148 = arith.constant 0 : index
    %c0_149 = arith.constant 0 : index
    %304 = vector.load %arg36[%c0_148, %c0_149] : memref<1x64xf32, #tpu.memory_space<vmem>>, vector<1x64xf32>
    %305 = vector.broadcast %304 : vector<1x64xf32> to vector<8x64xf32>
    %306 = arith.addf %303, %305 : vector<8x64xf32>
    %cst_150 = arith.constant 0.000000e+00 : f32
    %307 = vector.broadcast %cst_150 : f32 to vector<8x64xf32>
    %308 = arith.maximumf %306, %307 : vector<8x64xf32>
    %c0_151 = arith.constant 0 : index
    %c0_152 = arith.constant 0 : index
    %309 = vector.load %arg37[%c0_151, %c0_152] : memref<64x64xf32, #tpu.memory_space<vmem>>, vector<64x64xf32>
    %cst_153 = arith.constant dense<0.000000e+00> : vector<8x64xf32>
    %310 = tpu.matmul %308, %309, %cst_153 {dimension_numbers = #tpu.dot_dimension_numbers<[1], [0], [0], [1], [0, 0, 1, 1], [], []>} : vector<8x64xf32>, vector<64x64xf32>, vector<8x64xf32> -> vector<8x64xf32>
    %c0_154 = arith.constant 0 : index
    %c0_155 = arith.constant 0 : index
    %311 = vector.load %arg38[%c0_154, %c0_155] : memref<1x64xf32, #tpu.memory_space<vmem>>, vector<1x64xf32>
    %312 = vector.broadcast %311 : vector<1x64xf32> to vector<8x64xf32>
    %313 = arith.addf %310, %312 : vector<8x64xf32>
    %cst_156 = arith.constant 0.000000e+00 : f32
    %314 = vector.broadcast %cst_156 : f32 to vector<8x64xf32>
    %315 = arith.maximumf %313, %314 : vector<8x64xf32>
    %c0_157 = arith.constant 0 : index
    %c0_158 = arith.constant 0 : index
    %316 = vector.load %arg39[%c0_157, %c0_158] : memref<64x2xf32, #tpu.memory_space<vmem>>, vector<64x2xf32>
    %cst_159 = arith.constant dense<0.000000e+00> : vector<8x2xf32>
    %317 = tpu.matmul %315, %316, %cst_159 {dimension_numbers = #tpu.dot_dimension_numbers<[1], [0], [0], [1], [0, 0, 1, 1], [], []>} : vector<8x64xf32>, vector<64x2xf32>, vector<8x2xf32> -> vector<8x2xf32>
    %c0_160 = arith.constant 0 : index
    %c0_161 = arith.constant 0 : index
    %318 = vector.load %arg40[%c0_160, %c0_161] : memref<1x2xf32, #tpu.memory_space<vmem>>, vector<1x2xf32>
    %319 = vector.broadcast %318 : vector<1x2xf32> to vector<8x2xf32>
    %320 = arith.addf %317, %319 : vector<8x2xf32>
    %cst_162 = arith.constant dense<0xFF800000> : vector<8xf32>
    %321 = vector.multi_reduction <maximumf>, %320, %cst_162 [1] : vector<8x2xf32> to vector<8xf32>
    %322 = vector.shape_cast %321 : vector<8xf32> to vector<8x1xf32>
    %323 = vector.broadcast %322 : vector<8x1xf32> to vector<8x2xf32>
    %324 = arith.subf %320, %323 : vector<8x2xf32>
    %325 = math.exp %324 : vector<8x2xf32>
    %cst_163 = arith.constant dense<0.000000e+00> : vector<8xf32>
    %326 = vector.multi_reduction <add>, %325, %cst_163 [1] : vector<8x2xf32> to vector<8xf32>
    %327 = vector.shape_cast %326 : vector<8xf32> to vector<8x1xf32>
    %328 = math.log %327 : vector<8x1xf32>
    %329 = vector.broadcast %328 : vector<8x1xf32> to vector<8x2xf32>
    %330 = arith.subf %324, %329 : vector<8x2xf32>
    %c0_164 = arith.constant 0 : index
    %c0_165 = arith.constant 0 : index
    %331 = vector.load %arg41[%c0_164, %c0_165] : memref<8x2xf32, #tpu.memory_space<vmem>>, vector<8x2xf32>
    tpu.vector_store %arg41[%c0_164, %c0_165], %330 {strides = array<i32>} : memref<8x2xf32, #tpu.memory_space<vmem>>, vector<8x2xf32>,
    return
  }
}

</mosaic_0001>

<bundles_post_ra>
// kernel: tpu_custom_call.1
= control target key start
LH: loop header
LB: loop body
LE: loop exit
PB: predicated region body
PF: predicated region fallthrough
CT: control target
= control target key end

     0   :  { %s3923_s6 = smov 1   ;;  %s3924_s10 = smov 2   ;;  %s5134_s0 = inlined_call_operand.smem [shape: u32[42], index: -1, kind: input, shape index: {}] }
   0x1   :  { %s3995_s5 = sld [smem:[%s5134_s0]]   ;;  %s3925_s14 = smov 3  }
   0x2   :  { %s4000_s9 = sld [smem:[%s5134_s0 + %s3923_s6]]   ;;  %s3926_s18 = smov 4  }
   0x3   :  { %s4005_s13 = sld [smem:[%s5134_s0 + %s3924_s10]]   ;;  %s3927_s22 = smov 5  }
   0x4   :  { %s4010_s17 = sld [smem:[%s5134_s0 + %s3925_s14]]   ;;  %s3928_s26 = smov 6  }
   0x5   :  { %s4015_s21 = sld [smem:[%s5134_s0 + %s3926_s18]]   ;;  %s3929_s30 = smov 7  }
   0x6   :  { %s4020_s25 = sld [smem:[%s5134_s0 + %s3927_s22]]   ;;  %s3930_s4 = smov 8  }
   0x7   :  { %5197 = sst [smem:[#allocation43_spill]] %s3995_s5  ;;  %s3931_s10 = smov 9  }
   0x8   :  { %5198 = sst [smem:[#allocation44_spill]] %s4000_s9  ;;  %s3932_s15 = smov 10  }
   0x9   :  { %5199 = sst [smem:[#allocation45_spill]] %s4005_s13  ;;  %s3933_s20 = smov 11  }
   0xa   :  { %5200 = sst [smem:[#allocation46_spill]] %s4010_s17  ;;  %s3935_s1 = smov 13  }
   0xb   :  { %5201 = sst [smem:[#allocation47_spill]] %s4015_s21  ;;  %s3936_s7 = smov 14  }
   0xc   :  { %5202 = sst [smem:[#allocation48_spill]] %s4020_s25  ;;  %s3938_s22 = smov 16  }
   0xd   :  { %s4025_s29 = sld [smem:[%s5134_s0 + %s3928_s26]]   ;;  %s3934_s26 = smov 12  }
   0xe   :  { %s4030_s3 = sld [smem:[%s5134_s0 + %s3929_s30]]   ;;  %s3939_s28 = smov 17  }
   0xf   :  { %s4035_s8 = sld [smem:[%s5134_s0 + %s3930_s4]]   ;;  %s3946_s21 = smov 24  }
  0x10   :  { %s4040_s14 = sld [smem:[%s5134_s0 + %s3931_s10]]   ;;  %s3947_s17 = smov 25  }
  0x11   :  { %s4045_s19 = sld [smem:[%s5134_s0 + %s3932_s15]]   ;;  %s3937_s15 = smov 15  }
  0x12   :  { %s4050_s24 = sld [smem:[%s5134_s0 + %s3933_s20]]  }
  0x13   :  { %5203 = sst [smem:[#allocation49_spill]] %s4025_s29 }
  0x14   :  { %5204 = sst [smem:[#allocation50_spill]] %s4030_s3 }
  0x15   :  { %5205 = sst [smem:[#allocation51_spill]] %s4035_s8 }
  0x16   :  { %5206 = sst [smem:[#allocation52_spill]] %s4040_s14 }
  0x17   :  { %s2945_s30 = sld [smem:[%s5134_s0 + %s3934_s26]]  }
  0x18   :  { %s4058_s6 = sld [smem:[%s5134_s0 + %s3935_s1]]   ;;  %s3943_s1 = smov 21  }
  0x19   :  { %s4063_s12 = sld [smem:[%s5134_s0 + %s3936_s7]]   ;;  %s3940_s7 = smov 18  }
  0x1a   :  { %s4068_s20 = sld [smem:[%s5134_s0 + %s3937_s15]]   ;;  %s3941_s15 = smov 19  }
  0x1b   :  { %s4073_s27 = sld [smem:[%s5134_s0 + %s3938_s22]]   ;;  %s3942_s22 = smov 20  }
  0x1c   :  { %s4078_s4 = sld [smem:[%s5134_s0 + %s3939_s28]]  }
  0x1d   :  { %s4083_s3 = sld [smem:[%s5134_s0 + %s3940_s7]]   ;;  %v88_v0 = vstv %s2945_s30  ;;  %s3944_s30 = smov 22  }
  0x1e   :  { %5207 = sst [smem:[#allocation53_spill]] %s4058_s6  ;;  %89 = vst [vmem:[#allocation2] sm:$0x1] %v88_v0 }
  0x1f   :  { %s4088_s23 = sld [smem:[%s5134_s0 + %s3941_s15]]   ;;  %s3945_s15 = smov 23  }
  0x20   :  { %s4093_s28 = sld [smem:[%s5134_s0 + %s3942_s22]]  }
  0x21   :  { %5208 = sst [smem:[#allocation54_spill]] %s4073_s27 }
  0x22   :  { %s4098_s7 = sld [smem:[%s5134_s0 + %s3943_s1]]  }
  0x23   :  { %5209 = sst [smem:[#allocation55_spill]] %s4083_s3  ;;  %s3949_s3 = smov 27  }
  0x24   :  { %s4103_s16 = sld [smem:[%s5134_s0 + %s3944_s30]]   ;;  %s3948_s30 = smov 26  }
  0x25   :  { %s4108_s27 = sld [smem:[%s5134_s0 + %s3945_s15]]  }
  0x26   :  { %5210 = sst [smem:[#allocation56_spill]] %s4093_s28 }
  0x27   :  { %s4113_s28 = sld [smem:[%s5134_s0 + %s3946_s21]]   ;;  %s3950_s21 = smov 28  }
  0x28   :  { %5211 = sst [smem:[#allocation57_spill]] %s4098_s7 }
  0x29   :  { %s4118_s7 = sld [smem:[%s5134_s0 + %s3947_s17]]   ;;  %s3951_s17 = smov 29  }
  0x2a   :  { %s4123_s6 = sld [smem:[%s5134_s0 + %s3948_s30]]   ;;  %s3952_s30 = smov 30  }
  0x2b   :  { %s4128_s13 = sld [smem:[%s5134_s0 + %s3949_s3]]   ;;  %s3953_s3 = smov 31  }
  0x2c   :  { %s4133_s9 = sld [smem:[%s5134_s0 + %s3950_s21]]   ;;  %s3954_s21 = smov 32  }
  0x2d   :  { %s4138_s29 = sld [smem:[%s5134_s0 + %s3951_s17]]   ;;  %s3955_s17 = smov 34  }
  0x2e   :  { %s4143_s25 = sld [smem:[%s5134_s0 + %s3952_s30]]   ;;  %s3956_s30 = smov 35  }
  0x2f   :  { %s4148_s14 = sld [smem:[%s5134_s0 + %s3953_s3]]   ;;  %s3957_s3 = smov 36  }
  0x30   :  { %5212 = sst [smem:[#allocation58_spill]] %s4123_s6 }
  0x31   :  { %s4153_s8 = sld [smem:[%s5134_s0 + %s3954_s21]]   ;;  %s3958_s21 = smov 37  }
  0x32   :  { %5213 = sst [smem:[#allocation59_spill]] %s4133_s9 }
  0x33   :  { %s4158_s5 = sld [smem:[%s5134_s0 + %s3955_s17]]   ;;  %s3959_s17 = smov 38  }
  0x34   :  { %5214 = sst [smem:[#allocation60_spill]] %s4143_s25 }
  0x35   :  { %s4163_s25 = sld [smem:[%s5134_s0 + %s3956_s30]]   ;;  %s3960_s30 = smov 39  }
  0x36   :  { %s4168_s9 = sld [smem:[%s5134_s0 + %s3957_s3]]   ;;  %s3961_s3 = smov 40  }
  0x37   :  { %5215 = sst [smem:[#allocation61_spill]] %s4153_s8 }
  0x38   :  { %s4173_s8 = sld [smem:[%s5134_s0 + %s3958_s21]]   ;;  %s3962_s21 = smov 41  }
  0x39   :  { %5216 = sst [smem:[#allocation62_spill]] %s4158_s5 }
  0x3a   :  { %s4178_s5 = sld [smem:[%s5134_s0 + %s3959_s17]]   ;;  %s3963_s17 = smov 33  }
  0x3b   :  { %s4183_s6 = sld [smem:[%s5134_s0 + %s3960_s30]]  }
  0x3c   :  { %5217 = sst [smem:[#allocation63_spill]] %s4168_s9 }
  0x3d   :  { %s4188_s9 = sld [smem:[%s5134_s0 + %s3961_s3]]  }
  0x3e   :  { %5218 = sst [smem:[#allocation64_spill]] %s4173_s8 }
  0x3f   :  { %s4193_s8 = sld [smem:[%s5134_s0 + %s3962_s21]]  }
  0x40   :  { %5219 = sst [smem:[#allocation65_spill]] %s4178_s5 }
  0x41   :  { %s2966_s5 = sld [smem:[%s5134_s0 + %s3963_s17]]  }
  0x47   :  { %v90_v1 = vstv %s2966_s5 }
  0x48   :  { %91 = vst [vmem:[#allocation3] sm:$0x1] %v90_v1 }
  0x49   :  { %92 = vsyncpa [#allocation5], 0 }
  0x4a   :  { %93 = vsyncpa [#allocation7], 0 }
  0x4b   :  { %94 = vsyncpa [#allocation10], 0 }
  0x4c   :  { %95 = vsyncpa [#allocation13], 0 }
  0x4d   :  { %96 = vsyncpa [#allocation16], 0 }
  0x4e   :  { %97 = vsyncpa [#allocation19], 0 }
  0x4f   :  { %98 = vsyncpa [#allocation22], 0 }
  0x50   :  { %99 = vsyncpa [#allocation25], 0 }
  0x51   :  { %100 = vsyncpa [#allocation28], 0  ;;  %s138_s30 = sshll.u32 %s4050_s24, 4  ;;  %s139_s30 = int_to_ptr.hbm [resolvable:$true] %s138_s30 }
  0x52   :  { %101 = vsyncpa [#allocation31], 0  ;;  %s3964_s10 = smov [#allocation6]   ;;  %s164_s5 = sshll.u32 %s4068_s20, 4  ;;  %s165_s5 = int_to_ptr.hbm [resolvable:$true] %s164_s5 }
  0x53   :  { %s140_s0 = sshll.u32 %s3964_s10, 4  ;;  %s3447_s11 = sshra.s32 %s139_s30, 4  ;;  %s141_s0 = int_to_ptr.vmem [resolvable:$true] %s140_s0  ;;  %s3448_s11 = int_to_ptr.hbm [resolvable:$true] %s3447_s11 }
  0x54   :  { %s3449_s3 = scalar_lea.hbm %s3448_s11, 1  ;;  %s3451_s15 = scalar_lea.hbm %s4050_s24, 1 }
  0x55   :  { %p3450_p0 = scmp.ne.s32.totalorder %s3448_s11, %s3449_s3  ;;  %p3452_p1 = scmp.lt.s32.totalorder %s3448_s11, %s4050_s24 }
  0x56   :  { %p3453_p2 = scmp.lt.s32.totalorder %s3451_s15, %s3449_s3 }
  0x58   :  { %p3454_p3 = por %p3453_p2, %p3452_p1 }
  0x5a   :  { %p3455_p4 = pnand %p3454_p3, %p3450_p0 }
  0x5c   :  { %3458 = shalt.err (!%p3455_p4)
}
  0x5d   :  { %143 = dma.hbm_to_vmem [thread:$0]  %s139_s30, 16, %s141_s0, [#allocation7]  }
  0x5e   :  { %s3965_s18 = smov [#allocation9]   ;;  %s190_s22 = sshll.u32 %s4088_s23, 4  ;;  %s191_s22 = int_to_ptr.hbm [resolvable:$true] %s190_s22 }
  0x5f   :  { %s166_s21 = sshll.u32 %s3965_s18, 4  ;;  %s3471_s26 = sshra.s32 %s165_s5, 4  ;;  %s167_s21 = int_to_ptr.vmem [resolvable:$true] %s166_s21  ;;  %s3472_s26 = int_to_ptr.hbm [resolvable:$true] %s3471_s26 }
  0x60   :  { %s3473_s17 = scalar_lea.hbm %s3472_s26, 1  ;;  %s3475_s1 = scalar_lea.hbm %s4068_s20, 1 }
  0x61   :  { %p3474_p5 = scmp.ne.s32.totalorder %s3472_s26, %s3473_s17  ;;  %p3476_p6 = scmp.lt.s32.totalorder %s3472_s26, %s4068_s20 }
  0x62   :  { %p3477_p7 = scmp.lt.s32.totalorder %s3475_s1, %s3473_s17 }
  0x64   :  { %p3478_p8 = por %p3477_p7, %p3476_p6 }
  0x66   :  { %p3479_p9 = pnand %p3478_p8, %p3474_p5 }
  0x68   :  { %3482 = shalt.err (!%p3479_p9)
}
  0x69   :  { %169 = dma.hbm_to_vmem [thread:$0]  %s165_s5, 16, %s167_s21, [#allocation10]  }
  0x6a   :  { %s3966_s24 = smov [#allocation12]   ;;  %s217_s30 = sshll.u32 %s4108_s27, 4  ;;  %s218_s30 = int_to_ptr.hbm [resolvable:$true] %s217_s30 }
  0x6b   :  { %s192_s2 = sshll.u32 %s3966_s24, 4  ;;  %s3495_s10 = sshra.s32 %s191_s22, 4  ;;  %s193_s2 = int_to_ptr.vmem [resolvable:$true] %s192_s2  ;;  %s3496_s10 = int_to_ptr.hbm [resolvable:$true] %s3495_s10 }
  0x6c   :  { %s3497_s0 = scalar_lea.hbm %s3496_s10, 1  ;;  %s3499_s11 = scalar_lea.hbm %s4088_s23, 1 }
  0x6d   :  { %p3498_p10 = scmp.ne.s32.totalorder %s3496_s10, %s3497_s0  ;;  %p3500_p11 = scmp.lt.s32.totalorder %s3496_s10, %s4088_s23 }
  0x6e   :  { %p3501_p12 = scmp.lt.s32.totalorder %s3499_s11, %s3497_s0 }
  0x70   :  { %p3502_p13 = por %p3501_p12, %p3500_p11 }
  0x72   :  { %p3503_p0 = pnand %p3502_p13, %p3498_p10 }
  0x74   :  { %3506 = shalt.err (!%p3503_p0)
}
  0x75   :  { %195 = dma.hbm_to_vmem [thread:$0]  %s191_s22, 16, %s193_s2, [#allocation13]  }
  0x76   :  { %s3967_s20 = smov [#allocation15]   ;;  %s243_s3 = sshll.u32 %s4118_s7, 4  ;;  %s4209_s3 = int_to_ptr.hbm [resolvable:$true] %s243_s3 }
  0x77   :  { %s219_s5 = sshll.u32 %s3967_s20, 4  ;;  %s3519_s15 = sshra.s32 %s218_s30, 4  ;;  %s220_s5 = int_to_ptr.vmem [resolvable:$true] %s219_s5  ;;  %s3520_s15 = int_to_ptr.hbm [resolvable:$true] %s3519_s15 }
  0x78   :  { %s3521_s18 = scalar_lea.hbm %s3520_s15, 32  ;;  %s3523_s23 = scalar_lea.hbm %s4108_s27, 32 }
  0x79   :  { %p3522_p1 = scmp.ne.s32.totalorder %s3520_s15, %s3521_s18  ;;  %p3524_p2 = scmp.lt.s32.totalorder %s3520_s15, %s4108_s27 }
  0x7a   :  { %p3525_p3 = scmp.lt.s32.totalorder %s3523_s23, %s3521_s18 }
  0x7c   :  { %p3526_p4 = por %p3525_p3, %p3524_p2 }
  0x7e   :  { %p3527_p5 = pnand %p3526_p4, %p3522_p1 }
  0x80   :  { %3530 = shalt.err (!%p3527_p5)
}
  0x81   :  { %s3968_s21 = smov 128   ;;  %s3969_s22 = smov 8  }
  0x82   :  { %225 = dma.hbm_to_vmem [thread:$0]  %s218_s30, 512, %s220_s5, [#allocation16], %s3968_s21, %s3968_s21, %s3969_s22  }
  0x83   :  { %s268_s26 = sshll.u32 %s4128_s13, 4  ;;  %s3970_s17 = smov [#allocation18]   ;;  %s269_s26 = int_to_ptr.hbm [resolvable:$true] %s268_s26 }
  0x84   :  { %s245_s1 = sshll.u32 %s3970_s17, 4  ;;  %s3543_s27 = sshra.s32 %s4209_s3, 4  ;;  %s246_s1 = int_to_ptr.vmem [resolvable:$true] %s245_s1  ;;  %s3544_s27 = int_to_ptr.hbm [resolvable:$true] %s3543_s27 }
  0x85   :  { %s3545_s24 = scalar_lea.hbm %s3544_s27, 32  ;;  %s3547_s2 = scalar_lea.hbm %s4118_s7, 32 }
  0x86   :  { %p3546_p6 = scmp.ne.s32.totalorder %s3544_s27, %s3545_s24  ;;  %p3548_p7 = scmp.lt.s32.totalorder %s3544_s27, %s4118_s7 }
  0x87   :  { %p3549_p8 = scmp.lt.s32.totalorder %s3547_s2, %s3545_s24 }
  0x89   :  { %p3550_p9 = por %p3549_p8, %p3548_p7 }
  0x8b   :  { %p3551_p10 = pnand %p3550_p9, %p3546_p6 }
  0x8d   :  { %3554 = shalt.err (!%p3551_p10)
}
  0x8e   :  { %251 = dma.hbm_to_vmem [thread:$0]  %s4209_s3, 512, %s246_s1, [#allocation19], %s3968_s21, %s3968_s21, %s3969_s22  }
  0x8f   :  { %s3971_s30 = smov [#allocation21]   ;;  %s290_s0 = sshll.u32 %s4138_s29, 4  ;;  %s291_s0 = int_to_ptr.hbm [resolvable:$true] %s290_s0 }
  0x90   :  { %s270_s10 = sshll.u32 %s3971_s30, 4  ;;  %s3567_s11 = sshra.s32 %s269_s26, 4  ;;  %s271_s10 = int_to_ptr.vmem [resolvable:$true] %s270_s10  ;;  %s3568_s11 = int_to_ptr.hbm [resolvable:$true] %s3567_s11 }
  0x91   :  { %s3569_s7 = scalar_lea.hbm %s3568_s11, 1  ;;  %s3571_s20 = scalar_lea.hbm %s4128_s13, 1 }
  0x92   :  { %p3570_p11 = scmp.ne.s32.totalorder %s3568_s11, %s3569_s7  ;;  %p3572_p12 = scmp.lt.s32.totalorder %s3568_s11, %s4128_s13 }
  0x93   :  { %p3573_p13 = scmp.lt.s32.totalorder %s3571_s20, %s3569_s7 }
  0x95   :  { %p3574_p0 = por %p3573_p13, %p3572_p12 }
  0x97   :  { %p3575_p1 = pnand %p3574_p0, %p3570_p11 }
  0x99   :  { %3578 = shalt.err (!%p3575_p1)
}
  0x9a   :  { %273 = dma.hbm_to_vmem [thread:$0]  %s269_s26, 16, %s271_s10, [#allocation22]  }
  0x9b   :  { %s314_s5 = sshll.u32 %s4148_s14, 4  ;;  %s3972_s3 = smov [#allocation24]   ;;  %s315_s5 = int_to_ptr.hbm [resolvable:$true] %s314_s5 }
  0x9c   :  { %s292_s15 = sshll.u32 %s3972_s3, 4  ;;  %s3591_s18 = sshra.s32 %s291_s0, 4  ;;  %s293_s15 = int_to_ptr.vmem [resolvable:$true] %s292_s15  ;;  %s3592_s18 = int_to_ptr.hbm [resolvable:$true] %s3591_s18 }
  0x9d   :  { %s3593_s23 = scalar_lea.hbm %s3592_s18, 1  ;;  %s3595_s17 = scalar_lea.hbm %s4138_s29, 1 }
  0x9e   :  { %p3594_p2 = scmp.ne.s32.totalorder %s3592_s18, %s3593_s23  ;;  %p3596_p3 = scmp.lt.s32.totalorder %s3592_s18, %s4138_s29 }
  0x9f   :  { %p3597_p4 = scmp.lt.s32.totalorder %s3595_s17, %s3593_s23 }
  0xa1   :  { %p3598_p5 = por %p3597_p4, %p3596_p3 }
  0xa3   :  { %p3599_p6 = pnand %p3598_p5, %p3594_p2 }
  0xa5   :  { %3602 = shalt.err (!%p3599_p6)
}
  0xa6   :  { %295 = dma.hbm_to_vmem [thread:$0]  %s291_s0, 16, %s293_s15, [#allocation25]  }
  0xa7   :  { %s3973_s13 = smov [#allocation27]   ;;  %s340_s1 = sshll.u32 %s4163_s25, 4  ;;  %s341_s1 = int_to_ptr.hbm [resolvable:$true] %s340_s1 }
  0xa8   :  { %s316_s26 = sshll.u32 %s3973_s13, 4  ;;  %s3615_s27 = sshra.s32 %s315_s5, 4  ;;  %s317_s26 = int_to_ptr.vmem [resolvable:$true] %s316_s26  ;;  %s3616_s27 = int_to_ptr.hbm [resolvable:$true] %s3615_s27 }
  0xa9   :  { %s3617_s24 = scalar_lea.hbm %s3616_s27, 1  ;;  %s3619_s2 = scalar_lea.hbm %s4148_s14, 1 }
  0xaa   :  { %p3618_p7 = scmp.ne.s32.totalorder %s3616_s27, %s3617_s24  ;;  %p3620_p8 = scmp.lt.s32.totalorder %s3616_s27, %s4148_s14 }
  0xab   :  { %p3621_p9 = scmp.lt.s32.totalorder %s3619_s2, %s3617_s24 }
  0xad   :  { %p3622_p10 = por %p3621_p9, %p3620_p8 }
  0xaf   :  { %p3623_p11 = pnand %p3622_p10, %p3618_p7 }
  0xb1   :  { %3626 = shalt.err (!%p3623_p11)
}
  0xb2   :  { %319 = dma.hbm_to_vmem [thread:$0]  %s315_s5, 16, %s317_s26, [#allocation28]  }
  0xb3   :  { %s127_s29 = sshll.u32 %s4045_s19, 4  ;;  %s3974_s30 = smov [#allocation30]   ;;  %s128_s29 = int_to_ptr.hbm [resolvable:$true] %s127_s29 }
  0xb4   :  { %s342_s10 = sshll.u32 %s3974_s30, 4  ;;  %s3639_s0 = sshra.s32 %s341_s1, 4  ;;  %s343_s10 = int_to_ptr.vmem [resolvable:$true] %s342_s10  ;;  %s3640_s0 = int_to_ptr.hbm [resolvable:$true] %s3639_s0 }
  0xb5   :  { %s3641_s11 = scalar_lea.hbm %s3640_s0, 2  ;;  %s3643_s7 = scalar_lea.hbm %s4163_s25, 2 }
  0xb6   :  { %p3642_p12 = scmp.ne.s32.totalorder %s3640_s0, %s3641_s11  ;;  %p3644_p13 = scmp.lt.s32.totalorder %s3640_s0, %s4163_s25 }
  0xb7   :  { %p3645_p0 = scmp.lt.s32.totalorder %s3643_s7, %s3641_s11 }
  0xb9   :  { %p3646_p1 = por %p3645_p0, %p3644_p13 }
  0xbb   :  { %p3647_p2 = pnand %p3646_p1, %p3642_p12 }
  0xbd   :  { %3650 = shalt.err (!%p3647_p2)
}
  0xbe   :  { %345 = dma.hbm_to_vmem [thread:$0]  %s341_s1, 32, %s343_s10, [#allocation31]  }
  0xbf   :  { %s3975_s14 = smov [#allocation4]   ;;  %s153_s5 = sshll.u32 %s4063_s12, 4  ;;  %s154_s5 = int_to_ptr.hbm [resolvable:$true] %s153_s5 }
  0xc0   :  { %s129_s20 = sshll.u32 %s3975_s14, 4  ;;  %s3663_s3 = sshra.s32 %s128_s29, 4  ;;  %s130_s20 = int_to_ptr.vmem [resolvable:$true] %s129_s20  ;;  %s3664_s3 = int_to_ptr.hbm [resolvable:$true] %s3663_s3 }
  0xc1   :  { %s3665_s15 = scalar_lea.hbm %s3664_s3, 1  ;;  %s3667_s18 = scalar_lea.hbm %s4045_s19, 1 }
  0xc2   :  { %p3666_p3 = scmp.ne.s32.totalorder %s3664_s3, %s3665_s15  ;;  %p3668_p4 = scmp.lt.s32.totalorder %s3664_s3, %s4045_s19 }
  0xc3   :  { %p3669_p5 = scmp.lt.s32.totalorder %s3667_s18, %s3665_s15 }
  0xc5   :  { %p3670_p6 = por %p3669_p5, %p3668_p4 }
  0xc7   :  { %p3671_p7 = pnand %p3670_p6, %p3666_p3 }
  0xc9   :  { %3674 = shalt.err (!%p3671_p7)
}
  0xca   :  { %132 = dma.hbm_to_vmem [thread:$0]  %s128_s29, 16, %s130_s20, [#allocation5]  }
  0xcb   :  { %s177_s25 = sshll.u32 %s4078_s4, 4  ;;  %s3976_s23 = smov [#allocation8]   ;;  %s178_s25 = int_to_ptr.hbm [resolvable:$true] %s177_s25 }
  0xcc   :  { %s155_s17 = sshll.u32 %s3976_s23, 4  ;;  %s3687_s13 = sshra.s32 %s154_s5, 4  ;;  %s156_s17 = int_to_ptr.vmem [resolvable:$true] %s155_s17  ;;  %s3688_s13 = int_to_ptr.hbm [resolvable:$true] %s3687_s13 }
  0xcd   :  { %s3689_s26 = scalar_lea.hbm %s3688_s13, 8  ;;  %s3691_s1 = scalar_lea.hbm %s4063_s12, 8 }
  0xce   :  { %p3690_p8 = scmp.ne.s32.totalorder %s3688_s13, %s3689_s26  ;;  %p3692_p9 = scmp.lt.s32.totalorder %s3688_s13, %s4063_s12 }
  0xcf   :  { %p3693_p10 = scmp.lt.s32.totalorder %s3691_s1, %s3689_s26 }
  0xd1   :  { %p3694_p11 = por %p3693_p10, %p3692_p9 }
  0xd3   :  { %p3695_p12 = pnand %p3694_p11, %p3690_p8 }
  0xd5   :  { %3698 = shalt.err (!%p3695_p12)
}
  0xd6   :  { %158 = dma.hbm_to_vmem [thread:$0]  %s154_s5, 128, %s156_s17, [#allocation7]  }
  0xd7   :  { %s3977_s19 = smov [#allocation11]   ;;  %s204_s24 = sshll.u32 %s4103_s16, 4  ;;  %s4243_s24 = int_to_ptr.hbm [resolvable:$true] %s204_s24 }
  0xd8   :  { %s179_s27 = sshll.u32 %s3977_s19, 4  ;;  %s3711_s2 = sshra.s32 %s178_s25, 4  ;;  %s180_s27 = int_to_ptr.vmem [resolvable:$true] %s179_s27  ;;  %s3712_s2 = int_to_ptr.hbm [resolvable:$true] %s3711_s2 }
  0xd9   :  { %s3713_s29 = scalar_lea.hbm %s3712_s2, 1  ;;  %s3715_s30 = scalar_lea.hbm %s4078_s4, 1 }
  0xda   :  { %p3714_p13 = scmp.ne.s32.totalorder %s3712_s2, %s3713_s29  ;;  %p3716_p0 = scmp.lt.s32.totalorder %s3712_s2, %s4078_s4 }
  0xdb   :  { %p3717_p1 = scmp.lt.s32.totalorder %s3715_s30, %s3713_s29 }
  0xdd   :  { %p3718_p2 = por %p3717_p1, %p3716_p0 }
  0xdf   :  { %p3719_p3 = pnand %p3718_p2, %p3714_p13 }
  0xe1   :  { %3722 = shalt.err (!%p3719_p3)
}
  0xe2   :  { %182 = dma.hbm_to_vmem [thread:$0]  %s178_s25, 16, %s180_s27, [#allocation10]  }
  0xe3   :  { %s230_s12 = sshll.u32 %s4113_s28, 4  ;;  %s3978_s10 = smov [#allocation14]   ;;  %s4248_s12 = int_to_ptr.hbm [resolvable:$true] %s230_s12 }
  0xe4   :  { %s206_s0 = sshll.u32 %s3978_s10, 4  ;;  %s3735_s11 = sshra.s32 %s4243_s24, 4  ;;  %s207_s0 = int_to_ptr.vmem [resolvable:$true] %s206_s0  ;;  %s3736_s11 = int_to_ptr.hbm [resolvable:$true] %s3735_s11 }
  0xe5   :  { %s3737_s7 = scalar_lea.hbm %s3736_s11, 32  ;;  %s3739_s4 = scalar_lea.hbm %s4103_s16, 32 }
  0xe6   :  { %p3738_p4 = scmp.ne.s32.totalorder %s3736_s11, %s3737_s7  ;;  %p3740_p5 = scmp.lt.s32.totalorder %s3736_s11, %s4103_s16 }
  0xe7   :  { %p3741_p6 = scmp.lt.s32.totalorder %s3739_s4, %s3737_s7 }
  0xe9   :  { %p3742_p7 = por %p3741_p6, %p3740_p5 }
  0xeb   :  { %p3743_p8 = pnand %p3742_p7, %p3738_p4 }
  0xed   :  { %3746 = shalt.err (!%p3743_p8)
}
  0xee   :  { %s5220_s14 = sld [smem:[#allocation58_spill]]  ;;  %s3979_s20 = smov [#allocation17]  }
  0xef   :  { %212 = dma.hbm_to_vmem [thread:$0]  %s4243_s24, 512, %s207_s0, [#allocation13], %s3968_s21, %s3968_s21, %s3969_s22  }
  0xf0   :  { %s232_s5 = sshll.u32 %s3979_s20, 4  ;;  %s3759_s15 = sshra.s32 %s4248_s12, 4  ;;  %s233_s5 = int_to_ptr.vmem [resolvable:$true] %s232_s5  ;;  %s3760_s15 = int_to_ptr.hbm [resolvable:$true] %s3759_s15 }
  0xf1   :  { %s3761_s16 = scalar_lea.hbm %s3760_s15, 32  ;;  %s3763_s18 = scalar_lea.hbm %s4113_s28, 32 }
  0xf2   :  { %p3762_p9 = scmp.ne.s32.totalorder %s3760_s15, %s3761_s16  ;;  %p3764_p10 = scmp.lt.s32.totalorder %s3760_s15, %s4113_s28 }
  0xf3   :  { %p3765_p11 = scmp.lt.s32.totalorder %s3763_s18, %s3761_s16 }
  0xf4   :  { %s257_s3 = sshll.u32 %s5220_s14, 4  ;;  %s258_s3 = int_to_ptr.hbm [resolvable:$true] %s257_s3 }
  0xf5   :  { %p3766_p12 = por %p3765_p11, %p3764_p10 }
  0xf7   :  { %p3767_p13 = pnand %p3766_p12, %p3762_p9 }
  0xf9   :  { %3770 = shalt.err (!%p3767_p13)
}
  0xfa   :  { %s5221_s25 = sld [smem:[#allocation59_spill]]  ;;  %s3980_s17 = smov [#allocation20]  }
  0xfb   :  { %238 = dma.hbm_to_vmem [thread:$0]  %s4248_s12, 512, %s233_s5, [#allocation16], %s3968_s21, %s3968_s21, %s3969_s22  }
  0xfc   :  { %s259_s13 = sshll.u32 %s3980_s17, 4  ;;  %s3783_s26 = sshra.s32 %s258_s3, 4  ;;  %s260_s13 = int_to_ptr.vmem [resolvable:$true] %s259_s13  ;;  %s3784_s26 = int_to_ptr.hbm [resolvable:$true] %s3783_s26 }
  0xfd   :  { %s3785_s28 = scalar_lea.hbm %s3784_s26, 1  ;;  %s3787_s1 = scalar_lea.hbm %s5220_s14, 1 }
  0xfe   :  { %p3786_p0 = scmp.ne.s32.totalorder %s3784_s26, %s3785_s28  ;;  %p3788_p1 = scmp.lt.s32.totalorder %s3784_s26, %s5220_s14 }
  0xff   :  { %p3789_p2 = scmp.lt.s32.totalorder %s3787_s1, %s3785_s28 }
 0x100   :  { %s279_s23 = sshll.u32 %s5221_s25, 4  ;;  %s280_s23 = int_to_ptr.hbm [resolvable:$true] %s279_s23 }
 0x101   :  { %p3790_p3 = por %p3789_p2, %p3788_p1 }
 0x103   :  { %p3791_p4 = pnand %p3790_p3, %p3786_p0 }
 0x105   :  { %3794 = shalt.err (!%p3791_p4)
}
 0x106   :  { %262 = dma.hbm_to_vmem [thread:$0]  %s258_s3, 16, %s260_s13, [#allocation19]  }
 0x107   :  { %s5222_s19 = sld [smem:[#allocation60_spill]]  ;;  %s3981_s27 = smov [#allocation23]  }
 0x108   :  { %s281_s24 = sshll.u32 %s3981_s27, 4  ;;  %s3807_s29 = sshra.s32 %s280_s23, 4  ;;  %s282_s24 = int_to_ptr.vmem [resolvable:$true] %s281_s24  ;;  %s3808_s29 = int_to_ptr.hbm [resolvable:$true] %s3807_s29 }
 0x109   :  { %s3809_s30 = scalar_lea.hbm %s3808_s29, 1  ;;  %s3811_s12 = scalar_lea.hbm %s5221_s25, 1 }
 0x10a   :  { %p3810_p5 = scmp.ne.s32.totalorder %s3808_s29, %s3809_s30  ;;  %p3812_p6 = scmp.lt.s32.totalorder %s3808_s29, %s5221_s25 }
 0x10b   :  { %p3813_p7 = scmp.lt.s32.totalorder %s3811_s12, %s3809_s30 }
 0x10d   :  { %s300_s2 = sshll.u32 %s5222_s19, 4  ;;  %p3814_p8 = por %p3813_p7, %p3812_p6  ;;  %s4269_s2 = int_to_ptr.hbm [resolvable:$true] %s300_s2 }
 0x10f   :  { %p3815_p9 = pnand %p3814_p8, %p3810_p5 }
 0x111   :  { %3818 = shalt.err (!%p3815_p9)
}
 0x112   :  { %284 = dma.hbm_to_vmem [thread:$0]  %s280_s23, 16, %s282_s24, [#allocation22]  }
 0x113   :  { %s5223_s10 = sld [smem:[#allocation61_spill]]  ;;  %s3982_s11 = smov [#allocation26]  }
 0x114   :  { %s302_s7 = sshll.u32 %s3982_s11, 4  ;;  %s3831_s4 = sshra.s32 %s4269_s2, 4  ;;  %s303_s7 = int_to_ptr.vmem [resolvable:$true] %s302_s7  ;;  %s3832_s4 = int_to_ptr.hbm [resolvable:$true] %s3831_s4 }
 0x115   :  { %s3833_s14 = scalar_lea.hbm %s3832_s4, 32  ;;  %s3835_s20 = scalar_lea.hbm %s5222_s19, 32 }
 0x116   :  { %p3834_p10 = scmp.ne.s32.totalorder %s3832_s4, %s3833_s14  ;;  %p3836_p11 = scmp.lt.s32.totalorder %s3832_s4, %s5222_s19 }
 0x117   :  { %p3837_p12 = scmp.lt.s32.totalorder %s3835_s20, %s3833_s14 }
 0x119   :  { %s325_s0 = sshll.u32 %s5223_s10, 4  ;;  %p3838_p13 = por %p3837_p12, %p3836_p11  ;;  %s326_s0 = int_to_ptr.hbm [resolvable:$true] %s325_s0 }
 0x11b   :  { %p3839_p0 = pnand %p3838_p13, %p3834_p10 }
 0x11d   :  { %3842 = shalt.err (!%p3839_p0)
}
 0x11e   :  { %s5224_s5 = sld [smem:[#allocation63_spill]]  ;;  %s3983_s3 = smov [#allocation29]  }
 0x11f   :  { %308 = dma.hbm_to_vmem [thread:$0]  %s4269_s2, 512, %s303_s7, [#allocation25], %s3968_s21, %s3968_s21, %s3969_s22  }
 0x120   :  { %s327_s15 = sshll.u32 %s3983_s3, 4  ;;  %s3855_s18 = sshra.s32 %s326_s0, 4  ;;  %s328_s15 = int_to_ptr.vmem [resolvable:$true] %s327_s15  ;;  %s3856_s18 = int_to_ptr.hbm [resolvable:$true] %s3855_s18 }
 0x121   :  { %s3857_s25 = scalar_lea.hbm %s3856_s18, 1  ;;  %s3859_s23 = scalar_lea.hbm %s5223_s10, 1 }
 0x122   :  { %p3858_p1 = scmp.ne.s32.totalorder %s3856_s18, %s3857_s25  ;;  %p3860_p2 = scmp.lt.s32.totalorder %s3856_s18, %s5223_s10 }
 0x123   :  { %p3861_p3 = scmp.lt.s32.totalorder %s3859_s23, %s3857_s25 }
 0x124   :  { %s351_s16 = sshll.u32 %s5224_s5, 4  ;;  %s352_s16 = int_to_ptr.hbm [resolvable:$true] %s351_s16 }
 0x125   :  { %p3862_p4 = por %p3861_p3, %p3860_p2 }
 0x127   :  { %p3863_p5 = pnand %p3862_p4, %p3858_p1 }
 0x129   :  { %3866 = shalt.err (!%p3863_p5)
}
 0x12a   :  { %330 = dma.hbm_to_vmem [thread:$0]  %s326_s0, 16, %s328_s15, [#allocation28]  }
 0x12b   :  { %s3984_s17 = smov [#allocation32]   ;;  %s3879_s22 = sshra.s32 %s352_s16, 4  ;;  %s3880_s22 = int_to_ptr.hbm [resolvable:$true] %s3879_s22 }
 0x12c   :  { %s353_s21 = sshll.u32 %s3984_s17, 4  ;;  %s3881_s13 = scalar_lea.hbm %s3880_s22, 1  ;;  %s354_s21 = int_to_ptr.vmem [resolvable:$true] %s353_s21 }
 0x12d   :  { %p3882_p6 = scmp.ne.s32.totalorder %s3880_s22, %s3881_s13  ;;  %s3883_s26 = scalar_lea.hbm %s5224_s5, 1 }
 0x12e   :  { %p3884_p7 = scmp.lt.s32.totalorder %s3880_s22, %s5224_s5  ;;  %p3885_p8 = scmp.lt.s32.totalorder %s3883_s26, %s3881_s13 }
 0x130   :  { %p3886_p9 = por %p3885_p8, %p3884_p7 }
 0x132   :  { %p3887_p10 = pnand %p3886_p9, %p3882_p6 }
 0x134   :  { %3890 = shalt.err (!%p3887_p10)
}
 0x135   :  { %356 = dma.hbm_to_vmem [thread:$0]  %s352_s16, 16, %s354_s21, [#allocation31]  }
 0x136   :  { %3903 = dma.done.wait [#allocation5], 16  }
 0x137   :  { %3904 = vsyncadd [#allocation5], 4294967280 }
 0x138   :  { %3905 = dma.done.wait [#allocation7], 144  }
 0x139   :  { %3906 = vsyncadd [#allocation7], 4294967152 }
 0x13a   :  { %3907 = dma.done.wait [#allocation10], 32  }
 0x13b   :  { %3908 = vsyncadd [#allocation10], 4294967264 }
 0x13c   :  { %3909 = dma.done.wait [#allocation13], 528  }
 0x13d   :  { %3910 = vsyncadd [#allocation13], 4294966768 }
 0x13e   :  { %3911 = dma.done.wait [#allocation16], 1024  }
 0x13f   :  { %3912 = vsyncadd [#allocation16], 4294966272 }
 0x140   :  { %3913 = dma.done.wait [#allocation19], 528  }
 0x141   :  { %3914 = vsyncadd [#allocation19], 4294966768 }
 0x142   :  { %3915 = dma.done.wait [#allocation22], 32  }
 0x143   :  { %3916 = vsyncadd [#allocation22], 4294967264 }
 0x144   :  { %3917 = dma.done.wait [#allocation25], 528  }
 0x145   :  { %3918 = vsyncadd [#allocation25], 4294966768 }
 0x146   :  { %3919 = dma.done.wait [#allocation28], 32  }
 0x147   :  { %3920 = vsyncadd [#allocation28], 4294967264 }
 0x148   :  { %3921 = dma.done.wait [#allocation31], 48  }
 0x149   :  { %3922 = vsyncadd [#allocation31], 4294967248  ;;  %s5225_s28 = sld [smem:[#allocation43_spill]]  ;;  %v3985_v2 = vmov 0   ;;  %v5163_v3 = vmov 0.0   ;;  %v441_v8 = vlaneseq  ;;  %vm672_vm0 = vcmask 130048  }
 0x14a   :  { %s5226_s1 = sld [smem:[#allocation51_spill]]  ;;  %3200 = vset.pattern.permute.xlu0 %v3985_v2  ;;  %3201 = vset.pattern.permute.xlu1 %v3985_v2  ;;  %vm594_vm5 = vcmask 64512   ;;  %vm714_vm6 = vcmask 261120   ;;  %v3203_v32 = vld [vmem:[#allocation4] ss:$0 sm:$0xff]  ;;  %vm767_vm7 = vcmask 523264  }
 0x14b   :  { %700 = vmatpush.msra.mxu2 %v5163_v3  ;;  %3202 = vset.pattern.permute.xlu2 %v3985_v2  ;;  %v4299_v11 = vand.u32 127, %v441_v8  ;;  %s5228_s19 = sld [smem:[#allocation52_spill]]  ;;  %v4362_v36 = vld [vmem:[#allocation6] ss:$0 sm:$0xff]  ;;  %v4381_v61 = vld [vmem:[#allocation2] ss:$0 sm:$0xff] }
 0x14c   :  { %s5229_s27 = sld [smem:[#allocation48_spill]] }
 0x14d   :  { %5227 = vst [vmem:[#allocation66_spill] sm:$0xff] %v4299_v11  ;;  %s5230_s24 = sld [smem:[#allocation49_spill]] }
 0x14e   :  { %s5231_s2 = sld [smem:[#allocation44_spill]] }
 0x14f   :  { %v443_v4 = vld [vmem:[%s5225_s28] sm:$0xff]  ;;  %v445_v5 = vld [vmem:[%s5225_s28 + $0x10] sm:$0xff]  ;;  %v444_v6 = vld [vmem:[%s5225_s28 + $0x8] sm:$0xff]  ;;  %s5236_s29 = sld [smem:[#allocation45_spill]] }
 0x150   :  { %448 = vperm.xlu0 %3200, %v443_v4   ;;  %454 = vperm.xlu1 %3201, %v445_v5   ;;  %v446_v7 = vld [vmem:[%s5225_s28 + $0x18] sm:$0xff]  ;;  %v4295_v10 = vld [vmem:[%s5226_s1 + $0x10] sm:$0xff]  ;;  %v4302_v12 = vld [vmem:[%s5226_s1 + $0x8] sm:$0xff]  ;;  %s5240_s30 = sld [smem:[#allocation53_spill]] }
 0x151   :  { %v4292_v9 = vld [vmem:[%s5226_s1 + $0x18] sm:$0xff]  ;;  %v4331_v21 = vld [vmem:[%s5226_s1] sm:$0xff]  ;;  %s5241_s12 = sld [smem:[#allocation54_spill]] }
 0x152   :  { %739 = vmatpush.msra.mxu3 %v4292_v9  ;;  %v589_v22 = vld [vmem:[%s5228_s19] sm:$0xff]  ;;  %v586_v24 = vld [vmem:[%s5229_s27 + $0x8] sm:$0xff]  ;;  %v587_v25 = vld [vmem:[%s5229_s27 + $0x10] sm:$0xff]  ;;  %s5245_s10 = sld [smem:[#allocation55_spill]] }
 0x153   :  { %v585_v23 = vld [vmem:[%s5229_s27] sm:$0xff]  ;;  %622 = vmatpush.msra.mxu0 %v589_v22  ;;  %3127 = vmatpush.msra.mxu1 %v589_v22  ;;  %v588_v26 = vld [vmem:[%s5229_s27 + $0x18] sm:$0xff]  ;;  %s5255_s0 = sld [smem:[#allocation56_spill]] }
 0x154   :  { %740 = vmatpush.msra.mxu3 %v4295_v10  ;;  %2988 = vmatmul.msk.f32.vlgmr.msra.gmra.mxu0 %vm594_vm5, %v585_v23  ;;  %v636_v22 = vld [vmem:[%s5230_s24] sm:$0xff]  ;;  %s5257_s11 = sld [smem:[#allocation57_spill]] }
 0x155   :  { %2991 = vmatmul.msk.f32.vlgmr.msra.gmra.mxu1 %vm594_vm5, %v588_v26  ;;  %v637_v26 = vld [vmem:[%s5230_s24 + $0x8] sm:$0xff]  ;;  %s5314_s7 = sld [smem:[#allocation46_spill]] }
 0x156   :  { %741 = vmatpush.msra.mxu3 %v4302_v12  ;;  %s5315_s4 = sld [smem:[#allocation47_spill]] }
 0x157   :  { %s5319_s14 = sld [smem:[#allocation62_spill]] }
 0x158   :  { %451 = vperm.xlu0 %3200, %v444_v6   ;;  %457 = vperm.xlu1 %3201, %v446_v7   ;;  %s5320_s20 = sld [smem:[#allocation50_spill]] }
 0x159   :  { %742 = vmatpush.msra.mxu3 %v4331_v21  ;;  %s5321_s5 = sld [smem:[#allocation64_spill]] }
 0x15a   :  { %s5322_s3 = sld [smem:[#allocation65_spill]] }
 0x15c   :  { %2989 = vmatmul.msk.f32.gmra.mxu0 %vm594_vm5, %v586_v24 }
 0x164   :  { %2990 = vmatmul.msk.f32.gmra.mxu0 %vm594_vm5, %v587_v25 }
 0x1c2   :  { %v449_v13 = vpop.permute.xlu0 %448  ;;  %v455_v16 = vpop.permute.xlu1 %454 }
 0x1c3   :  { %vm459_vm1 = vcmp.eq.s32.totalorder %v449_v13, %v4299_v11  ;;  %vm461_vm3 = vcmp.eq.s32.totalorder %v455_v16, %v4299_v11 }
 0x1c4   :  { %v4308_v14 = vsel %vm459_vm1, 1.0, %v5163_v3  ;;  %v4320_v18 = vsel %vm461_vm3, 1.0, %v5163_v3 }
 0x1c5   :  { %2994 = vmatmul.msk.f32.vlgmr.msra.gmra.mxu2 %vm672_vm0, %v4308_v14 }
 0x1ca   :  { %v452_v15 = vpop.permute.xlu0 %451  ;;  %v458_v19 = vpop.permute.xlu1 %457 }
 0x1cb   :  { %vm460_vm2 = vcmp.eq.s32.totalorder %v452_v15, %v4299_v11  ;;  %vm462_vm4 = vcmp.eq.s32.totalorder %v458_v19, %v4299_v11  ;;  %v638_v19 = vld [vmem:[#allocation8] sm:$0xff] }
 0x1cc   :  { %v4314_v17 = vsel %vm460_vm2, 1.0, %v5163_v3  ;;  %v4326_v20 = vsel %vm462_vm4, 1.0, %v5163_v3  ;;  %664 = vmatpush.msrb.mxu1 %v638_v19 }
 0x1cd   :  { %2995 = vmatmul.msk.f32.gmra.mxu2 %vm672_vm0, %v4314_v17  ;;  %2992 = vmatmul.msk.f32.vlgmr.msrb.gmra.mxu1 %vm594_vm5, %v636_v22 }
 0x1d1   :  { %v624_v31 = vpop.f32.mrf.mxu0 }
 0x1d2   :  { %v4359_v33 = vadd.f32 %v3203_v32, %v624_v31  ;;  %v633_v48 = vpop.f32.mrf.mxu1 }
 0x1d3   :  { %v4371_v50 = vadd.f32 %v3203_v32, %v633_v48 }
 0x1d5   :  { %2996 = vmatmul.msk.f32.gmra.mxu2 %vm672_vm0, %v4320_v18  ;;  %2993 = vmatmul.msk.f32.gmra.mxu1 %vm594_vm5, %v637_v26 }
 0x1d9   :  { %v627_v37 = vpop.f32.mrf.mxu0 }
 0x1da   :  { %v4364_v39 = vadd.f32 %v3203_v32, %v627_v37 }
 0x1dd   :  { %2997 = vmatmul.msk.f32.gmra.mxu2 %vm672_vm0, %v4326_v20 }
 0x1e1   :  { %v630_v49 = vpop.f32.mrf.mxu0 }
 0x1e2   :  { %v4373_v51 = vadd.f32 %v3203_v32, %v630_v49 }
 0x248   :  { %v4343_v27 = vpop.f32.mrf.mxu2 }
 0x249   :  { %2998 = vmatmul.msk.f32.vlgmr.msra.gmra.mxu3 %vm714_vm6, %v4343_v27 }
 0x250   :  { %v4347_v28 = vpop.f32.mrf.mxu2 }
 0x251   :  { %2999 = vmatmul.msk.f32.gmra.mxu3 %vm714_vm6, %v4347_v28 }
 0x258   :  { %v4351_v29 = vpop.f32.mrf.mxu2 }
 0x259   :  { %3000 = vmatmul.msk.f32.gmra.mxu3 %vm714_vm6, %v4351_v29 }
 0x260   :  { %v4355_v30 = vpop.f32.mrf.mxu2 }
 0x261   :  { %3001 = vmatmul.msk.f32.gmra.mxu3 %vm714_vm6, %v4355_v30 }
 0x2cc   :  { %v744_v34 = vpop.f32.mrf.mxu3 }
 0x2cd   :  { %v745_v35 = vadd.f32 %v744_v34, %v4359_v33 }
 0x2cf   :  { %v756_v38 = vmax.f32 %v745_v35, 0.0 }
 0x2d1   :  { %v763_v40 = vmul.f32 %v4362_v36, %v756_v38 }
 0x2d3   :  { %v768_v41 = vsel %vm767_vm7, %v763_v40, 0.0 }
 0x2d4   :  { %769 = vadd.xlane.f32.xlu1 %v768_v41  ;;  %v747_v42 = vpop.f32.mrf.mxu3 }
 0x2d5   :  { %v748_v43 = vadd.f32 %v747_v42, %v4364_v39 }
 0x2d7   :  { %v757_v44 = vmax.f32 %v748_v43, 0.0 }
 0x2d9   :  { %v764_v45 = vmul.f32 %v4362_v36, %v757_v44 }
 0x2db   :  { %v771_v46 = vsel %vm767_vm7, %v764_v45, 0.0 }
 0x2dc   :  { %772 = vadd.xlane.f32.xlu0 %v771_v46  ;;  %v750_v47 = vpop.f32.mrf.mxu3 }
 0x2dd   :  { %v751_v54 = vadd.f32 %v750_v47, %v4373_v51 }
 0x2df   :  { %v758_v57 = vmax.f32 %v751_v54, 0.0 }
 0x2e1   :  { %v765_v59 = vmul.f32 %v4362_v36, %v758_v57 }
 0x2e3   :  { %v774_v60 = vsel %vm767_vm7, %v765_v59, 0.0 }
 0x2e4   :  { %v753_v52 = vpop.f32.mrf.mxu3 }
 0x2e5   :  { %v754_v53 = vadd.f32 %v753_v52, %v4371_v50 }
 0x2e7   :  { %v759_v55 = vmax.f32 %v754_v53, 0.0 }
 0x2e9   :  { %v766_v56 = vmul.f32 %v4362_v36, %v759_v55 }
 0x2eb   :  { %v777_v58 = vsel %vm767_vm7, %v766_v56, 0.0 }
 0x2ec   :  { %778 = vadd.xlane.f32.xlu2 %v777_v58 }
 0x2f4   :  { %775 = vadd.xlane.f32.xlu2 %v774_v60 }
 0x347   :  { %v770_v63 = vpop.xlane.xlu1 %769 }
 0x348   :  { %v783_v1 = vadd.f32 %v4381_v61, %v770_v63 }
 0x34a   :  { %v3002_v4 = vmul.f32 -1.442695, %v783_v1 }
 0x34f   :  { %v773_v62 = vpop.xlane.xlu0 %772 }
 0x350   :  { %v784_v0 = vadd.f32 %v4381_v61, %v773_v62  ;;  %v471_v62 = vld [vmem:[%s5231_s2] sm:$0xff] }
 0x351   :  { %476 = vperm.xlu2 %3202, %v471_v62  }
 0x352   :  { %v3003_v2 = vmul.f32 -1.442695, %v784_v0 }
 0x354   :  { %3221 = vpow2.f32 %v3003_v2 }
 0x355   :  { %3223 = vpow2.f32 %v3002_v4 }
 0x35a   :  { %v3222_v5 = vpop.eup %3221 }
 0x35b   :  { %v3224_v13 = vpop.eup %3223  ;;  %v4386_v15 = vadd.f32 1.0, %v3222_v5 }
 0x35c   :  { %v4390_v23 = vadd.f32 1.0, %v3224_v13 }
 0x35d   :  { %vm823_vm15 = vweird.f32 %v4386_v15  ;;  %v829_v63 = vand.u32 2147483648, %v4386_v15  ;;  %v827_v4 = vand.u32 2147483647, %v4386_v15 }
 0x35e   :  { %vm808_vm12 = vweird.f32 %v4390_v23  ;;  %v814_v13 = vand.u32 2147483648, %v4390_v23 }
 0x35f   :  { %v779_v6 = vpop.xlane.xlu2 %778  ;;  %vm828_vm4 = vcmp.eq.f32.partialorder %v827_v4, 8.507059e+37 }
 0x360   :  { %v786_v7 = vadd.f32 %v4381_v61, %v779_v6 }
 0x362   :  { %v3005_v16 = vmul.f32 -1.442695, %v786_v7  ;;  %v812_v7 = vand.u32 2147483647, %v4390_v23 }
 0x364   :  { %3225 = vpow2.f32 %v3005_v16 }
 0x365   :  { %3227 = vrcp.f32 %v4386_v15 }
 0x366   :  { %3229 = vrcp.f32 %v4390_v23 }
 0x367   :  { %v776_v24 = vpop.xlane.xlu2 %775 }
 0x368   :  { %v785_v25 = vadd.f32 %v4381_v61, %v776_v24 }
 0x36a   :  { %v3226_v31 = vpop.eup %3225  ;;  %v3004_v32 = vmul.f32 -1.442695, %v785_v25  ;;  %v830_v25 = vor.u32 1.1754944e-38, %v829_v63 }
 0x36b   :  { %v802_v34 = vadd.f32 1.0, %v3226_v31  ;;  %v4396_v35 = vpop.eup %3227 }
 0x36c   :  { %3231 = vpow2.f32 %v3004_v32  ;;  %v4399_v37 = vpop.eup %3229  ;;  %v819_v38 = vmul.f32 %v4396_v35, %v4386_v15  ;;  %vm824_vm10 = vweird.f32 %v4396_v35  ;;  %v472_v32 = vld [vmem:[%s5231_s2 + $0x8] sm:$0xff] }
 0x36d   :  { %3233 = vrcp.f32 %v802_v34  ;;  %v804_v41 = vmul.f32 %v4399_v37, %v4390_v23  ;;  %v859_v49 = vand.u32 2147483648, %v802_v34  ;;  %v857_v53 = vand.u32 2147483647, %v802_v34  ;;  %vm4415_vm1 = vmor %vm823_vm15, %vm824_vm10  ;;  %479 = vperm.xlu2 %3202, %v472_v32  }
 0x36e   :  { %v820_v43 = vsub.f32 1.0, %v819_v38  ;;  %vm853_vm9 = vweird.f32 %v802_v34  ;;  %vm809_vm14 = vweird.f32 %v4399_v37  ;;  %vm813_vm10 = vcmp.eq.f32.partialorder %v812_v7, 8.507059e+37 }
 0x36f   :  { %v805_v46 = vsub.f32 1.0, %v804_v41  ;;  %v860_v58 = vor.u32 1.1754944e-38, %v859_v49  ;;  %vm858_vm13 = vcmp.eq.f32.partialorder %v857_v53, 8.507059e+37  ;;  %vm4429_vm3 = vmor %vm808_vm12, %vm809_vm14 }
 0x370   :  { %v821_v48 = vmul.f32 %v4396_v35, %v820_v43 }
 0x371   :  { %v806_v54 = vmul.f32 %v4399_v37, %v805_v46  ;;  %v3206_v46 = vld [vmem:[%s5236_s29] ss:$0 sm:$0xff] }
 0x372   :  { %v3232_v40 = vpop.eup %3231  ;;  %v822_v57 = vadd.f32 %v4396_v35, %v821_v48 }
 0x373   :  { %v3234_v42 = vpop.eup %3233  ;;  %v801_v44 = vadd.f32 1.0, %v3232_v40  ;;  %v807_v1 = vadd.f32 %v4399_v37, %v806_v54 }
 0x374   :  { %v849_v45 = vmul.f32 %v3234_v42, %v802_v34  ;;  %vm854_vm8 = vweird.f32 %v3234_v42  ;;  %v826_v19 = vsel %vm4415_vm1, %v4396_v35, %v822_v57  ;;  %v815_v34 = vor.u32 1.1754944e-38, %v814_v13 }
 0x375   :  { %3235 = vrcp.f32 %v801_v44  ;;  %vm855_vm11 = vmor %vm853_vm9, %vm854_vm8  ;;  %v844_v16 = vand.u32 2147483648, %v801_v44  ;;  %v842_v24 = vand.u32 2147483647, %v801_v44  ;;  %vm838_vm8 = vweird.f32 %v801_v44 }
 0x376   :  { %v850_v47 = vsub.f32 1.0, %v849_v45  ;;  %v811_v31 = vsel %vm4429_vm3, %v4399_v37, %v807_v1  ;;  %v831_v38 = vsel %vm828_vm4, %v830_v25, %v826_v19  ;;  %v4441_v45 = vshrl.u32 %v441_v8, 7 }
 0x377   :  { %v845_v35 = vor.u32 1.1754944e-38, %v844_v16  ;;  %v816_v41 = vsel %vm813_vm10, %v815_v34, %v811_v31  ;;  %v4488_v34 = vld [vmem:[%s5240_s30 + $0x18] sm:$0xff] }
 0x378   :  { %v851_v52 = vmul.f32 %v3234_v42, %v850_v47  ;;  %v863_v37 = vmul.f32 1.442695, %v816_v41  ;;  %5237 = vst [vmem:[#allocation67_spill] sm:$0xff] %v4441_v45  ;;  %v473_v47 = vld [vmem:[%s5231_s2 + $0x10] sm:$0xff]  ;;  %vm504_vm12 = vcmp.eq.s32.totalorder %v3206_v46, %v4441_v45  ;;  %v501_v54 = vadd.s32 8, %v4441_v45  ;;  %1014 = vmatpush.msrb.mxu2 %v4488_v34  ;;  %v4646_v45 = vld [vmem:[#allocation17 + $0x8] sm:$0xff] }
 0x379   :  { %482 = vperm.xlu2 %3202, %v473_v47   ;;  %v4525_v47 = vld [vmem:[%s5241_s12 + $0x20] sm:$0xff] }
 0x37a   :  { %v852_v55 = vadd.f32 %v3234_v42, %v851_v52  ;;  %v4447_v52 = vsel %vm504_vm12, 1.0, %v5163_v3  ;;  %5243 = vst [vmem:[#allocation71_spill] sm:$0xff] %v4525_v47 }
 0x37b   :  { %v3236_v56 = vpop.eup %3235 }
 0x37c   :  { %v856_v59 = vsel %vm855_vm11, %v3234_v42, %v852_v55  ;;  %v834_v60 = vmul.f32 %v3236_v56, %v801_v44  ;;  %vm839_vm2 = vweird.f32 %v3236_v56  ;;  %vm843_vm11 = vcmp.eq.f32.partialorder %v842_v24, 8.507059e+37  ;;  %v474_v55 = vld [vmem:[%s5231_s2 + $0x18] sm:$0xff] }
 0x37d   :  { %v861_v0 = vsel %vm858_vm13, %v860_v58, %v856_v59  ;;  %vm840_vm9 = vmor %vm838_vm8, %vm839_vm2  ;;  %v865_v44 = vmul.f32 1.442695, %v831_v38  ;;  %vm505_vm13 = vcmp.eq.s32.totalorder %v3206_v46, %v501_v54  ;;  %v4495_v38 = vld [vmem:[%s5240_s30 + $0x8] sm:$0xff]  ;;  %v4539_v54 = vld [vmem:[%s5241_s12 + $0x10] sm:$0xff] }
 0x37e   :  { %v869_v5 = vmul.f32 1.442695, %v861_v0  ;;  %v835_v6 = vsub.f32 1.0, %v834_v60  ;;  %v4454_v8 = vsel %vm505_vm13, 1.0, %v5163_v3  ;;  %5246 = vst [vmem:[#allocation73_spill] sm:$0xff] %v4539_v54 }
 0x380   :  { %3237 = vpow2.f32 %v869_v5  ;;  %v836_v22 = vmul.f32 %v3236_v56, %v835_v6 }
 0x381   :  { %485 = vperm.xlu2 %3202, %v474_v55   ;;  %v4544_v55 = vld [vmem:[%s5241_s12 + $0x8] sm:$0xff] }
 0x382   :  { %v837_v26 = vadd.f32 %v3236_v56, %v836_v22  ;;  %5247 = vst [vmem:[#allocation74_spill] sm:$0xff] %v4544_v55 }
 0x384   :  { %v841_v23 = vsel %vm840_vm9, %v3236_v56, %v837_v26  ;;  %v4458_v56 = vpop.f32.mrf.mxu1 }
 0x385   :  { %v846_v40 = vsel %vm843_vm11, %v845_v35, %v841_v23  ;;  %v4491_v35 = vld [vmem:[%s5240_s30 + $0x10] sm:$0xff] }
 0x386   :  { %v4437_v42 = vpop.eup %3237  ;;  %v867_v43 = vmul.f32 1.442695, %v846_v40  ;;  %1015 = vmatpush.msrb.mxu2 %v4491_v35 }
 0x387   :  { %889 = vmatpush.msra.mxu1 %v4437_v42 }
 0x388   :  { %3239 = vpow2.f32 %v867_v43  ;;  %1016 = vmatpush.msrb.mxu2 %v4495_v38 }
 0x389   :  { %3241 = vpow2.f32 %v865_v44 }
 0x38a   :  { %3243 = vpow2.f32 %v863_v37 }
 0x38c   :  { %v4460_v57 = vpop.f32.mrf.mxu1 }
 0x38e   :  { %v3240_v48 = vpop.eup %3239 }
 0x38f   :  { %890 = vmatpush.msra.mxu1 %v3240_v48  ;;  %v3242_v49 = vpop.eup %3241 }
 0x390   :  { %v3244_v53 = vpop.eup %3243 }
 0x391   :  { %891 = vmatpush.msra.mxu1 %v3242_v49 }
 0x393   :  { %892 = vmatpush.msra.mxu1 %v3244_v53 }
 0x394   :  { %3006 = vmatmul.msk.f32.vlgmr.msra.gmra.mxu1 %vm714_vm6, %v4447_v52 }
 0x39c   :  { %3007 = vmatmul.msk.f32.gmra.mxu1 %vm714_vm6, %v4454_v8 }
 0x3ab   :  { %v477_v58 = vpop.permute.xlu2 %476 }
 0x3ac   :  { %vm487_vm14 = vcmp.eq.s32.totalorder %v477_v58, %v4299_v11  ;;  %v4548_v58 = vld [vmem:[%s5241_s12] sm:$0xff] }
 0x3ad   :  { %v4464_v62 = vsel %vm487_vm14, 1.0, %v5163_v3  ;;  %5248 = vst [vmem:[#allocation75_spill] sm:$0xff] %v4548_v58 }
 0x3c7   :  { %v480_v63 = vpop.permute.xlu2 %479 }
 0x3c8   :  { %vm488_vm15 = vcmp.eq.s32.totalorder %v480_v63, %v4299_v11  ;;  %v4561_v63 = vld [vmem:[%s5245_s10 + $0x28] sm:$0xff] }
 0x3c9   :  { %v4470_v0 = vsel %vm488_vm15, 1.0, %v5163_v3  ;;  %5251 = vst [vmem:[#allocation78_spill] sm:$0xff] %v4561_v63 }
 0x3d3   :  { %v483_v1 = vpop.permute.xlu2 %482 }
 0x3d4   :  { %vm489_vm1 = vcmp.eq.s32.totalorder %v483_v1, %v4299_v11  ;;  %v4565_v1 = vld [vmem:[%s5245_s10 + $0x20] sm:$0xff] }
 0x3d5   :  { %v4476_v2 = vsel %vm489_vm1, 1.0, %v5163_v3  ;;  %5252 = vst [vmem:[#allocation79_spill] sm:$0xff] %v4565_v1 }
 0x3d6   :  { %5238 = vst [vmem:[#allocation68_spill] sm:$0xff] %v4476_v2 }
 0x3db   :  { %v486_v4 = vpop.permute.xlu2 %485 }
 0x3dc   :  { %vm490_vm2 = vcmp.eq.s32.totalorder %v486_v4, %v4299_v11  ;;  %v4569_v4 = vld [vmem:[%s5245_s10 + $0x18] sm:$0xff]  ;;  %v4644_v11 = vld [vmem:[%s5255_s0 + $0x8] sm:$0xff] }
 0x3dd   :  { %v4482_v5 = vsel %vm490_vm2, 1.0, %v5163_v3  ;;  %5253 = vst [vmem:[#allocation80_spill] sm:$0xff] %v4569_v4 }
 0x3de   :  { %5239 = vst [vmem:[#allocation69_spill] sm:$0xff] %v4482_v5 }
 0x411   :  { %v894_v59 = vpop.f32.mrf.mxu1 }
 0x419   :  { %v897_v60 = vpop.f32.mrf.mxu1 }
 0x41a   :  { %926 = vmatpush.msrb.mxu0 %v897_v60  ;;  %v4557_v60 = vld [vmem:[%s5245_s10 + $0x30] sm:$0xff] }
 0x41b   :  { %5250 = vst [vmem:[#allocation77_spill] sm:$0xff] %v4557_v60 }
 0x41c   :  { %927 = vmatpush.msrb.mxu0 %v894_v59  ;;  %v4554_v59 = vld [vmem:[%s5245_s10 + $0x38] sm:$0xff] }
 0x41d   :  { %3008 = vmatmul.msk.f32.vlgmr.msrb.gmra.mxu0 %vm672_vm0, %v4464_v62  ;;  %5249 = vst [vmem:[#allocation76_spill] sm:$0xff] %v4554_v59 }
 0x425   :  { %3009 = vmatmul.msk.f32.gmra.mxu0 %vm672_vm0, %v4470_v0 }
 0x42d   :  { %3010 = vmatmul.msk.f32.gmra.mxu0 %vm672_vm0, %v4476_v2 }
 0x435   :  { %3011 = vmatmul.msk.f32.gmra.mxu0 %vm672_vm0, %v4482_v5 }
 0x49a   :  { %v929_v6 = vpop.f32.mrf.mxu0 }
 0x4a2   :  { %v932_v7 = vpop.f32.mrf.mxu0 }
 0x4a3   :  { %3245 = vrcp.f32 %v932_v7 }
 0x4a4   :  { %3247 = vrcp.f32 %v929_v6  ;;  %v3207_v6 = vld [vmem:[#allocation9] ss:$0 sm:$0xff] }
 0x4a5   :  { %v4574_v7 = vadd.f32 %v3207_v6, %v4458_v56  ;;  %v4584_v56 = vld [vmem:[%s5245_s10 + $0x10] sm:$0xff] }
 0x4a6   :  { %5258 = vst [vmem:[#allocation83_spill] sm:$0xff] %v4584_v56 }
 0x4a7   :  { %5254 = vst [vmem:[#allocation81_spill] sm:$0xff] %v4574_v7 }
 0x4a9   :  { %v3246_v13 = vpop.eup %3245 }
 0x4aa   :  { %v935_v16 = vpop.f32.mrf.mxu0  ;;  %v946_v19 = vmul.f32 %v3246_v13, %v3242_v49  ;;  %v3248_v22 = vpop.eup %3247 }
 0x4ab   :  { %3249 = vrcp.f32 %v935_v16  ;;  %v945_v25 = vmul.f32 %v3248_v22, %v3244_v53  ;;  %v4579_v22 = vadd.f32 %v3207_v6, %v4460_v57  ;;  %v4595_v57 = vld [vmem:[#allocation15 + $0x18] sm:$0xff] }
 0x4ac   :  { %956 = vperm.xlu2 %3202, %v946_v19   ;;  %v4636_v6 = vld [vmem:[#allocation11] ss:$0 sm:$0xff] }
 0x4ad   :  { %5256 = vst [vmem:[#allocation82_spill] sm:$0xff] %v4579_v22 }
 0x4ae   :  { %5263 = vst [vmem:[#allocation88_spill] sm:$0xff] %v4636_v6 }
 0x4b1   :  { %v3250_v24 = vpop.eup %3249 }
 0x4b2   :  { %v938_v15 = vpop.f32.mrf.mxu0  ;;  %v947_v26 = vmul.f32 %v3250_v24, %v3240_v48  ;;  %v4530_v48 = vld [vmem:[%s5241_s12 + $0x18] sm:$0xff] }
 0x4b3   :  { %3251 = vrcp.f32 %v938_v15  ;;  %5244 = vst [vmem:[#allocation72_spill] sm:$0xff] %v4530_v48 }
 0x4b4   :  { %951 = vperm.xlu2 %3202, %v945_v25   ;;  %961 = vperm.xlu1 %3201, %v947_v26   ;;  %v4588_v26 = vld [vmem:[%s5245_s10 + $0x8] sm:$0xff] }
 0x4b5   :  { %5259 = vst [vmem:[#allocation84_spill] sm:$0xff] %v4588_v26 }
 0x4b9   :  { %v3252_v31 = vpop.eup %3251 }
 0x4ba   :  { %v948_v32 = vmul.f32 %v3252_v31, %v4437_v42  ;;  %v4592_v31 = vld [vmem:[%s5245_s10] sm:$0xff] }
 0x4bb   :  { %5260 = vst [vmem:[#allocation85_spill] sm:$0xff] %v4592_v31 }
 0x4bc   :  { %966 = vperm.xlu0 %3200, %v948_v32   ;;  %v4597_v32 = vld [vmem:[#allocation15 + $0x10] sm:$0xff] }
 0x506   :  { %v957_v23 = vpop.permute.xlu2 %956 }
 0x507   :  { %v970_v37 = vmul.f32 %v957_v23, %v4347_v28  ;;  %v4515_v28 = vld [vmem:[%s5241_s12 + $0x30] sm:$0xff]  ;;  %v4601_v23 = vld [vmem:[%s5255_s0 + $0x18] sm:$0xff] }
 0x50e   :  { %v952_v44 = vpop.permute.xlu2 %951 }
 0x50f   :  { %v969_v46 = vmul.f32 %v952_v44, %v4343_v27  ;;  %v4520_v27 = vld [vmem:[%s5241_s12 + $0x28] sm:$0xff] }
 0x510   :  { %5242 = vst [vmem:[#allocation70_spill] sm:$0xff] %v4520_v27  ;;  %v4617_v44 = vld [vmem:[#allocation17 + $0x10] sm:$0xff] }
 0x526   :  { %v962_v40 = vpop.permute.xlu1 %961 }
 0x527   :  { %v971_v43 = vmul.f32 %v962_v40, %v4351_v29  ;;  %v4512_v29 = vld [vmem:[%s5241_s12 + $0x38] sm:$0xff]  ;;  %v4603_v40 = vld [vmem:[#allocation17 + $0x18] sm:$0xff] }
 0x528   :  { %3128 = vmatpush.msrb.mxu3 %v4512_v29  ;;  %1203 = vmatpush.msra.mxu0 %v4603_v40 }
 0x52a   :  { %3129 = vmatpush.msrb.mxu3 %v4515_v28  ;;  %1204 = vmatpush.msra.mxu0 %v4617_v44 }
 0x52c   :  { %3130 = vmatpush.msrb.mxu3 %v4520_v27  ;;  %1205 = vmatpush.msra.mxu0 %v4646_v45 }
 0x52e   :  { %v967_v41 = vpop.permute.xlu0 %966  ;;  %3131 = vmatpush.msrb.mxu3 %v4525_v47 }
 0x52f   :  { %v972_v42 = vmul.f32 %v967_v41, %v4355_v30  ;;  %v4508_v30 = vld [vmem:[%s5240_s30] sm:$0xff] }
 0x530   :  { %1017 = vmatpush.msrb.mxu2 %v4508_v30  ;;  %3132 = vmatpush.msrb.mxu3 %v4530_v48  ;;  %v4605_v41 = vld [vmem:[#allocation15 + $0x8] sm:$0xff] }
 0x531   :  { %985 = vmatpush.msrb.mxu1 %v972_v42  ;;  %v4610_v42 = vld [vmem:[%s5257_s11 + $0x18] sm:$0xff] }
 0x532   :  { %1044 = vmatpush.msra.mxu2 %v4512_v29  ;;  %3133 = vmatpush.msrb.mxu3 %v4539_v54  ;;  %5261 = vst [vmem:[#allocation86_spill] sm:$0xff] %v4610_v42 }
 0x533   :  { %986 = vmatpush.msrb.mxu1 %v971_v43  ;;  %v4613_v43 = vld [vmem:[%s5255_s0 + $0x10] sm:$0xff] }
 0x534   :  { %1045 = vmatpush.msra.mxu2 %v4515_v28  ;;  %3134 = vmatpush.msrb.mxu3 %v4544_v55 }
 0x535   :  { %987 = vmatpush.msrb.mxu1 %v970_v37  ;;  %v4620_v37 = vld [vmem:[%s5257_s11 + $0x10] sm:$0xff] }
 0x536   :  { %1046 = vmatpush.msra.mxu2 %v4520_v27  ;;  %3135 = vmatpush.msrb.mxu3 %v4548_v58  ;;  %5262 = vst [vmem:[#allocation87_spill] sm:$0xff] %v4620_v37 }
 0x537   :  { %988 = vmatpush.msrb.mxu1 %v969_v46  ;;  %v4622_v46 = vld [vmem:[#allocation15] sm:$0xff] }
 0x538   :  { %3012 = vmatmul.msk.f32.vlgmr.msrb.gmra.mxu1 %vm714_vm6, %v4447_v52  ;;  %1047 = vmatpush.msra.mxu2 %v4525_v47 }
 0x539   :  { %1078 = vmatpush.msra.mxu1 %v4554_v59  ;;  %1137 = vmatpush.msra.mxu3 %v4601_v23 }
 0x53a   :  { %1048 = vmatpush.msra.mxu2 %v4530_v48 }
 0x53b   :  { %1079 = vmatpush.msra.mxu1 %v4557_v60  ;;  %1138 = vmatpush.msra.mxu3 %v4613_v43 }
 0x53c   :  { %1049 = vmatpush.msra.mxu2 %v4539_v54 }
 0x53d   :  { %1080 = vmatpush.msra.mxu1 %v4561_v63  ;;  %1139 = vmatpush.msra.mxu3 %v4644_v11 }
 0x53e   :  { %1050 = vmatpush.msra.mxu2 %v4544_v55 }
 0x53f   :  { %1081 = vmatpush.msra.mxu1 %v4565_v1  ;;  %v4734_v1 = vld [vmem:[#allocation23] ss:$0 sm:$0xff] }
 0x540   :  { %3013 = vmatmul.msk.f32.gmra.mxu1 %vm714_vm6, %v4454_v8  ;;  %1051 = vmatpush.msra.mxu2 %v4548_v58 }
 0x541   :  { %1082 = vmatpush.msra.mxu1 %v4569_v4 }
 0x543   :  { %1083 = vmatpush.msra.mxu1 %v4584_v56 }
 0x545   :  { %1084 = vmatpush.msra.mxu1 %v4588_v26 }
 0x547   :  { %1085 = vmatpush.msra.mxu1 %v4592_v31 }
 0x549   :  { %1226 = vmatpush.msrb.mxu1 %v4610_v42 }
 0x54b   :  { %1227 = vmatpush.msrb.mxu1 %v4620_v37 }
 0x5b5   :  { %v990_v49 = vpop.f32.mrf.mxu1 }
 0x5b6   :  { %3014 = vmatmul.msk.f32.vlgmr.msrb.gmra.mxu2 %vm714_vm6, %v990_v49  ;;  %v4628_v49 = vld [vmem:[#allocation14 + $0x18] sm:$0xff] }
 0x5b7   :  { %1108 = vmatpush.msrb.mxu2 %v4595_v57 }
 0x5b9   :  { %1109 = vmatpush.msrb.mxu2 %v4597_v32 }
 0x5bb   :  { %1110 = vmatpush.msrb.mxu2 %v4605_v41 }
 0x5bd   :  { %v993_v53 = vpop.f32.mrf.mxu1  ;;  %1111 = vmatpush.msrb.mxu2 %v4622_v46 }
 0x5be   :  { %3015 = vmatmul.msk.f32.gmra.mxu2 %vm714_vm6, %v993_v53  ;;  %v4632_v53 = vld [vmem:[#allocation14 + $0x10] sm:$0xff] }
 0x639   :  { %v1019_v13 = vpop.f32.mrf.mxu2 }
 0x63a   :  { %v1020_v16 = vadd.f32 %v1019_v13, %v4574_v7  ;;  %v4682_v7 = vld [vmem:[#allocation18 + $0x8] sm:$0xff] }
 0x63b   :  { %5268 = vst [vmem:[#allocation93_spill] sm:$0xff] %v4682_v7 }
 0x63c   :  { %v1025_v19 = vmax.f32 %v1020_v16, 0.0 }
 0x63e   :  { %3016 = vmatmul.msk.f32.vlgmr.msra.gmra.mxu2 %vm767_vm7, %v1025_v19 }
 0x63f   :  { %1295 = vmatpush.msra.mxu2 %v4628_v49 }
 0x641   :  { %v1022_v24 = vpop.f32.mrf.mxu2  ;;  %1296 = vmatpush.msra.mxu2 %v4632_v53 }
 0x642   :  { %v1023_v15 = vadd.f32 %v1022_v24, %v4579_v22  ;;  %v4649_v22 = vld [vmem:[%s5257_s11 + $0x8] sm:$0xff] }
 0x643   :  { %5264 = vst [vmem:[#allocation89_spill] sm:$0xff] %v4649_v22  ;;  %1228 = vmatpush.msrb.mxu1 %v4649_v22 }
 0x644   :  { %v1026_v25 = vmax.f32 %v1023_v15, 0.0 }
 0x646   :  { %3017 = vmatmul.msk.f32.vlgmr.msrb.gmra.mxu3 %vm767_vm7, %v1026_v25  ;;  %1112 = vmatmul.f32.vlgmr.msrb.gmra.mxu2 %v5163_v3 }
 0x64e   :  { %1115 = vmatmul.f32.gmra.mxu2 %v5163_v3 }
 0x6c1   :  { %v1053_v13 = vpop.f32.mrf.mxu2 }
 0x6c2   :  { %v1054_v16 = vadd.f32 %v4636_v6, %v1053_v13  ;;  %v4653_v13 = vld [vmem:[#allocation14 + $0x8] sm:$0xff] }
 0x6c3   :  { %1297 = vmatpush.msra.mxu2 %v4653_v13 }
 0x6c4   :  { %v1059_v19 = vmax.f32 %v1054_v16, 0.0  ;;  %v4656_v16 = vld [vmem:[%s5255_s0] sm:$0xff] }
 0x6c5   :  { %1140 = vmatpush.msra.mxu3 %v4656_v16 }
 0x6c6   :  { %3018 = vmatmul.msk.f32.vlgmr.msra.gmra.mxu1 %vm767_vm7, %v1059_v19  ;;  %v4658_v19 = vld [vmem:[#allocation17] sm:$0xff] }
 0x6c7   :  { %1206 = vmatpush.msra.mxu0 %v4658_v19 }
 0x6c8   :  { %1207 = vmatmul.f32.vlgmr.msra.gmra.mxu0 %v5163_v3 }
 0x6c9   :  { %v1056_v24 = vpop.f32.mrf.mxu3 }
 0x6ca   :  { %v1057_v15 = vadd.f32 %v4636_v6, %v1056_v24  ;;  %v4663_v24 = vld [vmem:[%s5257_s11] sm:$0xff] }
 0x6cb   :  { %5265 = vst [vmem:[#allocation90_spill] sm:$0xff] %v4663_v24  ;;  %1229 = vmatpush.msrb.mxu1 %v4663_v24  ;;  %v4678_v6 = vld [vmem:[#allocation18 + $0x10] sm:$0xff]  ;;  %v4685_v24 = vld [vmem:[#allocation18] sm:$0xff] }
 0x6cc   :  { %v1060_v25 = vmax.f32 %v1057_v15, 0.0  ;;  %v4665_v15 = vld [vmem:[#allocation14] sm:$0xff]  ;;  %5267 = vst [vmem:[#allocation92_spill] sm:$0xff] %v4678_v6 }
 0x6cd   :  { %1298 = vmatpush.msra.mxu2 %v4665_v15  ;;  %1399 = vmatpush.msra.mxu1 %v4292_v9  ;;  %5269 = vst [vmem:[#allocation94_spill] sm:$0xff] %v4685_v24  ;;  %v4689_v9 = vld [vmem:[#allocation12] ss:$0 sm:$0xff] }
 0x6ce   :  { %3019 = vmatmul.msk.f32.gmra.mxu1 %vm767_vm7, %v1060_v25  ;;  %v4676_v25 = vld [vmem:[#allocation18 + $0x18] sm:$0xff]  ;;  %5270 = vst [vmem:[#allocation95_spill] sm:$0xff] %v4689_v9 }
 0x6cf   :  { %1400 = vmatpush.msra.mxu1 %v4295_v10  ;;  %5266 = vst [vmem:[#allocation91_spill] sm:$0xff] %v4676_v25  ;;  %1321 = vmatpush.msrb.mxu3 %v4676_v25 }
 0x6d0   :  { %1210 = vmatmul.f32.gmra.mxu0 %v5163_v3 }
 0x6d1   :  { %1401 = vmatpush.msra.mxu1 %v4302_v12  ;;  %1322 = vmatpush.msrb.mxu3 %v4678_v6 }
 0x6d3   :  { %1402 = vmatpush.msra.mxu1 %v4331_v21  ;;  %1323 = vmatpush.msrb.mxu3 %v4682_v7 }
 0x6d5   :  { %1324 = vmatpush.msrb.mxu3 %v4685_v24 }
 0x743   :  { %v1087_v10 = vpop.f32.mrf.mxu1 }
 0x744   :  { %v1088_v12 = vadd.f32 %v4689_v9, %v1087_v10  ;;  %v4709_v10 = vld [vmem:[#allocation21] ss:$0 sm:$0xff] }
 0x745   :  { %5272 = vst [vmem:[#allocation96_spill] sm:$0xff] %v4709_v10 }
 0x746   :  { %3020 = vmatmul.msk.f32.vlgmr.msra.gmra.mxu3 %vm714_vm6, %v1088_v12  ;;  %3024 = vmatmul.msk.f32.vlgmr.msrb.gmra.mxu1 %vm714_vm6, %v1088_v12 }
 0x747   :  { %3028 = vmatmul.msk.f32.vlgmr.msra.gmra.mxu2 %vm714_vm6, %v1088_v12  ;;  %1676 = vmatpush.msrb.mxu1 %v4512_v29  ;;  %v5271_v29 = vmov 0.0  }
 0x749   :  { %1677 = vmatpush.msrb.mxu1 %v4515_v28  ;;  %v1208_v28 = vpop.f32.mrf.mxu0 }
 0x74b   :  { %v1090_v21 = vpop.f32.mrf.mxu1  ;;  %1678 = vmatpush.msrb.mxu1 %v4520_v27  ;;  %v4712_v27 = vld [vmem:[#allocation20] ss:$0 sm:$0xff] }
 0x74c   :  { %v1091_v3 = vadd.f32 %v4689_v9, %v1090_v21  ;;  %5273 = vst [vmem:[#allocation97_spill] sm:$0xff] %v4712_v27 }
 0x74d   :  { %1679 = vmatpush.msrb.mxu1 %v4525_v47 }
 0x74e   :  { %3021 = vmatmul.msk.f32.gmra.mxu3 %vm714_vm6, %v1091_v3  ;;  %3025 = vmatmul.msk.f32.gmra.mxu1 %vm714_vm6, %v1091_v3 }
 0x74f   :  { %3029 = vmatmul.msk.f32.gmra.mxu2 %vm714_vm6, %v1091_v3  ;;  %1680 = vmatpush.msrb.mxu1 %v4530_v48  ;;  %v1113_v3 = vpop.f32.mrf.mxu2 }
 0x751   :  { %1681 = vmatpush.msrb.mxu1 %v4539_v54  ;;  %v1211_v54 = vpop.f32.mrf.mxu0 }
 0x753   :  { %1682 = vmatpush.msrb.mxu1 %v4544_v55 }
 0x755   :  { %1683 = vmatpush.msrb.mxu1 %v4548_v58 }
 0x756   :  { %1325 = vmatmul.f32.vlgmr.msrb.gmra.mxu3 %v5271_v29 }
 0x75e   :  { %1328 = vmatmul.f32.gmra.mxu3 %v5271_v29 }
 0x7c3   :  { %v1231_v12 = vpop.f32.mrf.mxu1 }
 0x7c4   :  { %v1232_v21 = vadd.f32 %v1231_v12, %v1208_v28  ;;  %v1116_v28 = vpop.f32.mrf.mxu2 }
 0x7c6   :  { %v1240_v47 = vadd.f32 %v4709_v10, %v1232_v21 }
 0x7c8   :  { %v3026_v9 = vmul.f32 -1.442695, %v1240_v47 }
 0x7c9   :  { %v1142_v48 = vpop.f32.mrf.mxu3 }
 0x7ca   :  { %v1143_v55 = vadd.f32 %v1142_v48, %v1113_v3  ;;  %3253 = vpow2.f32 %v3026_v9 }
 0x7cb   :  { %v1234_v24 = vpop.f32.mrf.mxu1 }
 0x7cc   :  { %v1151_v58 = vadd.f32 %v4712_v27, %v1143_v55  ;;  %v1235_v7 = vadd.f32 %v1234_v24, %v1211_v54 }
 0x7ce   :  { %v3022_v29 = vmul.f32 -1.442695, %v1151_v58  ;;  %v1241_v6 = vadd.f32 %v4709_v10, %v1235_v7 }
 0x7d0   :  { %3255 = vpow2.f32 %v3022_v29  ;;  %v3027_v25 = vmul.f32 -1.442695, %v1241_v6  ;;  %v3254_v22 = vpop.eup %3253 }
 0x7d1   :  { %v1145_v12 = vpop.f32.mrf.mxu3  ;;  %v4717_v48 = vadd.f32 1.0, %v3254_v22 }
 0x7d2   :  { %3257 = vpow2.f32 %v3027_v25  ;;  %v1146_v21 = vadd.f32 %v1145_v12, %v1116_v28  ;;  %v4727_v12 = vld [vmem:[#allocation24] ss:$0 sm:$0xff] }
 0x7d3   :  { %vm1255_vm12 = vweird.f32 %v4717_v48 }
 0x7d4   :  { %v1152_v37 = vadd.f32 %v4712_v27, %v1146_v21 }
 0x7d6   :  { %v3256_v42 = vpop.eup %3255  ;;  %v3023_v47 = vmul.f32 -1.442695, %v1152_v37 }
 0x7d7   :  { %v1159_v3 = vadd.f32 1.0, %v3256_v42 }
 0x7d8   :  { %v3258_v55 = vpop.eup %3257  ;;  %3259 = vpow2.f32 %v3023_v47  ;;  %v1300_v47 = vpop.f32.mrf.mxu2 }
 0x7d9   :  { %3261 = vrcp.f32 %v1159_v3  ;;  %v4719_v54 = vadd.f32 1.0, %v3258_v55  ;;  %v1326_v37 = vpop.f32.mrf.mxu3  ;;  %v1172_v9 = vand.u32 2147483648, %v1159_v3  ;;  %v1170_v28 = vand.u32 2147483647, %v1159_v3 }
 0x7da   :  { %3263 = vrcp.f32 %v4717_v48  ;;  %vm1166_vm4 = vweird.f32 %v1159_v3 }
 0x7db   :  { %3265 = vrcp.f32 %v4719_v54  ;;  %v1173_v27 = vor.u32 1.1754944e-38, %v1172_v9  ;;  %vm1171_vm9 = vcmp.eq.f32.partialorder %v1170_v28, 8.507059e+37  ;;  %v1301_v9 = vadd.f32 %v4734_v1, %v1300_v47 }
 0x7de   :  { %v3260_v58 = vpop.eup %3259 }
 0x7df   :  { %v3262_v7 = vpop.eup %3261  ;;  %v1160_v6 = vadd.f32 1.0, %v3260_v58 }
 0x7e0   :  { %v1162_v24 = vmul.f32 %v3262_v7, %v1159_v3  ;;  %v4723_v25 = vpop.eup %3263  ;;  %vm1167_vm3 = vweird.f32 %v3262_v7 }
 0x7e1   :  { %3267 = vrcp.f32 %v1160_v6  ;;  %v4725_v22 = vpop.eup %3265  ;;  %v1251_v21 = vmul.f32 %v4723_v25, %v4717_v48  ;;  %vm1168_vm8 = vmor %vm1166_vm4, %vm1167_vm3  ;;  %v1187_v60 = vand.u32 2147483648, %v1160_v6  ;;  %v1329_v59 = vpop.f32.mrf.mxu3  ;;  %v1185_v3 = vand.u32 2147483647, %v1160_v6 }
 0x7e2   :  { %v1163_v42 = vsub.f32 1.0, %v1162_v24  ;;  %v1266_v55 = vmul.f32 %v4725_v22, %v4719_v54  ;;  %v1327_v24 = vadd.f32 %v4727_v12, %v1326_v37  ;;  %vm1181_vm11 = vweird.f32 %v1160_v6 }
 0x7e3   :  { %v1252_v26 = vsub.f32 1.0, %v1251_v21  ;;  %v1330_v28 = vadd.f32 %v4727_v12, %v1329_v59  ;;  %vm1256_vm14 = vweird.f32 %v4723_v25  ;;  %vm1186_vm15 = vcmp.eq.f32.partialorder %v1185_v3, 8.507059e+37 }
 0x7e4   :  { %v1164_v29 = vmul.f32 %v3262_v7, %v1163_v42  ;;  %v1267_v56 = vsub.f32 1.0, %v1266_v55  ;;  %vm1271_vm1 = vweird.f32 %v4725_v22  ;;  %v1276_v59 = vand.u32 2147483648, %v4719_v54  ;;  %vm1257_vm2 = vmor %vm1255_vm12, %vm1256_vm14 }
 0x7e5   :  { %vm1270_vm3 = vweird.f32 %v4719_v54 }
 0x7e6   :  { %v1165_v58 = vadd.f32 %v3262_v7, %v1164_v29  ;;  %v1253_v29 = vmul.f32 %v4723_v25, %v1252_v26  ;;  %vm1272_vm4 = vmor %vm1270_vm3, %vm1271_vm1 }
 0x7e7   :  { %v3268_v10 = vpop.eup %3267 }
 0x7e8   :  { %v1169_v31 = vsel %vm1168_vm8, %v3262_v7, %v1165_v58  ;;  %v1177_v42 = vmul.f32 %v3268_v10, %v1160_v6  ;;  %vm1182_vm10 = vweird.f32 %v3268_v10  ;;  %v1268_v7 = vmul.f32 %v4725_v22, %v1267_v56 }
 0x7e9   :  { %v1174_v4 = vsel %vm1171_vm9, %v1173_v27, %v1169_v31  ;;  %v1303_v27 = vpop.f32.mrf.mxu2  ;;  %vm1183_vm13 = vmor %vm1181_vm11, %vm1182_vm10  ;;  %v1188_v31 = vor.u32 1.1754944e-38, %v1187_v60  ;;  %v1254_v56 = vadd.f32 %v4723_v25, %v1253_v29  ;;  %v1261_v6 = vand.u32 2147483648, %v4717_v48 }
 0x7ea   :  { %v1178_v63 = vsub.f32 1.0, %v1177_v42  ;;  %v1332_v5 = vmul.f32 %v1327_v24, %v1174_v4  ;;  %v1304_v21 = vadd.f32 %v4734_v1, %v1303_v27  ;;  %v1274_v60 = vand.u32 2147483647, %v4719_v54 }
 0x7eb   :  { %v1258_v55 = vsel %vm1257_vm2, %v4723_v25, %v1254_v56  ;;  %v1262_v24 = vor.u32 1.1754944e-38, %v1261_v6  ;;  %v1277_v42 = vor.u32 1.1754944e-38, %v1276_v59 }
 0x7ec   :  { %v1179_v2 = vmul.f32 %v3268_v10, %v1178_v63  ;;  %v1334_v63 = vadd.f32 %v1332_v5, %v1301_v9  ;;  %v1259_v5 = vand.u32 2147483647, %v4717_v48  ;;  %vm1275_vm9 = vcmp.eq.f32.partialorder %v1274_v60, 8.507059e+37 }
 0x7ee   :  { %v1180_v37 = vadd.f32 %v3268_v10, %v1179_v2  ;;  %v1269_v2 = vadd.f32 %v4725_v22, %v1268_v7  ;;  %3269 = vtanh.f32 %v1334_v63  ;;  %vm1260_vm8 = vcmp.eq.f32.partialorder %v1259_v5, 8.507059e+37 }
 0x7ef   :  { %v1263_v3 = vsel %vm1260_vm8, %v1262_v24, %v1258_v55 }
 0x7f0   :  { %v1184_v4 = vsel %vm1183_vm13, %v3268_v10, %v1180_v37  ;;  %v1273_v58 = vsel %vm1272_vm4, %v4725_v22, %v1269_v2  ;;  %v1338_v9 = vsub.f32 1.0, %v1263_v3  ;;  %v1342_v63 = vmul.f32 0.0, %v1263_v3 }
 0x7f1   :  { %v1189_v26 = vsel %vm1186_vm15, %v1188_v31, %v1184_v4  ;;  %v1278_v29 = vsel %vm1275_vm9, %v1277_v42, %v1273_v58  ;;  %v4801_v4 = vld [vmem:[#allocation6] ss:$0 sm:$0xff] }
 0x7f2   :  { %v1333_v47 = vmul.f32 %v1330_v28, %v1189_v26  ;;  %v1339_v37 = vsub.f32 1.0, %v1278_v29  ;;  %v1343_v27 = vmul.f32 0.0, %v1278_v29 }
 0x7f4   :  { %v1335_v10 = vadd.f32 %v1333_v47, %v1304_v21  ;;  %v3270_v7 = vpop.eup %3269 }
 0x7f5   :  { %v1340_v28 = vmul.f32 %v3270_v7, %v1338_v9 }
 0x7f6   :  { %3271 = vtanh.f32 %v1335_v10 }
 0x7f7   :  { %v4758_v25 = vadd.f32 %v1342_v63, %v1340_v28 }
 0x7fc   :  { %v3272_v48 = vpop.eup %3271 }
 0x7fd   :  { %v1341_v54 = vmul.f32 %v3272_v48, %v1339_v37 }
 0x7ff   :  { %v4755_v31 = vadd.f32 %v1343_v27, %v1341_v54 }
 0x801   :  { %1360 = vmatpush.msrb.mxu0 %v4755_v31 }
 0x803   :  { %1361 = vmatpush.msrb.mxu0 %v4758_v25 }
 0x804   :  { %3030 = vmatmul.msk.f32.vlgmr.msrb.gmra.mxu0 %vm672_vm0, %v4308_v14 }
 0x805   :  { %1649 = vmatpush.msra.mxu0 %v4488_v34 }
 0x807   :  { %1650 = vmatpush.msra.mxu0 %v4491_v35 }
 0x809   :  { %1651 = vmatpush.msra.mxu0 %v4495_v38 }
 0x80b   :  { %1652 = vmatpush.msra.mxu0 %v4508_v30 }
 0x80c   :  { %3031 = vmatmul.msk.f32.gmra.mxu0 %vm672_vm0, %v4314_v17 }
 0x80d   :  { %1769 = vmatpush.msrb.mxu0 %v4601_v23 }
 0x80f   :  { %1770 = vmatpush.msrb.mxu0 %v4613_v43 }
 0x811   :  { %1771 = vmatpush.msrb.mxu0 %v4644_v11 }
 0x813   :  { %1772 = vmatpush.msrb.mxu0 %v4656_v16 }
 0x814   :  { %3032 = vmatmul.msk.f32.gmra.mxu0 %vm672_vm0, %v4320_v18 }
 0x81c   :  { %3033 = vmatmul.msk.f32.gmra.mxu0 %vm672_vm0, %v4326_v20 }
 0x881   :  { %v4777_v34 = vpop.f32.mrf.mxu0 }
 0x882   :  { %3034 = vmatmul.msk.f32.vlgmr.msra.gmra.mxu1 %vm714_vm6, %v4777_v34 }
 0x883   :  { %1832 = vmatpush.msra.mxu1 %v4603_v40 }
 0x885   :  { %1833 = vmatpush.msra.mxu1 %v4617_v44 }
 0x887   :  { %1834 = vmatpush.msra.mxu1 %v4646_v45 }
 0x889   :  { %v4784_v11 = vpop.f32.mrf.mxu0  ;;  %1835 = vmatpush.msra.mxu1 %v4658_v19 }
 0x88a   :  { %3035 = vmatmul.msk.f32.gmra.mxu1 %vm714_vm6, %v4784_v11 }
 0x891   :  { %v4789_v35 = vpop.f32.mrf.mxu0 }
 0x892   :  { %3036 = vmatmul.msk.f32.gmra.mxu1 %vm714_vm6, %v4789_v35 }
 0x899   :  { %v4793_v38 = vpop.f32.mrf.mxu0 }
 0x89a   :  { %3037 = vmatmul.msk.f32.gmra.mxu1 %vm714_vm6, %v4793_v38 }
 0x8ff   :  { %v1404_v30 = vpop.f32.mrf.mxu1 }
 0x900   :  { %v1405_v59 = vadd.f32 %v1404_v30, %v4359_v33 }
 0x902   :  { %v1416_v47 = vmax.f32 %v1405_v59, 0.0 }
 0x904   :  { %v1420_v60 = vmul.f32 %v4801_v4, %v1416_v47 }
 0x906   :  { %v1424_v10 = vsel %vm767_vm7, %v1420_v60, 0.0 }
 0x907   :  { %v1407_v23 = vpop.f32.mrf.mxu1 }
 0x908   :  { %v1408_v45 = vadd.f32 %v1407_v23, %v4364_v39  ;;  %v4814_v23 = vld [vmem:[#allocation2] ss:$0 sm:$0xff] }
 0x90a   :  { %v1417_v40 = vmax.f32 %v1408_v45, 0.0 }
 0x90c   :  { %v1421_v43 = vmul.f32 %v4362_v36, %v1417_v40 }
 0x90e   :  { %v1427_v44 = vsel %vm767_vm7, %v1421_v43, 0.0 }
 0x90f   :  { %1428 = vadd.xlane.f32.xlu1 %v1427_v44  ;;  %v1410_v16 = vpop.f32.mrf.mxu1 }
 0x910   :  { %v1411_v19 = vadd.f32 %v1410_v16, %v4373_v51 }
 0x912   :  { %v1418_v22 = vmax.f32 %v1411_v19, 0.0 }
 0x914   :  { %v1422_v56 = vmul.f32 %v4801_v4, %v1418_v22 }
 0x916   :  { %v1430_v26 = vsel %vm767_vm7, %v1422_v56, 0.0 }
 0x917   :  { %1431 = vadd.xlane.f32.xlu2 %v1430_v26  ;;  %v1413_v2 = vpop.f32.mrf.mxu1 }
 0x918   :  { %v1414_v6 = vadd.f32 %v1413_v2, %v4371_v50 }
 0x91a   :  { %v1419_v36 = vmax.f32 %v1414_v6, 0.0 }
 0x91c   :  { %v1423_v21 = vmul.f32 %v4801_v4, %v1419_v36 }
 0x91e   :  { %v1433_v5 = vsel %vm767_vm7, %v1423_v21, 0.0 }
 0x91f   :  { %1434 = vadd.xlane.f32.xlu0 %v1433_v5 }
 0x927   :  { %1425 = vadd.xlane.f32.xlu0 %v1424_v10 }
 0x982   :  { %v1429_v55 = vpop.xlane.xlu1 %1428 }
 0x983   :  { %v1437_v58 = vadd.f32 %v4381_v61, %v1429_v55 }
 0x985   :  { %v3039_v24 = vmul.f32 -1.442695, %v1437_v58 }
 0x987   :  { %3273 = vpow2.f32 %v3039_v24 }
 0x98a   :  { %v1432_v42 = vpop.xlane.xlu2 %1431 }
 0x98b   :  { %v1438_v3 = vadd.f32 %v4381_v61, %v1432_v42 }
 0x98d   :  { %v3274_v29 = vpop.eup %3273  ;;  %v3040_v7 = vmul.f32 -1.442695, %v1438_v3 }
 0x98e   :  { %v1453_v9 = vadd.f32 1.0, %v3274_v29 }
 0x98f   :  { %3275 = vpow2.f32 %v3040_v7 }
 0x990   :  { %3277 = vrcp.f32 %v1453_v9  ;;  %v1482_v10 = vand.u32 2147483648, %v1453_v9  ;;  %vm1476_vm13 = vweird.f32 %v1453_v9  ;;  %v1480_v24 = vand.u32 2147483647, %v1453_v9 }
 0x992   :  { %v1435_v37 = vpop.xlane.xlu0 %1434  ;;  %vm1481_vm4 = vcmp.eq.f32.partialorder %v1480_v24, 8.507059e+37 }
 0x993   :  { %v1439_v48 = vadd.f32 %v4381_v61, %v1435_v37 }
 0x995   :  { %v3276_v28 = vpop.eup %3275  ;;  %v3041_v54 = vmul.f32 -1.442695, %v1439_v48 }
 0x996   :  { %v1454_v27 = vadd.f32 1.0, %v3276_v28  ;;  %v3278_v63 = vpop.eup %3277 }
 0x997   :  { %3279 = vpow2.f32 %v3041_v54  ;;  %v1472_v40 = vmul.f32 %v3278_v63, %v1453_v9  ;;  %vm1477_vm11 = vweird.f32 %v3278_v63  ;;  %v1483_v9 = vor.u32 1.1754944e-38, %v1482_v10 }
 0x998   :  { %3281 = vrcp.f32 %v1454_v27  ;;  %v1497_v60 = vand.u32 2147483648, %v1454_v27  ;;  %vm1491_vm12 = vweird.f32 %v1454_v27  ;;  %v1495_v55 = vand.u32 2147483647, %v1454_v27  ;;  %vm4821_vm15 = vmor %vm1476_vm13, %vm1477_vm11 }
 0x999   :  { %v1473_v56 = vsub.f32 1.0, %v1472_v40 }
 0x99a   :  { %v1426_v30 = vpop.xlane.xlu0 %1425  ;;  %v1498_v28 = vor.u32 1.1754944e-38, %v1497_v60  ;;  %vm1496_vm2 = vcmp.eq.f32.partialorder %v1495_v55, 8.507059e+37 }
 0x99b   :  { %v1436_v45 = vadd.f32 %v4814_v23, %v1426_v30  ;;  %v1474_v2 = vmul.f32 %v3278_v63, %v1473_v56 }
 0x99d   :  { %v3280_v43 = vpop.eup %3279  ;;  %v3038_v44 = vmul.f32 -1.442695, %v1436_v45  ;;  %v1475_v5 = vadd.f32 %v3278_v63, %v1474_v2 }
 0x99e   :  { %v3282_v16 = vpop.eup %3281  ;;  %v1455_v19 = vadd.f32 1.0, %v3280_v43 }
 0x99f   :  { %v1487_v22 = vmul.f32 %v3282_v16, %v1454_v27  ;;  %3283 = vpow2.f32 %v3038_v44  ;;  %vm1492_vm10 = vweird.f32 %v3282_v16  ;;  %v1479_v54 = vsel %vm4821_vm15, %v3278_v63, %v1475_v5 }
 0x9a0   :  { %3285 = vrcp.f32 %v1455_v19  ;;  %vm4817_vm14 = vmor %vm1491_vm12, %vm1492_vm10  ;;  %v1512_v3 = vand.u32 2147483648, %v1455_v19  ;;  %v1510_v37 = vand.u32 2147483647, %v1455_v19  ;;  %vm1506_vm3 = vweird.f32 %v1455_v19 }
 0x9a1   :  { %v1488_v61 = vsub.f32 1.0, %v1487_v22  ;;  %v1484_v22 = vsel %vm1481_vm4, %v1483_v9, %v1479_v54 }
 0x9a2   :  { %v1513_v45 = vor.u32 1.1754944e-38, %v1512_v3  ;;  %vm1511_vm9 = vcmp.eq.f32.partialorder %v1510_v37, 8.507059e+37  ;;  %v5278_v3 = vld [vmem:[#allocation68_spill] sm:$0xff] }
 0x9a3   :  { %v1489_v26 = vmul.f32 %v3282_v16, %v1488_v61 }
 0x9a5   :  { %v3284_v6 = vpop.eup %3283  ;;  %v1490_v21 = vadd.f32 %v3282_v16, %v1489_v26 }
 0x9a6   :  { %v3286_v59 = vpop.eup %3285  ;;  %v1452_v36 = vadd.f32 1.0, %v3284_v6  ;;  %v1518_v6 = vmul.f32 1.442695, %v1484_v22  ;;  %v5280_v22 = vld [vmem:[#allocation76_spill] sm:$0xff] }
 0x9a7   :  { %v1502_v47 = vmul.f32 %v3286_v59, %v1455_v19  ;;  %vm1507_vm1 = vweird.f32 %v3286_v59  ;;  %v1494_v48 = vsel %vm4817_vm14, %v3282_v16, %v1490_v21 }
 0x9a8   :  { %3287 = vrcp.f32 %v1452_v36  ;;  %vm1508_vm8 = vmor %vm1506_vm3, %vm1507_vm1  ;;  %v1499_v40 = vsel %vm1496_vm2, %v1498_v28, %v1494_v48  ;;  %v1467_v2 = vand.u32 2147483648, %v1452_v36  ;;  %v1465_v21 = vand.u32 2147483647, %v1452_v36 }
 0x9a9   :  { %v1503_v58 = vsub.f32 1.0, %v1502_v47  ;;  %v1520_v26 = vmul.f32 1.442695, %v1499_v40  ;;  %vm1461_vm11 = vweird.f32 %v1452_v36 }
 0x9aa   :  { %v1468_v47 = vor.u32 1.1754944e-38, %v1467_v2  ;;  %vm1466_vm13 = vcmp.eq.f32.partialorder %v1465_v21, 8.507059e+37  ;;  %v5289_v2 = vld [vmem:[#allocation87_spill] sm:$0xff] }
 0x9ab   :  { %v1504_v7 = vmul.f32 %v3286_v59, %v1503_v58 }
 0x9ad   :  { %v1505_v27 = vadd.f32 %v3286_v59, %v1504_v7 }
 0x9ae   :  { %v3288_v30 = vpop.eup %3287 }
 0x9af   :  { %v1509_v43 = vsel %vm1508_vm8, %v3286_v59, %v1505_v27  ;;  %v1457_v44 = vmul.f32 %v3288_v30, %v1452_v36  ;;  %vm1462_vm10 = vweird.f32 %v3288_v30 }
 0x9b0   :  { %v1514_v56 = vsel %vm1511_vm9, %v1513_v45, %v1509_v43  ;;  %vm1463_vm12 = vmor %vm1461_vm11, %vm1462_vm10 }
 0x9b1   :  { %v1522_v61 = vmul.f32 1.442695, %v1514_v56  ;;  %v1458_v16 = vsub.f32 1.0, %v1457_v44  ;;  %v5281_v56 = vld [vmem:[#allocation77_spill] sm:$0xff] }
 0x9b3   :  { %3289 = vpow2.f32 %v1522_v61  ;;  %v1459_v63 = vmul.f32 %v3288_v30, %v1458_v16  ;;  %v5283_v61 = vld [vmem:[#allocation79_spill] sm:$0xff]  ;;  %v5287_v16 = vld [vmem:[#allocation85_spill] sm:$0xff] }
 0x9b4   :  { %3291 = vpow2.f32 %v1520_v26  ;;  %v5288_v26 = vld [vmem:[#allocation86_spill] sm:$0xff] }
 0x9b5   :  { %v1460_v19 = vadd.f32 %v3288_v30, %v1459_v63  ;;  %3293 = vpow2.f32 %v1518_v6  ;;  %v5290_v6 = vld [vmem:[#allocation89_spill] sm:$0xff]  ;;  %v5291_v63 = vld [vmem:[#allocation90_spill] sm:$0xff] }
 0x9b7   :  { %v1464_v59 = vsel %vm1463_vm12, %v3288_v30, %v1460_v19  ;;  %v5292_v19 = vld [vmem:[#allocation91_spill] sm:$0xff] }
 0x9b8   :  { %v1469_v5 = vsel %vm1466_vm13, %v1468_v47, %v1464_v59  ;;  %v5293_v47 = vld [vmem:[#allocation92_spill] sm:$0xff]  ;;  %v5294_v59 = vld [vmem:[#allocation93_spill] sm:$0xff] }
 0x9b9   :  { %v3290_v60 = vpop.eup %3289  ;;  %v1516_v10 = vmul.f32 1.442695, %v1469_v5 }
 0x9ba   :  { %1536 = vmatpush.msrb.mxu2 %v3290_v60  ;;  %v3292_v55 = vpop.eup %3291 }
 0x9bb   :  { %3295 = vpow2.f32 %v1516_v10  ;;  %v3294_v58 = vpop.eup %3293 }
 0x9bc   :  { %1537 = vmatpush.msrb.mxu2 %v3292_v55 }
 0x9be   :  { %1538 = vmatpush.msrb.mxu2 %v3294_v58 }
 0x9c1   :  { %v3296_v24 = vpop.eup %3295 }
 0x9c2   :  { %1539 = vmatpush.msrb.mxu2 %v3296_v24 }
 0x9c3   :  { %3042 = vmatmul.msk.f32.vlgmr.msrb.gmra.mxu2 %vm714_vm6, %v4447_v52 }
 0x9cb   :  { %3043 = vmatmul.msk.f32.gmra.mxu2 %vm714_vm6, %v4454_v8 }
 0xa46   :  { %v1541_v36 = vpop.f32.mrf.mxu2 }
 0xa4e   :  { %v1544_v42 = vpop.f32.mrf.mxu2 }
 0xa4f   :  { %1561 = vmatpush.msra.mxu3 %v1544_v42  ;;  %v5297_v42 = vld [vmem:[#allocation82_spill] sm:$0xff] }
 0xa51   :  { %1562 = vmatpush.msra.mxu3 %v1541_v36 }
 0xa52   :  { %3044 = vmatmul.msk.f32.vlgmr.msra.gmra.mxu3 %vm672_vm0, %v4464_v62 }
 0xa53   :  { %1740 = vmatpush.msrb.mxu3 %v4595_v57  ;;  %v5279_v57 = vld [vmem:[#allocation69_spill] sm:$0xff] }
 0xa55   :  { %1741 = vmatpush.msrb.mxu3 %v4597_v32 }
 0xa57   :  { %1742 = vmatpush.msrb.mxu3 %v4605_v41 }
 0xa59   :  { %1743 = vmatpush.msrb.mxu3 %v4622_v46 }
 0xa5a   :  { %3045 = vmatmul.msk.f32.gmra.mxu3 %vm672_vm0, %v4470_v0 }
 0xa5b   :  { %1918 = vmatpush.msra.mxu3 %v4628_v49 }
 0xa5d   :  { %1919 = vmatpush.msra.mxu3 %v4632_v53 }
 0xa5f   :  { %1920 = vmatpush.msra.mxu3 %v4653_v13 }
 0xa61   :  { %1921 = vmatpush.msra.mxu3 %v4665_v15 }
 0xa62   :  { %3046 = vmatmul.msk.f32.gmra.mxu3 %vm672_vm0, %v5278_v3 }
 0xa6a   :  { %3047 = vmatmul.msk.f32.gmra.mxu3 %vm672_vm0, %v5279_v57 }
 0xa72   :  { %3056 = vmatmul.msk.f32.vlgmr.msrb.gmra.mxu3 %vm714_vm6, %v4758_v25 }
 0xa7a   :  { %3057 = vmatmul.msk.f32.gmra.mxu3 %vm714_vm6, %v4755_v31 }
 0xad5   :  { %v1564_v32 = vpop.f32.mrf.mxu3 }
 0xadd   :  { %v1567_v41 = vpop.f32.mrf.mxu3 }
 0xade   :  { %3297 = vrcp.f32 %v1567_v41 }
 0xae4   :  { %v3298_v46 = vpop.eup %3297 }
 0xae5   :  { %v1570_v49 = vpop.f32.mrf.mxu3  ;;  %v1581_v53 = vmul.f32 %v3298_v46, %v3294_v58 }
 0xae6   :  { %3299 = vrcp.f32 %v1570_v49  ;;  %v5298_v49 = vld [vmem:[#allocation88_spill] sm:$0xff] }
 0xae7   :  { %1591 = vperm.xlu0 %3200, %v1581_v53  }
 0xaec   :  { %v3300_v13 = vpop.eup %3299 }
 0xaed   :  { %v1573_v15 = vpop.f32.mrf.mxu3  ;;  %v1582_v29 = vmul.f32 %v3300_v13, %v3292_v55  ;;  %v5296_v55 = vld [vmem:[#allocation81_spill] sm:$0xff] }
 0xaee   :  { %3301 = vrcp.f32 %v1573_v15  ;;  %v3399_v15 = vld [vmem:[%s5226_s1 + $0x18] sm:$0xff] }
 0xaef   :  { %1596 = vperm.xlu1 %3201, %v1582_v29   ;;  %3303 = vrcp.f32 %v1564_v32 }
 0xaf4   :  { %v3302_v7 = vpop.eup %3301 }
 0xaf5   :  { %v1583_v37 = vmul.f32 %v3302_v7, %v3290_v60  ;;  %v3304_v48 = vpop.eup %3303  ;;  %v5295_v60 = vld [vmem:[#allocation94_spill] sm:$0xff]  ;;  %v3400_v7 = vld [vmem:[%s5226_s1 + $0x10] sm:$0xff] }
 0xaf6   :  { %v1580_v28 = vmul.f32 %v3304_v48, %v3296_v24  ;;  %v3401_v48 = vld [vmem:[%s5226_s1 + $0x8] sm:$0xff] }
 0xaf7   :  { %1601 = vperm.xlu2 %3202, %v1583_v37  }
 0xaff   :  { %1586 = vperm.xlu2 %3202, %v1580_v28  }
 0xb51   :  { %v1602_v54 = vpop.permute.xlu2 %1601 }
 0xb52   :  { %v1607_v9 = vmul.f32 %v1602_v54, %v4793_v38  ;;  %v5282_v38 = vld [vmem:[#allocation78_spill] sm:$0xff] }
 0xb53   :  { %v3402_v54 = vld [vmem:[%s5226_s1] sm:$0xff] }
 0xb54   :  { %1620 = vmatpush.msra.mxu2 %v1607_v9 }
 0xb59   :  { %v1592_v27 = vpop.permute.xlu0 %1591  ;;  %v1587_v40 = vpop.permute.xlu2 %1586 }
 0xb5a   :  { %v1605_v43 = vmul.f32 %v1592_v27, %v4784_v11  ;;  %v1604_v44 = vmul.f32 %v1587_v40, %v4777_v34  ;;  %v5284_v11 = vld [vmem:[#allocation80_spill] sm:$0xff]  ;;  %v5299_v27 = vld [vmem:[#allocation95_spill] sm:$0xff] }
 0xb5b   :  { %v5286_v34 = vld [vmem:[#allocation84_spill] sm:$0xff] }
 0xb5c   :  { %v3404_v40 = vld [vmem:[%s5241_s12 + $0x30] sm:$0xff] }
 0xb61   :  { %v1597_v30 = vpop.permute.xlu1 %1596 }
 0xb62   :  { %v1606_v45 = vmul.f32 %v1597_v30, %v4789_v35  ;;  %v5285_v35 = vld [vmem:[#allocation83_spill] sm:$0xff] }
 0xb64   :  { %1621 = vmatpush.msra.mxu2 %v1606_v45  ;;  %v3403_v45 = vld [vmem:[%s5241_s12 + $0x38] sm:$0xff] }
 0xb66   :  { %1622 = vmatpush.msra.mxu2 %v1605_v43 }
 0xb68   :  { %1623 = vmatpush.msra.mxu2 %v1604_v44  ;;  %v5300_v44 = vld [vmem:[#allocation70_spill] sm:$0xff] }
 0xb69   :  { %3048 = vmatmul.msk.f32.vlgmr.msra.gmra.mxu2 %vm714_vm6, %v4447_v52 }
 0xb6a   :  { %1707 = vmatpush.msrb.mxu2 %v5280_v22 }
 0xb6c   :  { %1708 = vmatpush.msrb.mxu2 %v5281_v56  ;;  %v5301_v56 = vld [vmem:[#allocation71_spill] sm:$0xff] }
 0xb6e   :  { %1709 = vmatpush.msrb.mxu2 %v5282_v38  ;;  %v5302_v38 = vld [vmem:[#allocation72_spill] sm:$0xff] }
 0xb70   :  { %1710 = vmatpush.msrb.mxu2 %v5283_v61  ;;  %v5303_v61 = vld [vmem:[#allocation73_spill] sm:$0xff] }
 0xb71   :  { %3049 = vmatmul.msk.f32.gmra.mxu2 %vm714_vm6, %v4454_v8 }
 0xb72   :  { %1711 = vmatpush.msrb.mxu2 %v5284_v11  ;;  %v5304_v11 = vld [vmem:[#allocation74_spill] sm:$0xff] }
 0xb74   :  { %1712 = vmatpush.msrb.mxu2 %v5285_v35  ;;  %v5305_v35 = vld [vmem:[#allocation75_spill] sm:$0xff] }
 0xb76   :  { %1713 = vmatpush.msrb.mxu2 %v5286_v34  ;;  %v1745_v34 = vpop.f32.mrf.mxu3 }
 0xb78   :  { %1714 = vmatpush.msrb.mxu2 %v5287_v16 }
 0xb7a   :  { %1855 = vmatpush.msra.mxu2 %v5288_v26 }
 0xb7c   :  { %1856 = vmatpush.msra.mxu2 %v5289_v2  ;;  %v5306_v2 = vld [vmem:[#allocation97_spill] sm:$0xff] }
 0xb7e   :  { %1857 = vmatpush.msra.mxu2 %v5290_v6 }
 0xb80   :  { %1858 = vmatpush.msra.mxu2 %v5291_v63 }
 0xbec   :  { %v1625_v21 = vpop.f32.mrf.mxu2 }
 0xbed   :  { %3050 = vmatmul.msk.f32.vlgmr.msra.gmra.mxu0 %vm714_vm6, %v1625_v21 }
 0xbee   :  { %1941 = vmatpush.msra.mxu0 %v5292_v19 }
 0xbf0   :  { %1942 = vmatpush.msra.mxu0 %v5293_v47 }
 0xbf2   :  { %1943 = vmatpush.msra.mxu0 %v5294_v59  ;;  %v1748_v59 = vpop.f32.mrf.mxu3 }
 0xbf4   :  { %v1628_v5 = vpop.f32.mrf.mxu2  ;;  %1944 = vmatpush.msra.mxu0 %v5295_v60  ;;  %v5307_v60 = vld [vmem:[#allocation96_spill] sm:$0xff] }
 0xbf5   :  { %3051 = vmatmul.msk.f32.gmra.mxu0 %vm714_vm6, %v1628_v5 }
 0xc6a   :  { %v1654_v10 = vpop.f32.mrf.mxu0 }
 0xc6b   :  { %v1655_v58 = vadd.f32 %v1654_v10, %v5296_v55 }
 0xc6d   :  { %v1660_v24 = vmax.f32 %v1655_v58, 0.0 }
 0xc6f   :  { %3052 = vmatmul.msk.f32.vlgmr.msrb.gmra.mxu1 %vm767_vm7, %v1660_v24 }
 0xc72   :  { %v1657_v36 = vpop.f32.mrf.mxu0 }
 0xc73   :  { %v1658_v32 = vadd.f32 %v1657_v36, %v5297_v42 }
 0xc75   :  { %v1661_v41 = vmax.f32 %v1658_v32, 0.0 }
 0xc77   :  { %3053 = vmatmul.msk.f32.gmra.mxu1 %vm767_vm7, %v1661_v41 }
 0xc7f   :  { %3062 = vmatmul.msk.f32.vlgmr.msra.gmra.mxu1 %vm714_vm6, %v4758_v25 }
 0xc87   :  { %3063 = vmatmul.msk.f32.gmra.mxu1 %vm714_vm6, %v4755_v31 }
 0xcec   :  { %v1685_v46 = vpop.f32.mrf.mxu1 }
 0xced   :  { %v1686_v53 = vadd.f32 %v5298_v49, %v1685_v46 }
 0xcef   :  { %v1691_v13 = vmax.f32 %v1686_v53, 0.0 }
 0xcf1   :  { %3054 = vmatmul.msk.f32.vlgmr.msrb.gmra.mxu2 %vm767_vm7, %v1691_v13 }
 0xcf2   :  { %2019 = vmatpush.msrb.mxu2 %v3399_v15 }
 0xcf4   :  { %v1688_v29 = vpop.f32.mrf.mxu1  ;;  %2020 = vmatpush.msrb.mxu2 %v3400_v7 }
 0xcf5   :  { %v1689_v37 = vadd.f32 %v5298_v49, %v1688_v29 }
 0xcf6   :  { %2021 = vmatpush.msrb.mxu2 %v3401_v48 }
 0xcf7   :  { %v1692_v28 = vmax.f32 %v1689_v37, 0.0 }
 0xcf8   :  { %2022 = vmatpush.msrb.mxu2 %v3402_v54 }
 0xcf9   :  { %3055 = vmatmul.msk.f32.gmra.mxu2 %vm767_vm7, %v1692_v28 }
 0xcfc   :  { %v1837_v63 = vpop.f32.mrf.mxu1 }
 0xd04   :  { %v1840_v46 = vpop.f32.mrf.mxu1 }
 0xd74   :  { %v1716_v9 = vpop.f32.mrf.mxu2 }
 0xd75   :  { %v1717_v30 = vadd.f32 %v5299_v27, %v1716_v9 }
 0xd77   :  { %3058 = vmatmul.msk.f32.vlgmr.msrb.gmra.mxu0 %vm714_vm6, %v1717_v30  ;;  %3064 = vmatmul.msk.f32.vlgmr.msra.gmra.mxu2 %vm714_vm6, %v1717_v30 }
 0xd78   :  { %3068 = vmatmul.msk.f32.vlgmr.msra.gmra.mxu3 %vm714_vm6, %v1717_v30  ;;  %2296 = vmatpush.msra.mxu2 %v3403_v45 }
 0xd7a   :  { %2297 = vmatpush.msra.mxu2 %v3404_v40 }
 0xd7c   :  { %v1719_v43 = vpop.f32.mrf.mxu2  ;;  %2298 = vmatpush.msra.mxu2 %v5300_v44 }
 0xd7d   :  { %v1720_v22 = vadd.f32 %v5299_v27, %v1719_v43 }
 0xd7e   :  { %2299 = vmatpush.msra.mxu2 %v5301_v56 }
 0xd7f   :  { %3059 = vmatmul.msk.f32.gmra.mxu0 %vm714_vm6, %v1720_v22  ;;  %3065 = vmatmul.msk.f32.gmra.mxu2 %vm714_vm6, %v1720_v22 }
 0xd80   :  { %3069 = vmatmul.msk.f32.gmra.mxu3 %vm714_vm6, %v1720_v22  ;;  %2300 = vmatpush.msra.mxu2 %v5302_v38 }
 0xd82   :  { %2301 = vmatpush.msra.mxu2 %v5303_v61 }
 0xd84   :  { %2302 = vmatpush.msra.mxu2 %v5304_v11 }
 0xd86   :  { %2303 = vmatpush.msra.mxu2 %v5305_v35 }
 0xd87   :  { %3070 = vmatmul.msk.f32.vlgmr.msra.gmra.mxu0 %vm714_vm6, %v4758_v25 }
 0xd8f   :  { %3071 = vmatmul.msk.f32.gmra.mxu0 %vm714_vm6, %v4755_v31 }
 0xdf4   :  { %v1774_v16 = vpop.f32.mrf.mxu0 }
 0xdf5   :  { %v1775_v26 = vadd.f32 %v1774_v16, %v1745_v34 }
 0xdf7   :  { %v1780_v6 = vadd.f32 %v5306_v2, %v1775_v26 }
 0xdf9   :  { %v3060_v21 = vmul.f32 -1.442695, %v1780_v6 }
 0xdfa   :  { %v1860_v19 = vpop.f32.mrf.mxu2 }
 0xdfb   :  { %3305 = vpow2.f32 %v3060_v21  ;;  %v1861_v47 = vadd.f32 %v1860_v19, %v1837_v63  ;;  %v1923_v30 = vpop.f32.mrf.mxu3 }
 0xdfc   :  { %v1777_v5 = vpop.f32.mrf.mxu0 }
 0xdfd   :  { %v1866_v10 = vadd.f32 %v5307_v60, %v1861_v47  ;;  %v1778_v58 = vadd.f32 %v1777_v5, %v1748_v59 }
 0xdff   :  { %v3066_v24 = vmul.f32 -1.442695, %v1866_v10  ;;  %v1781_v36 = vadd.f32 %v5306_v2, %v1778_v58 }
 0xe01   :  { %v3306_v32 = vpop.eup %3305  ;;  %3307 = vpow2.f32 %v3066_v24  ;;  %v3061_v41 = vmul.f32 -1.442695, %v1781_v36 }
 0xe02   :  { %v1788_v49 = vadd.f32 1.0, %v3306_v32  ;;  %v1863_v53 = vpop.f32.mrf.mxu2  ;;  %v1924_v32 = vadd.f32 %v4734_v1, %v1923_v30 }
 0xe03   :  { %3309 = vpow2.f32 %v3061_v41  ;;  %v1864_v13 = vadd.f32 %v1863_v53, %v1840_v46  ;;  %v1926_v5 = vpop.f32.mrf.mxu3 }
 0xe04   :  { %3311 = vrcp.f32 %v1788_v49  ;;  %v1946_v45 = vpop.f32.mrf.mxu0  ;;  %v1801_v44 = vand.u32 2147483648, %v1788_v49  ;;  %v1799_v38 = vand.u32 2147483647, %v1788_v49  ;;  %vm1795_vm15 = vweird.f32 %v1788_v49 }
 0xe05   :  { %v1867_v15 = vadd.f32 %v5307_v60, %v1864_v13  ;;  %v1947_v21 = vadd.f32 %v4727_v12, %v1946_v45 }
 0xe06   :  { %v1802_v16 = vor.u32 1.1754944e-38, %v1801_v44  ;;  %vm1800_vm2 = vcmp.eq.f32.partialorder %v1799_v38, 8.507059e+37 }
 0xe07   :  { %v3308_v29 = vpop.eup %3307  ;;  %v3067_v7 = vmul.f32 -1.442695, %v1867_v15 }
 0xe08   :  { %v4919_v37 = vadd.f32 1.0, %v3308_v29 }
 0xe09   :  { %v3310_v48 = vpop.eup %3309  ;;  %3313 = vpow2.f32 %v3067_v7 }
 0xe0a   :  { %v3312_v28 = vpop.eup %3311  ;;  %3315 = vrcp.f32 %v4919_v37  ;;  %v1789_v54 = vadd.f32 1.0, %v3310_v48  ;;  %vm1881_vm12 = vweird.f32 %v4919_v37 }
 0xe0b   :  { %v1791_v9 = vmul.f32 %v3312_v28, %v1788_v49  ;;  %vm1796_vm14 = vweird.f32 %v3312_v28  ;;  %v1927_v49 = vadd.f32 %v4734_v1, %v1926_v5  ;;  %v3410_v5 = vld [vmem:[%s5255_s0 + $0x10] sm:$0xff] }
 0xe0c   :  { %3317 = vrcp.f32 %v1789_v54  ;;  %vm1797_vm1 = vmor %vm1795_vm15, %vm1796_vm14  ;;  %v1816_v47 = vand.u32 2147483648, %v1789_v54  ;;  %v1814_v10 = vand.u32 2147483647, %v1789_v54  ;;  %v1949_v58 = vpop.f32.mrf.mxu0  ;;  %vm1810_vm4 = vweird.f32 %v1789_v54 }
 0xe0d   :  { %v1792_v27 = vsub.f32 1.0, %v1791_v9  ;;  %v1950_v13 = vadd.f32 %v4727_v12, %v1949_v58  ;;  %v1885_v12 = vand.u32 2147483647, %v4919_v37  ;;  %v3414_v58 = vld [vmem:[#allocation17 + $0x10] sm:$0xff] }
 0xe0e   :  { %v1817_v53 = vor.u32 1.1754944e-38, %v1816_v47  ;;  %vm1815_vm10 = vcmp.eq.f32.partialorder %v1814_v10, 8.507059e+37  ;;  %v3407_v47 = vld [vmem:[%s5240_s30 + $0x8] sm:$0xff]  ;;  %v3412_v10 = vld [vmem:[%s5255_s0] sm:$0xff] }
 0xe0f   :  { %v3314_v40 = vpop.eup %3313  ;;  %v1793_v43 = vmul.f32 %v3312_v28, %v1792_v27 }
 0xe10   :  { %v4922_v22 = vpop.eup %3315  ;;  %v1875_v56 = vadd.f32 1.0, %v3314_v40 }
 0xe11   :  { %v1877_v61 = vmul.f32 %v4922_v22, %v4919_v37  ;;  %v1794_v11 = vadd.f32 %v3312_v28, %v1793_v43  ;;  %vm1882_vm9 = vweird.f32 %v4922_v22 }
 0xe12   :  { %v3318_v35 = vpop.eup %3317  ;;  %3319 = vrcp.f32 %v1875_v56  ;;  %v1902_v9 = vand.u32 2147483648, %v1875_v56  ;;  %vm4935_vm13 = vmor %vm1881_vm12, %vm1882_vm9  ;;  %vm1896_vm14 = vweird.f32 %v1875_v56  ;;  %v1900_v45 = vand.u32 2147483647, %v1875_v56 }
 0xe13   :  { %v1798_v34 = vsel %vm1797_vm1, %v3312_v28, %v1794_v11  ;;  %v1806_v26 = vmul.f32 %v3318_v35, %v1789_v54  ;;  %v1878_v2 = vsub.f32 1.0, %v1877_v61  ;;  %vm1811_vm3 = vweird.f32 %v3318_v35 }
 0xe14   :  { %v1803_v6 = vsel %vm1800_vm2, %v1802_v16, %v1798_v34  ;;  %vm1812_vm8 = vmor %vm1810_vm4, %vm1811_vm3  ;;  %v1887_v54 = vand.u32 2147483648, %v4919_v37  ;;  %v1903_v61 = vor.u32 1.1754944e-38, %v1902_v9  ;;  %vm1886_vm1 = vcmp.eq.f32.partialorder %v1885_v12, 8.507059e+37 }
 0xe15   :  { %v1807_v63 = vsub.f32 1.0, %v1806_v26  ;;  %v1952_v60 = vmul.f32 %v1947_v21, %v1803_v6  ;;  %v1879_v24 = vmul.f32 %v4922_v22, %v1878_v2  ;;  %vm1901_vm2 = vcmp.eq.f32.partialorder %v1900_v45, 8.507059e+37 }
 0xe16   :  { %v1888_v38 = vor.u32 1.1754944e-38, %v1887_v54 }
 0xe17   :  { %v1808_v19 = vmul.f32 %v3318_v35, %v1807_v63  ;;  %v1954_v15 = vadd.f32 %v1952_v60, %v1924_v32  ;;  %v1880_v48 = vadd.f32 %v4922_v22, %v1879_v24  ;;  %v3411_v60 = vld [vmem:[%s5255_s0 + $0x8] sm:$0xff]  ;;  %v3415_v24 = vld [vmem:[#allocation17 + $0x8] sm:$0xff]  ;;  %v3416_v32 = vld [vmem:[#allocation17] sm:$0xff] }
 0xe18   :  { %v3320_v59 = vpop.eup %3319 }
 0xe19   :  { %v1892_v36 = vmul.f32 %v3320_v59, %v1875_v56  ;;  %v1809_v41 = vadd.f32 %v3318_v35, %v1808_v19  ;;  %vm1897_vm11 = vweird.f32 %v3320_v59  ;;  %3321 = vtanh.f32 %v1954_v15  ;;  %v3405_v19 = vld [vmem:[%s5240_s30 + $0x18] sm:$0xff] }
 0xe1a   :  { %vm1898_vm15 = vmor %vm1896_vm14, %vm1897_vm11  ;;  %v1884_v43 = vsel %vm4935_vm13, %v4922_v22, %v1880_v48 }
 0xe1b   :  { %v1893_v46 = vsub.f32 1.0, %v1892_v36  ;;  %v1813_v29 = vsel %vm1812_vm8, %v3318_v35, %v1809_v41  ;;  %v1889_v11 = vsel %vm1886_vm1, %v1888_v38, %v1884_v43 }
 0xe1c   :  { %v1818_v28 = vsel %vm1815_vm10, %v1817_v53, %v1813_v29  ;;  %v1958_v34 = vsub.f32 1.0, %v1889_v11  ;;  %v1962_v63 = vmul.f32 %v1889_v11, %v4758_v25  ;;  %v3409_v25 = vld [vmem:[%s5255_s0 + $0x18] sm:$0xff] }
 0xe1d   :  { %v1894_v7 = vmul.f32 %v3320_v59, %v1893_v46  ;;  %v1953_v1 = vmul.f32 %v1950_v13, %v1818_v28 }
 0xe1f   :  { %v1895_v30 = vadd.f32 %v3320_v59, %v1894_v7  ;;  %v1955_v40 = vadd.f32 %v1953_v1, %v1927_v49  ;;  %v3322_v37 = vpop.eup %3321 }
 0xe20   :  { %v1960_v26 = vmul.f32 %v3322_v37, %v1958_v34 }
 0xe21   :  { %v1899_v44 = vsel %vm1898_vm15, %v3320_v59, %v1895_v30  ;;  %3323 = vtanh.f32 %v1955_v40  ;;  %v3408_v59 = vld [vmem:[%s5240_s30] sm:$0xff] }
 0xe22   :  { %v1904_v35 = vsel %vm1901_vm2, %v1903_v61, %v1899_v44  ;;  %v4948_v21 = vadd.f32 %v1962_v63, %v1960_v26 }
 0xe23   :  { %v1959_v56 = vsub.f32 1.0, %v1904_v35  ;;  %v1963_v22 = vmul.f32 %v1904_v35, %v4755_v31  ;;  %v3406_v31 = vld [vmem:[%s5240_s30 + $0x10] sm:$0xff] }
 0xe27   :  { %v3324_v16 = vpop.eup %3323 }
 0xe28   :  { %v1961_v2 = vmul.f32 %v3324_v16, %v1959_v56 }
 0xe2a   :  { %v4944_v6 = vadd.f32 %v1963_v22, %v1961_v2 }
 0xe2c   :  { %1980 = vmatpush.msrb.mxu1 %v4944_v6 }
 0xe2e   :  { %1981 = vmatpush.msrb.mxu1 %v4948_v21 }
 0xe2f   :  { %3072 = vmatmul.msk.f32.vlgmr.msrb.gmra.mxu1 %vm672_vm0, %v4308_v14 }
 0xe30   :  { %2269 = vmatpush.msra.mxu1 %v3405_v19 }
 0xe32   :  { %2270 = vmatpush.msra.mxu1 %v3406_v31 }
 0xe34   :  { %2271 = vmatpush.msra.mxu1 %v3407_v47 }
 0xe36   :  { %2272 = vmatpush.msra.mxu1 %v3408_v59 }
 0xe37   :  { %3073 = vmatmul.msk.f32.gmra.mxu1 %vm672_vm0, %v4314_v17  ;;  %v3413_v17 = vld [vmem:[#allocation17 + $0x18] sm:$0xff] }
 0xe38   :  { %2389 = vmatpush.msrb.mxu1 %v3409_v25 }
 0xe3a   :  { %2390 = vmatpush.msrb.mxu1 %v3410_v5 }
 0xe3c   :  { %2391 = vmatpush.msrb.mxu1 %v3411_v60 }
 0xe3e   :  { %2392 = vmatpush.msrb.mxu1 %v3412_v10 }
 0xe3f   :  { %3074 = vmatmul.msk.f32.gmra.mxu1 %vm672_vm0, %v4320_v18 }
 0xe47   :  { %3075 = vmatmul.msk.f32.gmra.mxu1 %vm672_vm0, %v4326_v20 }
 0xeac   :  { %v4967_v14 = vpop.f32.mrf.mxu1 }
 0xead   :  { %3076 = vmatmul.msk.f32.vlgmr.msrb.gmra.mxu2 %vm714_vm6, %v4967_v14 }
 0xeae   :  { %2452 = vmatpush.msrb.mxu2 %v3413_v17 }
 0xeb0   :  { %2453 = vmatpush.msrb.mxu2 %v3414_v58 }
 0xeb2   :  { %2454 = vmatpush.msrb.mxu2 %v3415_v24 }
 0xeb4   :  { %v4971_v36 = vpop.f32.mrf.mxu1  ;;  %2455 = vmatpush.msrb.mxu2 %v3416_v32 }
 0xeb5   :  { %3077 = vmatmul.msk.f32.gmra.mxu2 %vm714_vm6, %v4971_v36 }
 0xebc   :  { %v4975_v18 = vpop.f32.mrf.mxu1 }
 0xebd   :  { %3078 = vmatmul.msk.f32.gmra.mxu2 %vm714_vm6, %v4975_v18 }
 0xec4   :  { %v4979_v20 = vpop.f32.mrf.mxu1 }
 0xec5   :  { %3079 = vmatmul.msk.f32.gmra.mxu2 %vm714_vm6, %v4979_v20 }
 0xf30   :  { %v2024_v41 = vpop.f32.mrf.mxu2 }
 0xf38   :  { %v2027_v46 = vpop.f32.mrf.mxu2 }
 0xf39   :  { %v2028_v49 = vadd.f32 %v2027_v46, %v4364_v39  ;;  %v2025_v39 = vadd.f32 %v2024_v41, %v4359_v33 }
 0xf3b   :  { %v2037_v53 = vmax.f32 %v2028_v49, 0.0  ;;  %v2036_v30 = vmax.f32 %v2025_v39, 0.0 }
 0xf3d   :  { %v2041_v13 = vmul.f32 %v4801_v4, %v2037_v53 }
 0xf3f   :  { %v2047_v15 = vsel %vm767_vm7, %v2041_v13, 0.0 }
 0xf40   :  { %2048 = vadd.xlane.f32.xlu2 %v2047_v15  ;;  %v2030_v29 = vpop.f32.mrf.mxu2 }
 0xf41   :  { %v2031_v7 = vadd.f32 %v2030_v29, %v4373_v51  ;;  %v2040_v51 = vmul.f32 %v4801_v4, %v2036_v30 }
 0xf43   :  { %v2038_v48 = vmax.f32 %v2031_v7, 0.0  ;;  %v2044_v40 = vsel %vm767_vm7, %v2040_v51, 0.0 }
 0xf45   :  { %v2042_v28 = vmul.f32 %v4801_v4, %v2038_v48 }
 0xf47   :  { %v2050_v54 = vsel %vm767_vm7, %v2042_v28, 0.0  ;;  %v511_v28 = vld [vmem:[%s5314_s7 + $0x8] sm:$0xff] }
 0xf48   :  { %2051 = vadd.xlane.f32.xlu1 %v2050_v54  ;;  %v2033_v9 = vpop.f32.mrf.mxu2 }
 0xf49   :  { %v2034_v1 = vadd.f32 %v2033_v9, %v4371_v50 }
 0xf4b   :  { %v2039_v27 = vmax.f32 %v2034_v1, 0.0 }
 0xf4d   :  { %v2043_v12 = vmul.f32 %v4801_v4, %v2039_v27 }
 0xf4f   :  { %v2053_v45 = vsel %vm767_vm7, %v2043_v12, 0.0 }
 0xf50   :  { %2054 = vadd.xlane.f32.xlu0 %v2053_v45 }
 0xf58   :  { %2045 = vadd.xlane.f32.xlu0 %v2044_v40 }
 0xfb3   :  { %v2049_v43 = vpop.xlane.xlu2 %2048 }
 0xfb4   :  { %v2057_v44 = vadd.f32 %v4814_v23, %v2049_v43 }
 0xfb6   :  { %v3081_v38 = vmul.f32 -1.442695, %v2057_v44 }
 0xfb8   :  { %3325 = vpow2.f32 %v3081_v38 }
 0xfbb   :  { %v2052_v50 = vpop.xlane.xlu1 %2051 }
 0xfbc   :  { %v2058_v33 = vadd.f32 %v4814_v23, %v2052_v50 }
 0xfbe   :  { %v3326_v61 = vpop.eup %3325  ;;  %v3082_v11 = vmul.f32 -1.442695, %v2058_v33 }
 0xfbf   :  { %v2073_v35 = vadd.f32 1.0, %v3326_v61 }
 0xfc0   :  { %3327 = vpow2.f32 %v3082_v11 }
 0xfc1   :  { %3329 = vrcp.f32 %v2073_v35  ;;  %v2102_v53 = vand.u32 2147483648, %v2073_v35  ;;  %vm2096_vm9 = vweird.f32 %v2073_v35  ;;  %v2100_v29 = vand.u32 2147483647, %v2073_v35 }
 0xfc3   :  { %v2055_v37 = vpop.xlane.xlu0 %2054  ;;  %v2103_v12 = vor.u32 1.1754944e-38, %v2102_v53  ;;  %vm2101_vm15 = vcmp.eq.f32.partialorder %v2100_v29, 8.507059e+37 }
 0xfc4   :  { %v2059_v34 = vadd.f32 %v4814_v23, %v2055_v37 }
 0xfc6   :  { %v3328_v4 = vpop.eup %3327  ;;  %v3083_v56 = vmul.f32 -1.442695, %v2059_v34 }
 0xfc7   :  { %v2074_v16 = vadd.f32 1.0, %v3328_v4  ;;  %v3330_v26 = vpop.eup %3329 }
 0xfc8   :  { %3331 = vpow2.f32 %v3083_v56  ;;  %v2092_v63 = vmul.f32 %v3330_v26, %v2073_v35  ;;  %vm2097_vm4 = vweird.f32 %v3330_v26 }
 0xfc9   :  { %3333 = vrcp.f32 %v2074_v16  ;;  %vm2111_vm8 = vweird.f32 %v2074_v16  ;;  %v2115_v13 = vand.u32 2147483647, %v2074_v16  ;;  %vm5003_vm11 = vmor %vm2096_vm9, %vm2097_vm4 }
 0xfca   :  { %v2093_v5 = vsub.f32 1.0, %v2092_v63 }
 0xfcb   :  { %v2046_v2 = vpop.xlane.xlu0 %2045  ;;  %vm2116_vm13 = vcmp.eq.f32.partialorder %v2115_v13, 8.507059e+37 }
 0xfcc   :  { %v2056_v22 = vadd.f32 %v4814_v23, %v2046_v2  ;;  %v2094_v17 = vmul.f32 %v3330_v26, %v2093_v5  ;;  %v2117_v23 = vand.u32 2147483648, %v2074_v16  ;;  %v3417_v5 = vld [vmem:[#allocation15 + $0x18] sm:$0xff] }
 0xfce   :  { %v3332_v19 = vpop.eup %3331  ;;  %v3080_v31 = vmul.f32 -1.442695, %v2056_v22  ;;  %v2095_v49 = vadd.f32 %v3330_v26, %v2094_v17  ;;  %v2118_v39 = vor.u32 1.1754944e-38, %v2117_v23  ;;  %v3420_v17 = vld [vmem:[#allocation15] sm:$0xff] }
 0xfcf   :  { %v3334_v47 = vpop.eup %3333  ;;  %v2075_v59 = vadd.f32 1.0, %v3332_v19 }
 0xfd0   :  { %v2107_v25 = vmul.f32 %v3334_v47, %v2074_v16  ;;  %3335 = vpow2.f32 %v3080_v31  ;;  %vm2112_vm3 = vweird.f32 %v3334_v47  ;;  %v2099_v27 = vsel %vm5003_vm11, %v3330_v26, %v2095_v49 }
 0xfd1   :  { %3337 = vrcp.f32 %v2075_v59  ;;  %vm4999_vm10 = vmor %vm2111_vm8, %vm2112_vm3  ;;  %v2132_v48 = vand.u32 2147483648, %v2075_v59  ;;  %v2130_v9 = vand.u32 2147483647, %v2075_v59  ;;  %vm2126_vm14 = vweird.f32 %v2075_v59 }
 0xfd2   :  { %v2108_v60 = vsub.f32 1.0, %v2107_v25  ;;  %v2104_v38 = vsel %vm2101_vm15, %v2103_v12, %v2099_v27 }
 0xfd3   :  { %v2133_v51 = vor.u32 1.1754944e-38, %v2132_v48  ;;  %vm2131_vm2 = vcmp.eq.f32.partialorder %v2130_v9, 8.507059e+37  ;;  %v2138_v37 = vmul.f32 1.442695, %v2104_v38  ;;  %v510_v48 = vld [vmem:[%s5314_s7] sm:$0xff]  ;;  %v3434_v38 = vld [vmem:[%s5257_s11 + $0x10] sm:$0xff] }
 0xfd4   :  { %v2109_v10 = vmul.f32 %v3334_v47, %v2108_v60  ;;  %v3418_v60 = vld [vmem:[#allocation15 + $0x10] sm:$0xff] }
 0xfd6   :  { %v3336_v58 = vpop.eup %3335  ;;  %v2110_v41 = vadd.f32 %v3334_v47, %v2109_v10  ;;  %v3419_v10 = vld [vmem:[#allocation15 + $0x8] sm:$0xff] }
 0xfd7   :  { %v3338_v24 = vpop.eup %3337  ;;  %v2072_v32 = vadd.f32 1.0, %v3336_v58  ;;  %v3421_v58 = vld [vmem:[#allocation14 + $0x18] sm:$0xff] }
 0xfd8   :  { %v2122_v46 = vmul.f32 %v3338_v24, %v2075_v59  ;;  %vm2127_vm12 = vweird.f32 %v3338_v24  ;;  %v2114_v1 = vsel %vm4999_vm10, %v3334_v47, %v2110_v41  ;;  %v3424_v41 = vld [vmem:[#allocation14] sm:$0xff] }
 0xfd9   :  { %3339 = vrcp.f32 %v2072_v32  ;;  %vm2128_vm1 = vmor %vm2126_vm14, %vm2127_vm12  ;;  %v2119_v40 = vsel %vm2116_vm13, %v2118_v39, %v2114_v1  ;;  %v2087_v35 = vand.u32 2147483648, %v2072_v32  ;;  %v2085_v4 = vand.u32 2147483647, %v2072_v32 }
 0xfda   :  { %v2123_v15 = vsub.f32 1.0, %v2122_v46  ;;  %v2140_v11 = vmul.f32 1.442695, %v2119_v40  ;;  %vm2081_vm4 = vweird.f32 %v2072_v32  ;;  %v3430_v40 = vld [vmem:[%s5245_s10 + $0x10] sm:$0xff] }
 0xfdb   :  { %v2088_v16 = vor.u32 1.1754944e-38, %v2087_v35  ;;  %vm2086_vm9 = vcmp.eq.f32.partialorder %v2085_v4, 8.507059e+37  ;;  %v3439_v35 = vld [vmem:[#allocation18 + $0x8] sm:$0xff] }
 0xfdc   :  { %v2124_v54 = vmul.f32 %v3338_v24, %v2123_v15 }
 0xfde   :  { %v2125_v30 = vadd.f32 %v3338_v24, %v2124_v54 }
 0xfdf   :  { %v3340_v45 = vpop.eup %3339 }
 0xfe0   :  { %v2129_v43 = vsel %vm2128_vm1, %v3338_v24, %v2125_v30  ;;  %v2077_v44 = vmul.f32 %v3340_v45, %v2072_v32  ;;  %vm2082_vm3 = vweird.f32 %v3340_v45  ;;  %v3422_v24 = vld [vmem:[#allocation14 + $0x10] sm:$0xff]  ;;  %v3423_v32 = vld [vmem:[#allocation14 + $0x8] sm:$0xff] }
 0xfe1   :  { %v2134_v50 = vsel %vm2131_vm2, %v2133_v51, %v2129_v43  ;;  %vm2083_vm8 = vmor %vm2081_vm4, %vm2082_vm3  ;;  %v3428_v51 = vld [vmem:[%s5245_s10 + $0x20] sm:$0xff] }
 0xfe2   :  { %v2142_v33 = vmul.f32 1.442695, %v2134_v50  ;;  %v2078_v61 = vsub.f32 1.0, %v2077_v44  ;;  %v3432_v43 = vld [vmem:[%s5245_s10] sm:$0xff]  ;;  %v3433_v44 = vld [vmem:[%s5257_s11 + $0x18] sm:$0xff]  ;;  %v3435_v50 = vld [vmem:[%s5257_s11 + $0x8] sm:$0xff] }
 0xfe4   :  { %3341 = vpow2.f32 %v2142_v33  ;;  %v2079_v34 = vmul.f32 %v3340_v45, %v2078_v61  ;;  %v3436_v33 = vld [vmem:[%s5257_s11] sm:$0xff] }
 0xfe5   :  { %3343 = vpow2.f32 %v2140_v11  ;;  %v3438_v11 = vld [vmem:[#allocation18 + $0x10] sm:$0xff] }
 0xfe6   :  { %v2080_v56 = vadd.f32 %v3340_v45, %v2079_v34  ;;  %3345 = vpow2.f32 %v2138_v37  ;;  %v3440_v34 = vld [vmem:[#allocation18] sm:$0xff] }
 0xfe8   :  { %v2084_v26 = vsel %vm2083_vm8, %v3340_v45, %v2080_v56 }
 0xfe9   :  { %v2089_v2 = vsel %vm2086_vm9, %v2088_v16, %v2084_v26 }
 0xfea   :  { %v3342_v22 = vpop.eup %3341  ;;  %v2136_v63 = vmul.f32 1.442695, %v2089_v2 }
 0xfeb   :  { %2156 = vmatpush.msrb.mxu3 %v3342_v22  ;;  %v3344_v19 = vpop.eup %3343 }
 0xfec   :  { %3347 = vpow2.f32 %v2136_v63  ;;  %v3346_v31 = vpop.eup %3345 }
 0xfed   :  { %2157 = vmatpush.msrb.mxu3 %v3344_v19 }
 0xfef   :  { %2158 = vmatpush.msrb.mxu3 %v3346_v31 }
 0xff2   :  { %v3348_v47 = vpop.eup %3347 }
 0xff3   :  { %2159 = vmatpush.msrb.mxu3 %v3348_v47 }
 0xff4   :  { %3084 = vmatmul.msk.f32.vlgmr.msrb.gmra.mxu3 %vm714_vm6, %v4447_v52 }
 0xffc   :  { %3085 = vmatmul.msk.f32.gmra.mxu3 %vm714_vm6, %v4454_v8 }
0x1077   :  { %v2161_v59 = vpop.f32.mrf.mxu3 }
0x107f   :  { %v2164_v25 = vpop.f32.mrf.mxu3 }
0x1080   :  { %2181 = vmatpush.msrb.mxu0 %v2164_v25 }
0x1082   :  { %2182 = vmatpush.msrb.mxu0 %v2161_v59 }
0x1083   :  { %3086 = vmatmul.msk.f32.vlgmr.msrb.gmra.mxu0 %vm672_vm0, %v4464_v62 }
0x1084   :  { %2360 = vmatpush.msra.mxu0 %v3417_v5  ;;  %v3442_v5 = vld [vmem:[#allocation12] ss:$0 sm:$0xff] }
0x1086   :  { %2361 = vmatpush.msra.mxu0 %v3418_v60 }
0x1088   :  { %2362 = vmatpush.msra.mxu0 %v3419_v10 }
0x108a   :  { %2363 = vmatpush.msra.mxu0 %v3420_v17 }
0x108b   :  { %3087 = vmatmul.msk.f32.gmra.mxu0 %vm672_vm0, %v4470_v0 }
0x108c   :  { %2538 = vmatpush.msrb.mxu0 %v3421_v58 }
0x108e   :  { %2539 = vmatpush.msrb.mxu0 %v3422_v24 }
0x1090   :  { %2540 = vmatpush.msrb.mxu0 %v3423_v32 }
0x1092   :  { %2541 = vmatpush.msrb.mxu0 %v3424_v41  ;;  %v3443_v41 = vld [vmem:[#allocation20] ss:$0 sm:$0xff] }
0x1093   :  { %3088 = vmatmul.msk.f32.gmra.mxu0 %vm672_vm0, %v5278_v3 }
0x109b   :  { %3089 = vmatmul.msk.f32.gmra.mxu0 %vm672_vm0, %v5279_v57 }
0x10a3   :  { %3098 = vmatmul.msk.f32.vlgmr.msra.gmra.mxu0 %vm714_vm6, %v4948_v21 }
0x10ab   :  { %3099 = vmatmul.msk.f32.gmra.mxu0 %vm714_vm6, %v4944_v6 }
0x1100   :  { %v2184_v62 = vpop.f32.mrf.mxu0 }
0x1108   :  { %v2187_v0 = vpop.f32.mrf.mxu0 }
0x1109   :  { %3349 = vrcp.f32 %v2187_v0 }
0x110f   :  { %v3350_v46 = vpop.eup %3349 }
0x1110   :  { %v2190_v49 = vpop.f32.mrf.mxu0  ;;  %v2201_v23 = vmul.f32 %v3350_v46, %v3346_v31 }
0x1111   :  { %3351 = vrcp.f32 %v2190_v49 }
0x1112   :  { %2211 = vperm.xlu0 %3200, %v2201_v23  }
0x1117   :  { %v3352_v3 = vpop.eup %3351 }
0x1118   :  { %v2193_v53 = vpop.f32.mrf.mxu0  ;;  %v2202_v13 = vmul.f32 %v3352_v3, %v3344_v19  ;;  %v3441_v19 = vld [vmem:[#allocation11] ss:$0 sm:$0xff] }
0x1119   :  { %3353 = vrcp.f32 %v2193_v53 }
0x111a   :  { %2216 = vperm.xlu2 %3202, %v2202_v13   ;;  %3355 = vrcp.f32 %v2184_v62  ;;  %v3444_v13 = vld [vmem:[#allocation21] ss:$0 sm:$0xff] }
0x111f   :  { %v3354_v57 = vpop.eup %3353 }
0x1120   :  { %v2203_v15 = vmul.f32 %v3354_v57, %v3342_v22  ;;  %v3356_v29 = vpop.eup %3355  ;;  %v2365_v58 = vpop.f32.mrf.mxu0 }
0x1121   :  { %v2200_v7 = vmul.f32 %v3356_v29, %v3348_v47  ;;  %v2589_v29 = vld [vmem:[#allocation26 + $0x18] sm:$0xff] }
0x1122   :  { %2221 = vperm.xlu1 %3201, %v2203_v15  }
0x1128   :  { %v2368_v3 = vpop.f32.mrf.mxu0 }
0x112a   :  { %2206 = vperm.xlu1 %3201, %v2200_v7  }
0x1132   :  { %513 = vperm.xlu1 %3201, %v510_v48  }
0x113a   :  { %516 = vperm.xlu1 %3201, %v511_v28   ;;  %v2588_v28 = vld [vmem:[#allocation26 + $0x10] sm:$0xff] }
0x1174   :  { %v2217_v54 = vpop.permute.xlu2 %2216 }
0x1175   :  { %v2226_v27 = vmul.f32 %v2217_v54, %v4975_v18  ;;  %v3426_v18 = vld [vmem:[%s5245_s10 + $0x30] sm:$0xff] }
0x1184   :  { %v2212_v39 = vpop.permute.xlu0 %2211 }
0x1185   :  { %v2225_v12 = vmul.f32 %v2212_v39, %v4971_v36  ;;  %v3427_v36 = vld [vmem:[%s5245_s10 + $0x28] sm:$0xff] }
0x1194   :  { %v2222_v9 = vpop.permute.xlu1 %2221 }
0x1195   :  { %v2227_v1 = vmul.f32 %v2222_v9, %v4979_v20  ;;  %v3425_v20 = vld [vmem:[%s5245_s10 + $0x38] sm:$0xff] }
0x1197   :  { %2240 = vmatpush.msra.mxu3 %v2227_v1  ;;  %v2587_v1 = vld [vmem:[#allocation26 + $0x8] sm:$0xff] }
0x1199   :  { %2241 = vmatpush.msra.mxu3 %v2226_v27 }
0x119b   :  { %2242 = vmatpush.msra.mxu3 %v2225_v12 }
0x119c   :  { %v2207_v30 = vpop.permute.xlu1 %2206 }
0x119d   :  { %v2224_v45 = vmul.f32 %v2207_v30, %v4967_v14  ;;  %v3429_v14 = vld [vmem:[%s5245_s10 + $0x18] sm:$0xff] }
0x119e   :  { %v2586_v30 = vld [vmem:[#allocation26] sm:$0xff] }
0x119f   :  { %2243 = vmatpush.msra.mxu3 %v2224_v45 }
0x11a0   :  { %3090 = vmatmul.msk.f32.vlgmr.msra.gmra.mxu3 %vm714_vm6, %v4447_v52  ;;  %v3431_v52 = vld [vmem:[%s5245_s10 + $0x8] sm:$0xff] }
0x11a1   :  { %2327 = vmatpush.msrb.mxu3 %v3425_v20 }
0x11a3   :  { %2328 = vmatpush.msrb.mxu3 %v3426_v18 }
0x11a5   :  { %2329 = vmatpush.msrb.mxu3 %v3427_v36 }
0x11a7   :  { %2330 = vmatpush.msrb.mxu3 %v3428_v51 }
0x11a8   :  { %3091 = vmatmul.msk.f32.gmra.mxu3 %vm714_vm6, %v4454_v8  ;;  %v3437_v8 = vld [vmem:[#allocation18 + $0x18] sm:$0xff] }
0x11a9   :  { %2331 = vmatpush.msrb.mxu3 %v3429_v14 }
0x11ab   :  { %2332 = vmatpush.msrb.mxu3 %v3430_v40 }
0x11ad   :  { %2333 = vmatpush.msrb.mxu3 %v3431_v52 }
0x11af   :  { %2334 = vmatpush.msrb.mxu3 %v3432_v43 }
0x11b1   :  { %2475 = vmatpush.msra.mxu3 %v3433_v44 }
0x11b3   :  { %2476 = vmatpush.msra.mxu3 %v3434_v38 }
0x11b5   :  { %2477 = vmatpush.msra.mxu3 %v3435_v50 }
0x11b7   :  { %2478 = vmatpush.msra.mxu3 %v3436_v33 }
0x1223   :  { %v2245_v61 = vpop.f32.mrf.mxu3 }
0x1224   :  { %3092 = vmatmul.msk.f32.vlgmr.msra.gmra.mxu1 %vm714_vm6, %v2245_v61 }
0x1225   :  { %2561 = vmatpush.msra.mxu1 %v3437_v8 }
0x1227   :  { %2562 = vmatpush.msra.mxu1 %v3438_v11 }
0x1229   :  { %2563 = vmatpush.msra.mxu1 %v3439_v35 }
0x122b   :  { %v2248_v37 = vpop.f32.mrf.mxu3  ;;  %2564 = vmatpush.msra.mxu1 %v3440_v34 }
0x122c   :  { %3093 = vmatmul.msk.f32.gmra.mxu1 %vm714_vm6, %v2248_v37 }
0x12a1   :  { %v2274_v4 = vpop.f32.mrf.mxu1 }
0x12a2   :  { %v2275_v56 = vadd.f32 %v2274_v4, %v5296_v55 }
0x12a4   :  { %v2280_v16 = vmax.f32 %v2275_v56, 0.0 }
0x12a6   :  { %3094 = vmatmul.msk.f32.vlgmr.msra.gmra.mxu2 %vm767_vm7, %v2280_v16 }
0x12a7   :  { %2612 = vmatpush.msra.mxu2 %v2589_v29 }
0x12a9   :  { %v2277_v26 = vpop.f32.mrf.mxu1  ;;  %2613 = vmatpush.msra.mxu2 %v2588_v28 }
0x12aa   :  { %v2278_v2 = vadd.f32 %v2277_v26, %v5297_v42  ;;  %v3445_v26 = vld [vmem:[#allocation24] ss:$0 sm:$0xff] }
0x12ab   :  { %2614 = vmatpush.msra.mxu2 %v2587_v1 }
0x12ac   :  { %v2281_v22 = vmax.f32 %v2278_v2, 0.0 }
0x12ad   :  { %2615 = vmatpush.msra.mxu2 %v2586_v30 }
0x12ae   :  { %3095 = vmatmul.msk.f32.gmra.mxu2 %vm767_vm7, %v2281_v22 }
0x12b6   :  { %3104 = vmatmul.msk.f32.vlgmr.msrb.gmra.mxu2 %vm714_vm6, %v4948_v21 }
0x12be   :  { %3105 = vmatmul.msk.f32.gmra.mxu2 %vm714_vm6, %v4944_v6 }
0x1329   :  { %v2305_v63 = vpop.f32.mrf.mxu2 }
0x132a   :  { %v2306_v31 = vadd.f32 %v3441_v19, %v2305_v63 }
0x132c   :  { %v2311_v47 = vmax.f32 %v2306_v31, 0.0  ;;  %v3446_v31 = vld [vmem:[#allocation23] ss:$0 sm:$0xff] }
0x132e   :  { %3096 = vmatmul.msk.f32.vlgmr.msrb.gmra.mxu3 %vm767_vm7, %v2311_v47 }
0x1331   :  { %v2308_v55 = vpop.f32.mrf.mxu2 }
0x1332   :  { %v2309_v59 = vadd.f32 %v3441_v19, %v2308_v55 }
0x1334   :  { %v2312_v25 = vmax.f32 %v2309_v59, 0.0 }
0x1336   :  { %3097 = vmatmul.msk.f32.gmra.mxu3 %vm767_vm7, %v2312_v25 }
0x1339   :  { %v2457_v0 = vpop.f32.mrf.mxu2 }
0x1341   :  { %v2460_v39 = vpop.f32.mrf.mxu2 }
0x13b1   :  { %v2336_v42 = vpop.f32.mrf.mxu3 }
0x13b2   :  { %v2337_v60 = vadd.f32 %v3442_v5, %v2336_v42 }
0x13b4   :  { %3100 = vmatmul.msk.f32.vlgmr.msrb.gmra.mxu1 %vm714_vm6, %v2337_v60  ;;  %3106 = vmatmul.msk.f32.vlgmr.msra.gmra.mxu3 %vm714_vm6, %v2337_v60 }
0x13b5   :  { %3110 = vmatmul.msk.f32.vlgmr.msrb.gmra.mxu0 %vm714_vm6, %v2337_v60 }
0x13b9   :  { %v2339_v10 = vpop.f32.mrf.mxu3 }
0x13ba   :  { %v2340_v17 = vadd.f32 %v3442_v5, %v2339_v10 }
0x13bc   :  { %3101 = vmatmul.msk.f32.gmra.mxu1 %vm714_vm6, %v2340_v17  ;;  %3107 = vmatmul.msk.f32.gmra.mxu3 %vm714_vm6, %v2340_v17 }
0x13bd   :  { %3111 = vmatmul.msk.f32.gmra.mxu0 %vm714_vm6, %v2340_v17 }
0x13c4   :  { %3112 = vmatmul.msk.f32.vlgmr.msra.gmra.mxu1 %vm714_vm6, %v4948_v21 }
0x13cc   :  { %3113 = vmatmul.msk.f32.gmra.mxu1 %vm714_vm6, %v4944_v6 }
0x1431   :  { %v2394_v24 = vpop.f32.mrf.mxu1 }
0x1432   :  { %v2395_v32 = vadd.f32 %v2394_v24, %v2365_v58  ;;  %v2543_v61 = vpop.f32.mrf.mxu0 }
0x1433   :  { %v2544_v47 = vadd.f32 %v3446_v31, %v2543_v61  ;;  %v3215_v61 = vld [vmem:[#allocation29] ss:$0 sm:$0xff] }
0x1434   :  { %v2400_v62 = vadd.f32 %v3443_v41, %v2395_v32 }
0x1436   :  { %v3102_v46 = vmul.f32 -1.442695, %v2400_v62 }
0x1437   :  { %v2480_v49 = vpop.f32.mrf.mxu3 }
0x1438   :  { %3357 = vpow2.f32 %v3102_v46  ;;  %v2481_v23 = vadd.f32 %v2480_v49, %v2457_v0 }
0x1439   :  { %v2397_v53 = vpop.f32.mrf.mxu1 }
0x143a   :  { %v2486_v57 = vadd.f32 %v3444_v13, %v2481_v23  ;;  %v2398_v15 = vadd.f32 %v2397_v53, %v2368_v3  ;;  %v2546_v46 = vpop.f32.mrf.mxu0 }
0x143c   :  { %v3108_v7 = vmul.f32 -1.442695, %v2486_v57  ;;  %v2401_v48 = vadd.f32 %v3443_v41, %v2398_v15 }
0x143e   :  { %v3358_v54 = vpop.eup %3357  ;;  %3359 = vpow2.f32 %v3108_v7  ;;  %v3103_v9 = vmul.f32 -1.442695, %v2401_v48  ;;  %v2547_v7 = vadd.f32 %v3446_v31, %v2546_v46 }
0x143f   :  { %v2408_v27 = vadd.f32 1.0, %v3358_v54  ;;  %v2483_v12 = vpop.f32.mrf.mxu3 }
0x1440   :  { %3361 = vpow2.f32 %v3103_v9  ;;  %v2484_v45 = vadd.f32 %v2483_v12, %v2460_v39 }
0x1441   :  { %3363 = vrcp.f32 %v2408_v27  ;;  %v2566_v38 = vpop.f32.mrf.mxu1  ;;  %v2421_v50 = vand.u32 2147483648, %v2408_v27  ;;  %v2419_v11 = vand.u32 2147483647, %v2408_v27  ;;  %vm2415_vm11 = vweird.f32 %v2408_v27 }
0x1442   :  { %v2487_v20 = vadd.f32 %v3444_v13, %v2484_v45  ;;  %v2567_v2 = vadd.f32 %v3445_v26, %v2566_v38 }
0x1443   :  { %v2422_v16 = vor.u32 1.1754944e-38, %v2421_v50  ;;  %vm2420_vm13 = vcmp.eq.f32.partialorder %v2419_v11, 8.507059e+37 }
0x1444   :  { %v3360_v18 = vpop.eup %3359  ;;  %v3109_v36 = vmul.f32 -1.442695, %v2487_v20 }
0x1445   :  { %v2494_v51 = vadd.f32 1.0, %v3360_v18 }
0x1446   :  { %v3362_v14 = vpop.eup %3361  ;;  %3365 = vpow2.f32 %v3109_v36 }
0x1447   :  { %v3364_v40 = vpop.eup %3363  ;;  %3367 = vrcp.f32 %v2494_v51  ;;  %v2409_v52 = vadd.f32 1.0, %v3362_v14  ;;  %v2507_v55 = vand.u32 2147483648, %v2494_v51  ;;  %vm2501_vm15 = vweird.f32 %v2494_v51 }
0x1448   :  { %v2411_v43 = vmul.f32 %v3364_v40, %v2408_v27  ;;  %vm2416_vm10 = vweird.f32 %v3364_v40  ;;  %v2505_v60 = vand.u32 2147483647, %v2494_v51 }
0x1449   :  { %3369 = vrcp.f32 %v2409_v52  ;;  %vm2417_vm12 = vmor %vm2415_vm11, %vm2416_vm10  ;;  %v2434_v10 = vand.u32 2147483647, %v2409_v52  ;;  %v2436_v17 = vand.u32 2147483648, %v2409_v52  ;;  %v2569_v41 = vpop.f32.mrf.mxu1  ;;  %v2508_v0 = vor.u32 1.1754944e-38, %v2507_v55 }
0x144a   :  { %v2412_v44 = vsub.f32 1.0, %v2411_v43  ;;  %vm2430_vm3 = vweird.f32 %v2409_v52  ;;  %vm2506_vm4 = vcmp.eq.f32.partialorder %v2505_v60, 8.507059e+37  ;;  %v2570_v13 = vadd.f32 %v3445_v26, %v2569_v41 }
0x144b   :  { %v2437_v53 = vor.u32 1.1754944e-38, %v2436_v17  ;;  %vm2435_vm9 = vcmp.eq.f32.partialorder %v2434_v10, 8.507059e+37 }
0x144c   :  { %v3366_v33 = vpop.eup %3365  ;;  %v2413_v8 = vmul.f32 %v3364_v40, %v2412_v44 }
0x144d   :  { %v3368_v35 = vpop.eup %3367  ;;  %v5071_v37 = vadd.f32 1.0, %v3366_v33 }
0x144e   :  { %v2497_v34 = vmul.f32 %v3368_v35, %v2494_v51  ;;  %v2414_v4 = vadd.f32 %v3364_v40, %v2413_v8  ;;  %vm2502_vm14 = vweird.f32 %v3368_v35 }
0x144f   :  { %v3370_v56 = vpop.eup %3369  ;;  %3371 = vrcp.f32 %v5071_v37  ;;  %vm2503_vm2 = vmor %vm2501_vm15, %vm2502_vm14  ;;  %v2522_v9 = vand.u32 2147483648, %v5071_v37  ;;  %v2520_v39 = vand.u32 2147483647, %v5071_v37  ;;  %vm2516_vm11 = vweird.f32 %v5071_v37 }
0x1450   :  { %v2498_v22 = vsub.f32 1.0, %v2497_v34  ;;  %v2418_v63 = vsel %vm2417_vm12, %v3364_v40, %v2414_v4  ;;  %v2426_v19 = vmul.f32 %v3370_v56, %v2409_v52  ;;  %vm2431_vm1 = vweird.f32 %v3370_v56 }
0x1451   :  { %v2423_v59 = vsel %vm2420_vm13, %v2422_v16, %v2418_v63  ;;  %vm2432_vm8 = vmor %vm2430_vm3, %vm2431_vm1  ;;  %v2523_v36 = vor.u32 1.1754944e-38, %v2522_v9  ;;  %vm2521_vm13 = vcmp.eq.f32.partialorder %v2520_v39, 8.507059e+37  ;;  %v3216_v16 = vld [vmem:[#allocation3] ss:$0 sm:$0xff] }
0x1452   :  { %v2499_v25 = vmul.f32 %v3368_v35, %v2498_v22  ;;  %v2572_v42 = vmul.f32 %v2567_v2, %v2423_v59  ;;  %v2427_v5 = vsub.f32 1.0, %v2426_v19 }
0x1454   :  { %v2500_v58 = vadd.f32 %v3368_v35, %v2499_v25  ;;  %v2574_v24 = vadd.f32 %v2572_v42, %v2544_v47  ;;  %v2428_v32 = vmul.f32 %v3370_v56, %v2427_v5 }
0x1455   :  { %v3372_v62 = vpop.eup %3371 }
0x1456   :  { %v2512_v49 = vmul.f32 %v3372_v62, %v5071_v37  ;;  %v2504_v23 = vsel %vm2503_vm2, %v3368_v35, %v2500_v58  ;;  %3373 = vtanh.f32 %v2574_v24  ;;  %v2429_v3 = vadd.f32 %v3370_v56, %v2428_v32 }
0x1457   :  { %v2509_v15 = vsel %vm2506_vm4, %v2508_v0, %v2504_v23  ;;  %vm2517_vm10 = vweird.f32 %v3372_v62 }
0x1458   :  { %v2513_v57 = vsub.f32 1.0, %v2512_v49  ;;  %v2433_v29 = vsel %vm2432_vm8, %v3370_v56, %v2429_v3  ;;  %v2578_v1 = vsub.f32 1.0, %v2509_v15  ;;  %v2582_v20 = vmul.f32 %v2509_v15, %v4948_v21  ;;  %vm2518_vm12 = vmor %vm2516_vm11, %vm2517_vm10  ;;  %v3214_v21 = vld [vmem:[#allocation27] ss:$0 sm:$0xff] }
0x1459   :  { %v2438_v48 = vsel %vm2435_vm9, %v2437_v53, %v2433_v29 }
0x145a   :  { %v2573_v28 = vmul.f32 %v2570_v13, %v2438_v48  ;;  %v2514_v54 = vmul.f32 %v3372_v62, %v2513_v57 }
0x145c   :  { %v3374_v27 = vpop.eup %3373  ;;  %v2575_v12 = vadd.f32 %v2573_v28, %v2547_v7  ;;  %v2515_v30 = vadd.f32 %v3372_v62, %v2514_v54  ;;  %v3217_v28 = vld [vmem:[%s5315_s4] ss:$0 sm:$0xff]  ;;  %v5316_v54 = vld [vmem:[#allocation67_spill] sm:$0xff] }
0x145d   :  { %v2580_v45 = vmul.f32 %v3374_v27, %v2578_v1  ;;  %vm526_vm10 = vcmp.eq.s32.totalorder %v3217_v28, %v5316_v54  ;;  %v5317_v1 = vmov 0.0  }
0x145e   :  { %3375 = vtanh.f32 %v2575_v12  ;;  %v2519_v18 = vsel %vm2518_vm12, %v3372_v62, %v2515_v30  ;;  %v2987_v39 = vsel %vm526_vm10, 1.0, %v5317_v1  ;;  %v514_v12 = vpop.permute.xlu1 %513  ;;  %v5318_v30 = vld [vmem:[#allocation66_spill] sm:$0xff] }
0x145f   :  { %v5079_v51 = vadd.f32 %v2582_v20, %v2580_v45  ;;  %v2524_v14 = vsel %vm2521_vm13, %v2523_v36, %v2519_v18  ;;  %vm518_vm11 = vcmp.eq.s32.totalorder %v514_v12, %v5318_v30  ;;  %vm2779_vm13 = vcmask 15360  }
0x1460   :  { %v2579_v40 = vsub.f32 1.0, %v2524_v14  ;;  %v2583_v44 = vmul.f32 %v2524_v14, %v4944_v6  ;;  %v2985_v20 = vsel %vm518_vm11, 1.0, %v5317_v1 }
0x1461   :  { %3114 = vmatmul.msk.f32.vlgmr.msra.gmra.mxu2 %vm714_vm6, %v5079_v51 }
0x1464   :  { %v3376_v52 = vpop.eup %3375 }
0x1465   :  { %v2581_v43 = vmul.f32 %v3376_v52, %v2579_v40 }
0x1466   :  { %v517_v18 = vpop.permute.xlu1 %516 }
0x1467   :  { %v5084_v38 = vadd.f32 %v2583_v44, %v2581_v43  ;;  %vm519_vm12 = vcmp.eq.s32.totalorder %v517_v18, %v5318_v30 }
0x1468   :  { %v2986_v36 = vsel %vm519_vm12, 1.0, %v5317_v1 }
0x1469   :  { %3115 = vmatmul.msk.f32.gmra.mxu2 %vm714_vm6, %v5084_v38 }
0x14e4   :  { %v2617_v50 = vpop.f32.mrf.mxu2 }
0x14e5   :  { %v2618_v33 = vadd.f32 %v3214_v21, %v2617_v50  ;;  %v2776_v50 = vld [vmem:[%s5319_s14 + $0x18] sm:$0xff] }
0x14e6   :  { %2822 = vmatpush.msrb.mxu2 %v2776_v50 }
0x14e7   :  { %v2623_v8 = vmax.f32 %v2618_v33, 0.0  ;;  %v2775_v33 = vld [vmem:[%s5319_s14 + $0x10] sm:$0xff] }
0x14e8   :  { %2823 = vmatpush.msrb.mxu2 %v2775_v33 }
0x14e9   :  { %v2629_v11 = vmul.f32 %v3215_v61, %v2623_v8 }
0x14eb   :  { %v2631_v35 = vsel %vm767_vm7, %v2629_v11, 0.0 }
0x14ec   :  { %2632 = vadd.xlane.f32.xlu2 %v2631_v35  ;;  %v2620_v37 = vpop.f32.mrf.mxu2 }
0x14ed   :  { %v2621_v34 = vadd.f32 %v3214_v21, %v2620_v37 }
0x14ef   :  { %v2624_v4 = vmax.f32 %v2621_v34, 0.0  ;;  %v2773_v34 = vld [vmem:[%s5319_s14] sm:$0xff] }
0x14f1   :  { %v2630_v56 = vmul.f32 %v3215_v61, %v2624_v4  ;;  %v2774_v61 = vld [vmem:[%s5319_s14 + $0x8] sm:$0xff]  ;;  %v2778_v4 = vld [vmem:[#allocation30] sm:$0x3] }
0x14f2   :  { %2824 = vmatpush.msrb.mxu2 %v2774_v61 }
0x14f3   :  { %v2634_v6 = vsel %vm767_vm7, %v2630_v56, 0.0  ;;  %v2777_v56 = vld [vmem:[%s5320_s20] sm:$0xff] }
0x14f4   :  { %2635 = vadd.xlane.f32.xlu0 %v2634_v6  ;;  %2825 = vmatpush.msrb.mxu2 %v2773_v34  ;;  %v2843_v6 = vld [vmem:[%s5321_s5 + $0x38] sm:$0xff] }
0x155f   :  { %v2633_v26 = vpop.xlane.xlu2 %2632 }
0x1560   :  { %v2641_v2 = vadd.f32 %v3216_v16, %v2633_v26 }
0x1562   :  { %v3116_v22 = vmul.f32 -1.442695, %v2641_v2  ;;  %v2839_v2 = vld [vmem:[%s5321_s5 + $0x18] sm:$0xff] }
0x1564   :  { %3377 = vpow2.f32 %v3116_v22  ;;  %v2838_v22 = vld [vmem:[%s5321_s5 + $0x10] sm:$0xff] }
0x1567   :  { %v2636_v63 = vpop.xlane.xlu0 %2635 }
0x1568   :  { %v2642_v19 = vadd.f32 %v3216_v16, %v2636_v63  ;;  %v2840_v16 = vld [vmem:[%s5321_s5 + $0x20] sm:$0xff]  ;;  %v2837_v63 = vld [vmem:[%s5321_s5 + $0x8] sm:$0xff] }
0x156a   :  { %v3378_v31 = vpop.eup %3377  ;;  %v3117_v47 = vmul.f32 -1.442695, %v2642_v19  ;;  %v2836_v19 = vld [vmem:[%s5321_s5] sm:$0xff] }
0x156b   :  { %v2649_v55 = vadd.f32 1.0, %v3378_v31  ;;  %v2879_v31 = vld [vmem:[%s4183_s6 + $0x38] sm:$0xff] }
0x156c   :  { %3379 = vpow2.f32 %v3117_v47  ;;  %v2878_v47 = vld [vmem:[%s4183_s6 + $0x30] sm:$0xff] }
0x156d   :  { %3381 = vrcp.f32 %v2649_v55  ;;  %v2662_v32 = vand.u32 2147483648, %v2649_v55  ;;  %vm2656_vm15 = vweird.f32 %v2649_v55  ;;  %v2660_v41 = vand.u32 2147483647, %v2649_v55 }
0x156f   :  { %v2663_v3 = vor.u32 1.1754944e-38, %v2662_v32  ;;  %vm2661_vm3 = vcmp.eq.f32.partialorder %v2660_v41, 8.507059e+37  ;;  %v2873_v32 = vld [vmem:[%s4183_s6 + $0x8] sm:$0xff]  ;;  %v2872_v41 = vld [vmem:[%s4183_s6] sm:$0xff] }
0x1572   :  { %v3380_v59 = vpop.eup %3379 }
0x1573   :  { %v3382_v25 = vpop.eup %3381  ;;  %v2650_v42 = vadd.f32 1.0, %v3380_v59  ;;  %v2876_v59 = vld [vmem:[%s4183_s6 + $0x20] sm:$0xff] }
0x1574   :  { %v2652_v5 = vmul.f32 %v3382_v25, %v2649_v55  ;;  %vm2657_vm14 = vweird.f32 %v3382_v25  ;;  %v2877_v55 = vld [vmem:[%s4183_s6 + $0x28] sm:$0xff] }
0x1575   :  { %3383 = vrcp.f32 %v2650_v42  ;;  %vm2658_vm1 = vmor %vm2656_vm15, %vm2657_vm14  ;;  %v2677_v0 = vand.u32 2147483648, %v2650_v42  ;;  %v2675_v49 = vand.u32 2147483647, %v2650_v42  ;;  %vm2671_vm4 = vweird.f32 %v2650_v42 }
0x1576   :  { %v2653_v60 = vsub.f32 1.0, %v2652_v5  ;;  %v3218_v5 = vld [vmem:[#allocation32] ss:$0 sm:$0xff] }
0x1577   :  { %v2678_v13 = vor.u32 1.1754944e-38, %v2677_v0  ;;  %vm2676_vm9 = vcmp.eq.f32.partialorder %v2675_v49, 8.507059e+37 }
0x1578   :  { %v2654_v10 = vmul.f32 %v3382_v25, %v2653_v60 }
0x157a   :  { %v2655_v58 = vadd.f32 %v3382_v25, %v2654_v10 }
0x157b   :  { %v3384_v17 = vpop.eup %3383 }
0x157c   :  { %v2667_v24 = vmul.f32 %v3384_v17, %v2650_v42  ;;  %vm2672_vm2 = vweird.f32 %v3384_v17  ;;  %v2659_v23 = vsel %vm2658_vm1, %v3382_v25, %v2655_v58  ;;  %v2875_v25 = vld [vmem:[%s4183_s6 + $0x18] sm:$0xff] }
0x157d   :  { %vm2673_vm8 = vmor %vm2671_vm4, %vm2672_vm2  ;;  %v2664_v57 = vsel %vm2661_vm3, %v2663_v3, %v2659_v23  ;;  %v3220_v23 = vld [vmem:[%s4188_s9] ss:$0 sm:$0xff] }
0x157e   :  { %v2668_v62 = vsub.f32 1.0, %v2667_v24  ;;  %v2681_v48 = vmul.f32 1.442695, %v2664_v57  ;;  %v2874_v24 = vld [vmem:[%s4183_s6 + $0x10] sm:$0xff] }
0x1580   :  { %v2669_v46 = vmul.f32 %v3384_v17, %v2668_v62  ;;  %v3219_v62 = vld [vmem:[%s5322_s3] ss:$0 sm:$0xff] }
0x1582   :  { %v2670_v53 = vadd.f32 %v3384_v17, %v2669_v46 }
0x1584   :  { %v2674_v15 = vsel %vm2673_vm8, %v3384_v17, %v2670_v53 }
0x1585   :  { %v2679_v29 = vsel %vm2676_vm9, %v2678_v13, %v2674_v15 }
0x1586   :  { %v2683_v7 = vmul.f32 1.442695, %v2679_v29 }
0x1588   :  { %3385 = vpow2.f32 %v2683_v7 }
0x1589   :  { %3387 = vpow2.f32 %v2681_v48 }
0x158e   :  { %v3386_v9 = vpop.eup %3385 }
0x158f   :  { %2702 = vmatpush.msrb.mxu3 %v3386_v9  ;;  %v3388_v27 = vpop.eup %3387 }
0x1591   :  { %2703 = vmatpush.msrb.mxu3 %v3388_v27 }
0x1592   :  { %3118 = vmatmul.msk.f32.vlgmr.msrb.gmra.mxu3 %vm672_vm0, %v2987_v39 }
0x1615   :  { %v2705_v45 = vpop.f32.mrf.mxu3 }
0x1616   :  { %2729 = vmatpush.msra.mxu3 %v2705_v45 }
0x1617   :  { %3119 = vmatmul.msk.f32.vlgmr.msra.gmra.mxu3 %vm594_vm5, %v2985_v20 }
0x1618   :  { %2859 = vmatpush.msrb.mxu3 %v2843_v6 }
0x161f   :  { %3120 = vmatmul.msk.f32.gmra.mxu3 %vm594_vm5, %v2986_v36  ;;  %vm2783_vm5 = vcmask 1041408  }
0x1620   :  { %3122 = vmatpush.msk.msrb.mxu1 %vm2783_vm5, %v2778_v4 }
0x1621   :  { %3123 = vmatmul.msk.f32.vlgmr.msrb.gmra.mxu1 %vm2779_vm13, %v2777_v56 }
0x169a   :  { %v2731_v14 = vpop.f32.mrf.mxu3 }
0x169e   :  { %v2804_v42 = vpop.f32.mrf.mxu1 }
0x16a2   :  { %v2734_v40 = vpop.f32.mrf.mxu3 }
0x16a3   :  { %3389 = vrcp.f32 %v2734_v40 }
0x16a4   :  { %3391 = vrcp.f32 %v2731_v14 }
0x16a9   :  { %v3390_v52 = vpop.eup %3389 }
0x16aa   :  { %v2740_v43 = vmul.f32 %v3390_v52, %v3386_v9  ;;  %v3392_v44 = vpop.eup %3391 }
0x16ab   :  { %v2739_v21 = vmul.f32 %v3392_v44, %v3388_v27 }
0x16ac   :  { %2748 = vperm.xlu1 %3201, %v2740_v43  }
0x16b4   :  { %2743 = vperm.xlu1 %3201, %v2739_v21  }
0x171e   :  { %v2749_v8 = vpop.permute.xlu1 %2748 }
0x171f   :  { %v2752_v11 = vmul.f32 %v2749_v8, %v5084_v38  ;;  %v2842_v38 = vld [vmem:[%s5321_s5 + $0x30] sm:$0xff] }
0x1720   :  { %2860 = vmatpush.msrb.mxu3 %v2842_v38 }
0x1721   :  { %2767 = vmatpush.msra.mxu0 %v2752_v11 }
0x1726   :  { %v2744_v35 = vpop.permute.xlu1 %2743 }
0x1727   :  { %v2751_v37 = vmul.f32 %v2744_v35, %v5079_v51  ;;  %v2841_v51 = vld [vmem:[%s5321_s5 + $0x28] sm:$0xff] }
0x1728   :  { %2861 = vmatpush.msrb.mxu3 %v2841_v51 }
0x1729   :  { %2768 = vmatpush.msra.mxu0 %v2751_v37 }
0x172a   :  { %3121 = vmatmul.msk.f32.vlgmr.msra.gmra.mxu0 %vm672_vm0, %v2987_v39  ;;  %2862 = vmatpush.msrb.mxu3 %v2840_v16 }
0x172b   :  { %2895 = vmatpush.msrb.mxu0 %v2879_v31 }
0x172c   :  { %2863 = vmatpush.msrb.mxu3 %v2839_v2 }
0x172d   :  { %2896 = vmatpush.msrb.mxu0 %v2878_v47 }
0x172e   :  { %2864 = vmatpush.msrb.mxu3 %v2838_v22 }
0x172f   :  { %2897 = vmatpush.msrb.mxu0 %v2877_v55 }
0x1730   :  { %2865 = vmatpush.msrb.mxu3 %v2837_v63 }
0x1731   :  { %2898 = vmatpush.msrb.mxu0 %v2876_v59 }
0x1732   :  { %2866 = vmatpush.msrb.mxu3 %v2836_v19 }
0x1733   :  { %2899 = vmatpush.msrb.mxu0 %v2875_v25 }
0x1735   :  { %2900 = vmatpush.msrb.mxu0 %v2874_v24 }
0x1737   :  { %2901 = vmatpush.msrb.mxu0 %v2873_v32 }
0x1739   :  { %2902 = vmatpush.msrb.mxu0 %v2872_v41 }
0x17a7   :  { %v2770_v26 = vpop.f32.mrf.mxu0 }
0x17a8   :  { %3124 = vmatmul.msk.f32.vlgmr.msrb.gmra.mxu2 %vm714_vm6, %v2770_v26 }
0x182b   :  { %v2827_v60 = vpop.f32.mrf.mxu2 }
0x182c   :  { %v2828_v10 = vadd.f32 %v2827_v60, %v2804_v42 }
0x182e   :  { %v2834_v17 = vadd.f32 %v3218_v5, %v2828_v10 }
0x1830   :  { %v2835_v58 = vmax.f32 %v2834_v17, 0.0 }
0x1832   :  { %3125 = vmatmul.msk.f32.vlgmr.msrb.gmra.mxu3 %vm767_vm7, %v2835_v58 }
0x18b5   :  { %v2868_v0 = vpop.f32.mrf.mxu3 }
0x18b6   :  { %v2869_v46 = vadd.f32 %v3219_v62, %v2868_v0 }
0x18b8   :  { %v2871_v49 = vmax.f32 %v2869_v46, 0.0 }
0x18ba   :  { %3126 = vmatmul.msk.f32.vlgmr.msrb.gmra.mxu0 %vm767_vm7, %v2871_v49 }
0x1937   :  { %v2904_v3 = vpop.f32.mrf.mxu0 }
0x1938   :  { %v2905_v53 = vadd.f32 %v3220_v23, %v2904_v3 }
0x193a   :  { %v2907_v13 = vsel %vm2779_vm13, %v2905_v53, -inf }
0x193b   :  { %2908 = vmax.xlane.f32.xlu1 %v2907_v13 }
0x19ae   :  { %v2909_v57 = vpop.xlane.xlu1 %2908 }
0x19af   :  { %v2910_v15 = vsub.f32 %v2905_v53, %v2909_v57 }
0x19b1   :  { %v2911_v29 = vmul.f32 1.442695, %v2910_v15 }
0x19b3   :  { %3393 = vpow2.f32 %v2911_v29 }
0x19b9   :  { %v3394_v7 = vpop.eup %3393 }
0x19ba   :  { %v2913_v48 = vsel %vm2779_vm13, %v3394_v7, 0.0 }
0x19bb   :  { %2914 = vadd.xlane.f32.xlu2 %v2913_v48 }
0x1a2e   :  { %v2915_v28 = vpop.xlane.xlu2 %2914 }
0x1a2f   :  { %3395 = vlog2.f32 %v2915_v28 }
0x1a35   :  { %v3396_v54 = vpop.eup %3395 }
0x1a36   :  { %v2917_v9 = vmul.f32 0.6931472, %v3396_v54 }
0x1a38   :  { %v2918_v1 = vsub.f32 %v2910_v15, %v2917_v9 }
0x1a3a   :  { %2919 = vst.msk [vmem:[%s4193_s8] sm:$0xff] %vm2779_vm13, %v2918_v1 }
0x1a3b   :  { %2924 = vsyncpa [#allocation5], 1 }
0x1a3c   :  { %2925 = vsyncpa [#allocation7], 1 }
0x1a3d   :  { %2926 = vsyncpa [#allocation10], 1 }
0x1a3e   :  { %2927 = vsyncpa [#allocation13], 1 }
0x1a3f   :  { %2928 = vsyncpa [#allocation16], 1 }
0x1a40   :  { %2929 = vsyncpa [#allocation19], 1 }
0x1a41   :  { %2930 = vsyncpa [#allocation22], 1 }
0x1a42   :  { %2931 = vsyncpa [#allocation25], 1 }
0x1a43   :  { %2932 = vsyncpa [#allocation28], 1 }
0x1a44   :  { %2933 = vsyncpa [#allocation31], 1 }

</bundles_post_ra>
